<compile_context>
chip_gen: v7x
topology: tpu7x:2x2x1
jax: 0.10.0
libtpu: 0.0.40
codegen_flags: <defaults>
</compile_context>

<pallas_src>
import jax
import jax.numpy as jnp
from jax.experimental import pallas as pl
from jax.experimental.pallas import tpu as pltpu


# ----------------------------------------------------------------------------
# Kernel A / C: fused "virtual concat" 1x1 conv (sum of matmuls) + BN + SiLU
# ----------------------------------------------------------------------------
def _fused_pointwise_conv_kernel(*refs):
    """refs = (a_0..a_{n-1}, w_0..w_{n-1}, scale, bias, out).

    Computes out = SiLU((sum_k a_k @ w_k) * scale + bias) for one (TM, Cout)
    row tile.  Splitting the channel-concat into per-slab matmuls means the
    concatenated tensor is never materialized in HBM.
    """
    n = (len(refs) - 3) // 2
    a_refs = refs[:n]
    w_refs = refs[n:2 * n]
    scale_ref, bias_ref, o_ref = refs[2 * n], refs[2 * n + 1], refs[2 * n + 2]

    acc = jnp.dot(a_refs[0][...].astype(jnp.float32),
                  w_refs[0][...].astype(jnp.float32),
                  preferred_element_type=jnp.float32)
    for k in range(1, n):
        acc = acc + jnp.dot(a_refs[k][...].astype(jnp.float32),
                            w_refs[k][...].astype(jnp.float32),
                            preferred_element_type=jnp.float32)
    y = acc * scale_ref[...] + bias_ref[...]          # folded BatchNorm (eval), f32
    o_ref[...] = (y * jax.nn.sigmoid(y)).astype(o_ref.dtype)   # SiLU, f32 epilogue


def fused_pointwise_conv_bn_silu(acts, weights, scale, bias, *, tile_m=256):
    """acts: list of (M, C_k) arrays; weights: list of (C_k, Cout). Returns (M, Cout)."""
    M = acts[0].shape[0]
    Cout = weights[0].shape[1]
    out_dtype = acts[0].dtype

    # Row-tile over M so the activations are software-pipelined through VMEM and
    # the grid axis can be sharded across TensorCores.
    tm = min(tile_m, M)
    if M >= 8:
        tm = max(8, (tm // 8) * 8)            # keep sublane-aligned tiles
    grid = (pl.cdiv(M, tm),)

    act_specs = [pl.BlockSpec((tm, a.shape[1]), lambda i: (i, 0)) for a in acts]
    w_specs = [pl.BlockSpec(tuple(w.shape), lambda i: (0, 0)) for w in weights]
    vec_spec = pl.BlockSpec((1, Cout), lambda i: (0, 0))

    k_total = sum(a.shape[1] for a in acts)
    flops = 2 * M * k_total * Cout
    bytes_accessed = (sum(int(a.size) * a.dtype.itemsize for a in acts)
                      + sum(int(w.size) * w.dtype.itemsize for w in weights)
                      + M * Cout * jnp.dtype(out_dtype).itemsize)

    return pl.pallas_call(
        _fused_pointwise_conv_kernel,
        out_shape=jax.ShapeDtypeStruct((M, Cout), out_dtype),
        grid=grid,
        in_specs=act_specs + w_specs + [vec_spec, vec_spec],
        out_specs=pl.BlockSpec((tm, Cout), lambda i: (i, 0)),
        compiler_params=pltpu.CompilerParams(
            dimension_semantics=("parallel",),
            vmem_limit_bytes=32 * 1024 * 1024),
        cost_estimate=pl.CostEstimate(flops=flops,
                                      transcendentals=M * Cout,
                                      bytes_accessed=bytes_accessed),
    )(*acts, *weights, scale.reshape(1, Cout), bias.reshape(1, Cout))


# ----------------------------------------------------------------------------
# Kernel B: three cascaded 5x5 / stride-1 / "same" max pools in a single call
# ----------------------------------------------------------------------------
def _cascaded_maxpool5_kernel(x_ref, y1_ref, y2_ref, y3_ref, pad_ref):
    """One image per grid step.  pad_ref is a (-inf)-bordered VMEM workspace
    (H+4, W+4, C).  Each pool is separable: 5-wide max along W (sublane axis),
    then 5-tall max along H (major axis) => 8 maximums instead of 24, and only
    4 sublane-offset slices.  x, y1, y2 never round-trip through HBM between
    pools and no HBM jnp.pad is needed."""
    H, W, C = x_ref.shape[1], x_ref.shape[2], x_ref.shape[3]
    pad_ref[...] = jnp.full((H + 4, W + 4, C), -jnp.inf, dtype=jnp.float32)

    def pool_once(v):
        # write the current feature map into the interior; borders stay -inf
        pad_ref[2:H + 2, 2:W + 2, :] = v
        # pass 1: max over 5 along W
        t = pad_ref[2:H + 2, 0:W, :]
        for dx in range(1, 5):
            t = jnp.maximum(t, pad_ref[2:H + 2, dx:dx + W, :])
        # pass 2: max over 5 along H (cheap major-axis shifts)
        pad_ref[2:H + 2, 2:W + 2, :] = t
        out = pad_ref[0:H, 2:W + 2, :]
        for dy in range(1, 5):
            out = jnp.maximum(out, pad_ref[dy:dy + H, 2:W + 2, :])
        return out

    x = x_ref[0].astype(jnp.float32)
    y1 = pool_once(x)
    y1_ref[0] = y1.astype(y1_ref.dtype)
    y2 = pool_once(y1)
    y2_ref[0] = y2.astype(y2_ref.dtype)
    y3 = pool_once(y2)
    y3_ref[0] = y3.astype(y3_ref.dtype)


def cascaded_maxpool5_same(x_nhwc):
    N, H, W, C = x_nhwc.shape
    spec = pl.BlockSpec((1, H, W, C), lambda n: (n, 0, 0, 0))
    sds = jax.ShapeDtypeStruct((N, H, W, C), x_nhwc.dtype)
    # TODO(synk): for very large H*W*C, row-tile H with a 6-row halo instead of whole images.
    return pl.pallas_call(
        _cascaded_maxpool5_kernel,
        out_shape=(sds, sds, sds),
        grid=(N,),
        in_specs=[spec],
        out_specs=(spec, spec, spec),
        scratch_shapes=[pltpu.VMEM((H + 4, W + 4, C), jnp.float32)],
        compiler_params=pltpu.CompilerParams(
            dimension_semantics=("parallel",),
            vmem_limit_bytes=32 * 1024 * 1024),
    )(x_nhwc)


# ----------------------------------------------------------------------------
# Parameter construction (deterministic; BN folded into scale/bias, eval mode)
# ----------------------------------------------------------------------------
def make_sppf_params(key, in_channels, out_channels, dtype=jnp.float32):
    mid = in_channels // 2
    eps = 1e-5
    k1, k2, k3, k4, k5, k6 = jax.random.split(key, 6)

    def fold_bn(gamma, beta, mean, var):
        scale = gamma / jnp.sqrt(var + eps)
        bias = beta - mean * scale
        return scale, bias

    # conv1: 1x1, in_channels -> mid (torch weight (mid, Cin, 1, 1) -> (Cin, mid))
    w1 = (0.1 * jax.random.normal(k1, (in_channels, mid))).astype(dtype)
    g1 = 1.0 + 0.1 * jax.random.normal(k2, (mid,)).astype(dtype)
    b1 = 0.1 * jax.random.normal(k3, (mid,)).astype(dtype)
    scale1, bias1 = fold_bn(g1, b1, jnp.zeros((mid,), dtype), jnp.ones((mid,), dtype))

    # conv2: 1x1, 4*mid -> out_channels
    w2 = (0.1 * jax.random.normal(k4, (4 * mid, out_channels))).astype(dtype)
    g2 = 1.0 + 0.1 * jax.random.normal(k5, (out_channels,)).astype(dtype)
    b2 = 0.1 * jax.random.normal(k6, (out_channels,)).astype(dtype)
    scale2, bias2 = fold_bn(g2, b2, jnp.zeros((out_channels,), dtype),
                            jnp.ones((out_channels,), dtype))

    return dict(w1=w1, scale1=scale1.astype(dtype), bias1=bias1.astype(dtype),
                w2=w2, scale2=scale2.astype(dtype), bias2=bias2.astype(dtype))


# ----------------------------------------------------------------------------
# Full SPPFBottleneck forward (NCHW in / NCHW out, like the torch module)
# ----------------------------------------------------------------------------
def sppf_bottleneck(x_nchw, params):
    N, Cin, H, W = x_nchw.shape
    mid = params["w1"].shape[1]
    Cout = params["w2"].shape[1]
    M = N * H * W

    # TODO(synk): fold the boundary NCHW<->NHWC transposes into the conv kernels' index maps.
    x = jnp.transpose(x_nchw, (0, 2, 3, 1))                 # NCHW -> NHWC
    x2d = x.reshape(M, Cin)                                 # contiguous, free reshape

    # conv1 + BN + SiLU (tiled matmul over M)
    h2d = fused_pointwise_conv_bn_silu([x2d], [params["w1"]],
                                       params["scale1"], params["bias1"])
    h = h2d.reshape(N, H, W, mid)                           # free reshape

    # three cascaded 5x5 max pools, one fused kernel
    y1, y2, y3 = cascaded_maxpool5_same(h)

    # conv2 over the *virtual* concat [h, y1, y2, y3]: four weight slabs, one output
    acts = [h2d, y1.reshape(M, mid), y2.reshape(M, mid), y3.reshape(M, mid)]
    w2 = params["w2"]
    w_slabs = [w2[k * mid:(k + 1) * mid] for k in range(4)]
    out2d = fused_pointwise_conv_bn_silu(acts, w_slabs,
                                         params["scale2"], params["bias2"])
    out = out2d.reshape(N, H, W, Cout)
    return jnp.transpose(out, (0, 3, 1, 2))                 # NHWC -> NCHW


# ----------------------------------------------------------------------------
# Pure-JAX reference (for correctness check only)
# ----------------------------------------------------------------------------
def _sppf_reference(x_nchw, params):
    x = jnp.transpose(x_nchw, (0, 2, 3, 1))

    def conv(v, w, s, b):
        y = jnp.einsum("nhwc,cd->nhwd", v.astype(jnp.float32), w.astype(jnp.float32))
        y = y * s + b
        return y * jax.nn.sigmoid(y)

    def pool(v):
        Hh, Ww = v.shape[1], v.shape[2]
        vp = jnp.pad(v, ((0, 0), (2, 2), (2, 2), (0, 0)), constant_values=-jnp.inf)
        out = None
        for dy in range(5):
            for dx in range(5):
                s = vp[:, dy:dy + Hh, dx:dx + Ww, :]
                out = s if out is None else jnp.maximum(out, s)
        return out

    h = conv(x, params["w1"], params["scale1"], params["bias1"])
    y1 = pool(h)
    y2 = pool(y1)
    y3 = pool(y2)
    cat = jnp.concatenate([h, y1, y2, y3], axis=-1)
    o = conv(cat, params["w2"], params["scale2"], params["bias2"])
    return jnp.transpose(o, (0, 3, 1, 2)).astype(x_nchw.dtype)


if __name__ == "__main__":
    key = jax.random.PRNGKey(0)
    k_x, k_p = jax.random.split(key)

    N, C_in, H, W = 2, 4, 16, 16
    C_out = 8
    x = jax.random.normal(k_x, (N, C_in, H, W), dtype=jnp.float32)
    params = make_sppf_params(k_p, C_in, C_out)

    out = jax.jit(sppf_bottleneck)(x, params)
    out = jax.block_until_ready(out)

    assert out.shape == (N, C_out, H, W), out.shape
    assert jnp.all(jnp.isfinite(out))

    ref = _sppf_reference(x, params)
    assert jnp.allclose(out, ref, atol=1e-4, rtol=1e-4), float(jnp.max(jnp.abs(out - ref)))

    print("KERNEL_OK")
</pallas_src>

<mosaic_0001>
module attributes {stable_mosaic.version = 11 : i64} {
  func.func @_fused_pointwise_conv_kernel(%arg0: i32, %arg1: memref<256x4xf32, #tpu.memory_space<vmem>>, %arg2: memref<4x2xf32, #tpu.memory_space<vmem>>, %arg3: memref<1x2xf32, #tpu.memory_space<vmem>>, %arg4: memref<1x2xf32, #tpu.memory_space<vmem>>, %arg5: memref<256x2xf32, #tpu.memory_space<vmem>>) attributes {dimension_semantics = [#tpu.dimension_semantics<parallel>], iteration_bounds = array<i64: 2>, scalar_prefetch = 0 : i64, scratch_operands = 0 : i64, tpu.core_type = #tpu.core_type<tc>, window_params = [{transform_indices = @transform_0, window_bounds = array<i64: 256, 4>}, {pipeline_mode = #tpu.pipeline_mode<synchronous>, transform_indices = @transform_1, window_bounds = array<i64: 4, 2>}, {pipeline_mode = #tpu.pipeline_mode<synchronous>, transform_indices = @transform_2, window_bounds = array<i64: 1, 2>}, {pipeline_mode = #tpu.pipeline_mode<synchronous>, transform_indices = @transform_3, window_bounds = array<i64: 1, 2>}, {transform_indices = @transform_4, window_bounds = array<i64: 256, 2>}]} {
    %c0 = arith.constant 0 : index
    %c0_0 = arith.constant 0 : index
    %0 = vector.load %arg1[%c0, %c0_0] : memref<256x4xf32, #tpu.memory_space<vmem>>, vector<256x4xf32>
    %c0_1 = arith.constant 0 : index
    %c0_2 = arith.constant 0 : index
    %1 = vector.load %arg2[%c0_1, %c0_2] : memref<4x2xf32, #tpu.memory_space<vmem>>, vector<4x2xf32>
    %cst = arith.constant dense<0.000000e+00> : vector<256x2xf32>
    %2 = tpu.matmul %0, %1, %cst {dimension_numbers = #tpu.dot_dimension_numbers<[1], [0], [0], [1], [0, 0, 1, 1], [], []>} : vector<256x4xf32>, vector<4x2xf32>, vector<256x2xf32> -> vector<256x2xf32>
    %c0_3 = arith.constant 0 : index
    %c0_4 = arith.constant 0 : index
    %3 = vector.load %arg3[%c0_3, %c0_4] : memref<1x2xf32, #tpu.memory_space<vmem>>, vector<1x2xf32>
    %4 = vector.broadcast %3 : vector<1x2xf32> to vector<256x2xf32>
    %5 = arith.mulf %2, %4 : vector<256x2xf32>
    %c0_5 = arith.constant 0 : index
    %c0_6 = arith.constant 0 : index
    %6 = vector.load %arg4[%c0_5, %c0_6] : memref<1x2xf32, #tpu.memory_space<vmem>>, vector<1x2xf32>
    %7 = vector.broadcast %6 : vector<1x2xf32> to vector<256x2xf32>
    %8 = arith.addf %5, %7 : vector<256x2xf32>
    %9 = arith.negf %8 : vector<256x2xf32>
    %10 = math.exp %9 : vector<256x2xf32>
    %cst_7 = arith.constant 1.000000e+00 : f32
    %11 = vector.broadcast %cst_7 : f32 to vector<256x2xf32>
    %12 = arith.addf %11, %10 : vector<256x2xf32>
    %13 = arith.divf %11, %12 : vector<256x2xf32>
    %14 = arith.mulf %8, %13 : vector<256x2xf32>
    %c0_8 = arith.constant 0 : index
    %c0_9 = arith.constant 0 : index
    %15 = vector.load %arg5[%c0_8, %c0_9] : memref<256x2xf32, #tpu.memory_space<vmem>>, vector<256x2xf32>
    tpu.vector_store %arg5[%c0_8, %c0_9], %14 {strides = array<i32>} : memref<256x2xf32, #tpu.memory_space<vmem>>, vector<256x2xf32>,
    return
  }
  func.func @transform_0(%arg0: i32) -> (i32, i32) {
    %c0_i32 = arith.constant 0 : i32
    %c0_i32_0 = arith.constant 0 : i32
    return %arg0, %c0_i32 : i32, i32
  }
  func.func @transform_1(%arg0: i32) -> (i32, i32) {
    %c0_i32 = arith.constant 0 : i32
    %c0_i32_0 = arith.constant 0 : i32
    %c0_i32_1 = arith.constant 0 : i32
    return %c0_i32, %c0_i32_0 : i32, i32
  }
  func.func @transform_2(%arg0: i32) -> (i32, i32) {
    %c0_i32 = arith.constant 0 : i32
    %c0_i32_0 = arith.constant 0 : i32
    %c0_i32_1 = arith.constant 0 : i32
    return %c0_i32, %c0_i32_0 : i32, i32
  }
  func.func @transform_3(%arg0: i32) -> (i32, i32) {
    %c0_i32 = arith.constant 0 : i32
    %c0_i32_0 = arith.constant 0 : i32
    %c0_i32_1 = arith.constant 0 : i32
    return %c0_i32, %c0_i32_0 : i32, i32
  }
  func.func @transform_4(%arg0: i32) -> (i32, i32) {
    %c0_i32 = arith.constant 0 : i32
    %c0_i32_0 = arith.constant 0 : i32
    return %arg0, %c0_i32 : i32, i32
  }
}

module attributes {stable_mosaic.version = 11 : i64} {
  func.func @_cascaded_maxpool5_kernel(%arg0: i32, %arg1: memref<1x16x16x2xf32, #tpu.memory_space<vmem>>, %arg2: memref<1x16x16x2xf32, #tpu.memory_space<vmem>>, %arg3: memref<1x16x16x2xf32, #tpu.memory_space<vmem>>, %arg4: memref<1x16x16x2xf32, #tpu.memory_space<vmem>>, %arg5: memref<20x20x2xf32, #tpu.memory_space<vmem>>) attributes {dimension_semantics = [#tpu.dimension_semantics<parallel>], iteration_bounds = array<i64: 2>, scalar_prefetch = 0 : i64, scratch_operands = 1 : i64, tpu.core_type = #tpu.core_type<tc>, window_params = [{transform_indices = @transform_0, window_bounds = array<i64: 1, 16, 16, 2>}, {transform_indices = @transform_1, window_bounds = array<i64: 1, 16, 16, 2>}, {transform_indices = @transform_2, window_bounds = array<i64: 1, 16, 16, 2>}, {transform_indices = @transform_3, window_bounds = array<i64: 1, 16, 16, 2>}]} {
    %cst = arith.constant 0xFF800000 : f32
    %0 = vector.broadcast %cst : f32 to vector<20x20x2xf32>
    %c0 = arith.constant 0 : index
    %c0_0 = arith.constant 0 : index
    %c0_1 = arith.constant 0 : index
    %1 = vector.load %arg5[%c0, %c0_0, %c0_1] : memref<20x20x2xf32, #tpu.memory_space<vmem>>, vector<20x20x2xf32>
    tpu.vector_store %arg5[%c0, %c0_0, %c0_1], %0 {strides = array<i32>} : memref<20x20x2xf32, #tpu.memory_space<vmem>>, vector<20x20x2xf32>,
    %c0_2 = arith.constant 0 : index
    %c0_3 = arith.constant 0 : index
    %c0_4 = arith.constant 0 : index
    %c0_5 = arith.constant 0 : index
    %2 = vector.load %arg1[%c0_2, %c0_3, %c0_4, %c0_5] : memref<1x16x16x2xf32, #tpu.memory_space<vmem>>, vector<1x16x16x2xf32>
    %3 = vector.shape_cast %2 : vector<1x16x16x2xf32> to vector<16x16x2xf32>
    %c2 = arith.constant 2 : index
    %c2_6 = arith.constant 2 : index
    %c0_7 = arith.constant 0 : index
    %4 = vector.load %arg5[%c2, %c2_6, %c0_7] : memref<20x20x2xf32, #tpu.memory_space<vmem>>, vector<16x16x2xf32>
    tpu.vector_store %arg5[%c2, %c2_6, %c0_7], %3 {strides = array<i32>} : memref<20x20x2xf32, #tpu.memory_space<vmem>>, vector<16x16x2xf32>,
    %c2_8 = arith.constant 2 : index
    %c0_9 = arith.constant 0 : index
    %c0_10 = arith.constant 0 : index
    %5 = vector.load %arg5[%c2_8, %c0_9, %c0_10] : memref<20x20x2xf32, #tpu.memory_space<vmem>>, vector<16x16x2xf32>
    %c2_11 = arith.constant 2 : index
    %c1 = arith.constant 1 : index
    %c0_12 = arith.constant 0 : index
    %6 = vector.load %arg5[%c2_11, %c1, %c0_12] : memref<20x20x2xf32, #tpu.memory_space<vmem>>, vector<16x16x2xf32>
    %7 = arith.maximumf %5, %6 : vector<16x16x2xf32>
    %c2_13 = arith.constant 2 : index
    %c2_14 = arith.constant 2 : index
    %c0_15 = arith.constant 0 : index
    %8 = vector.load %arg5[%c2_13, %c2_14, %c0_15] : memref<20x20x2xf32, #tpu.memory_space<vmem>>, vector<16x16x2xf32>
    %9 = arith.maximumf %7, %8 : vector<16x16x2xf32>
    %c2_16 = arith.constant 2 : index
    %c3 = arith.constant 3 : index
    %c0_17 = arith.constant 0 : index
    %10 = vector.load %arg5[%c2_16, %c3, %c0_17] : memref<20x20x2xf32, #tpu.memory_space<vmem>>, vector<16x16x2xf32>
    %11 = arith.maximumf %9, %10 : vector<16x16x2xf32>
    %c2_18 = arith.constant 2 : index
    %c4 = arith.constant 4 : index
    %c0_19 = arith.constant 0 : index
    %12 = vector.load %arg5[%c2_18, %c4, %c0_19] : memref<20x20x2xf32, #tpu.memory_space<vmem>>, vector<16x16x2xf32>
    %13 = arith.maximumf %11, %12 : vector<16x16x2xf32>
    %c2_20 = arith.constant 2 : index
    %c2_21 = arith.constant 2 : index
    %c0_22 = arith.constant 0 : index
    %14 = vector.load %arg5[%c2_20, %c2_21, %c0_22] : memref<20x20x2xf32, #tpu.memory_space<vmem>>, vector<16x16x2xf32>
    tpu.vector_store %arg5[%c2_20, %c2_21, %c0_22], %13 {strides = array<i32>} : memref<20x20x2xf32, #tpu.memory_space<vmem>>, vector<16x16x2xf32>,
    %c0_23 = arith.constant 0 : index
    %c2_24 = arith.constant 2 : index
    %c0_25 = arith.constant 0 : index
    %15 = vector.load %arg5[%c0_23, %c2_24, %c0_25] : memref<20x20x2xf32, #tpu.memory_space<vmem>>, vector<16x16x2xf32>
    %c1_26 = arith.constant 1 : index
    %c2_27 = arith.constant 2 : index
    %c0_28 = arith.constant 0 : index
    %16 = vector.load %arg5[%c1_26, %c2_27, %c0_28] : memref<20x20x2xf32, #tpu.memory_space<vmem>>, vector<16x16x2xf32>
    %17 = arith.maximumf %15, %16 : vector<16x16x2xf32>
    %c2_29 = arith.constant 2 : index
    %c2_30 = arith.constant 2 : index
    %c0_31 = arith.constant 0 : index
    %18 = vector.load %arg5[%c2_29, %c2_30, %c0_31] : memref<20x20x2xf32, #tpu.memory_space<vmem>>, vector<16x16x2xf32>
    %19 = arith.maximumf %17, %18 : vector<16x16x2xf32>
    %c3_32 = arith.constant 3 : index
    %c2_33 = arith.constant 2 : index
    %c0_34 = arith.constant 0 : index
    %20 = vector.load %arg5[%c3_32, %c2_33, %c0_34] : memref<20x20x2xf32, #tpu.memory_space<vmem>>, vector<16x16x2xf32>
    %21 = arith.maximumf %19, %20 : vector<16x16x2xf32>
    %c4_35 = arith.constant 4 : index
    %c2_36 = arith.constant 2 : index
    %c0_37 = arith.constant 0 : index
    %22 = vector.load %arg5[%c4_35, %c2_36, %c0_37] : memref<20x20x2xf32, #tpu.memory_space<vmem>>, vector<16x16x2xf32>
    %23 = arith.maximumf %21, %22 : vector<16x16x2xf32>
    %c0_38 = arith.constant 0 : index
    %c0_39 = arith.constant 0 : index
    %c0_40 = arith.constant 0 : index
    %c0_41 = arith.constant 0 : index
    %24 = vector.load %arg2[%c0_38, %c0_39, %c0_40, %c0_41] : memref<1x16x16x2xf32, #tpu.memory_space<vmem>>, vector<1x16x16x2xf32>
    %25 = vector.shape_cast %24 : vector<1x16x16x2xf32> to vector<16x16x2xf32>
    %26 = vector.shape_cast %23 : vector<16x16x2xf32> to vector<1x16x16x2xf32>
    tpu.vector_store %arg2[%c0_38, %c0_39, %c0_40, %c0_41], %26 {strides = array<i32>} : memref<1x16x16x2xf32, #tpu.memory_space<vmem>>, vector<1x16x16x2xf32>,
    %c2_42 = arith.constant 2 : index
    %c2_43 = arith.constant 2 : index
    %c0_44 = arith.constant 0 : index
    %27 = vector.load %arg5[%c2_42, %c2_43, %c0_44] : memref<20x20x2xf32, #tpu.memory_space<vmem>>, vector<16x16x2xf32>
    tpu.vector_store %arg5[%c2_42, %c2_43, %c0_44], %23 {strides = array<i32>} : memref<20x20x2xf32, #tpu.memory_space<vmem>>, vector<16x16x2xf32>,
    %c2_45 = arith.constant 2 : index
    %c0_46 = arith.constant 0 : index
    %c0_47 = arith.constant 0 : index
    %28 = vector.load %arg5[%c2_45, %c0_46, %c0_47] : memref<20x20x2xf32, #tpu.memory_space<vmem>>, vector<16x16x2xf32>
    %c2_48 = arith.constant 2 : index
    %c1_49 = arith.constant 1 : index
    %c0_50 = arith.constant 0 : index
    %29 = vector.load %arg5[%c2_48, %c1_49, %c0_50] : memref<20x20x2xf32, #tpu.memory_space<vmem>>, vector<16x16x2xf32>
    %30 = arith.maximumf %28, %29 : vector<16x16x2xf32>
    %c2_51 = arith.constant 2 : index
    %c2_52 = arith.constant 2 : index
    %c0_53 = arith.constant 0 : index
    %31 = vector.load %arg5[%c2_51, %c2_52, %c0_53] : memref<20x20x2xf32, #tpu.memory_space<vmem>>, vector<16x16x2xf32>
    %32 = arith.maximumf %30, %31 : vector<16x16x2xf32>
    %c2_54 = arith.constant 2 : index
    %c3_55 = arith.constant 3 : index
    %c0_56 = arith.constant 0 : index
    %33 = vector.load %arg5[%c2_54, %c3_55, %c0_56] : memref<20x20x2xf32, #tpu.memory_space<vmem>>, vector<16x16x2xf32>
    %34 = arith.maximumf %32, %33 : vector<16x16x2xf32>
    %c2_57 = arith.constant 2 : index
    %c4_58 = arith.constant 4 : index
    %c0_59 = arith.constant 0 : index
    %35 = vector.load %arg5[%c2_57, %c4_58, %c0_59] : memref<20x20x2xf32, #tpu.memory_space<vmem>>, vector<16x16x2xf32>
    %36 = arith.maximumf %34, %35 : vector<16x16x2xf32>
    %c2_60 = arith.constant 2 : index
    %c2_61 = arith.constant 2 : index
    %c0_62 = arith.constant 0 : index
    %37 = vector.load %arg5[%c2_60, %c2_61, %c0_62] : memref<20x20x2xf32, #tpu.memory_space<vmem>>, vector<16x16x2xf32>
    tpu.vector_store %arg5[%c2_60, %c2_61, %c0_62], %36 {strides = array<i32>} : memref<20x20x2xf32, #tpu.memory_space<vmem>>, vector<16x16x2xf32>,
    %c0_63 = arith.constant 0 : index
    %c2_64 = arith.constant 2 : index
    %c0_65 = arith.constant 0 : index
    %38 = vector.load %arg5[%c0_63, %c2_64, %c0_65] : memref<20x20x2xf32, #tpu.memory_space<vmem>>, vector<16x16x2xf32>
    %c1_66 = arith.constant 1 : index
    %c2_67 = arith.constant 2 : index
    %c0_68 = arith.constant 0 : index
    %39 = vector.load %arg5[%c1_66, %c2_67, %c0_68] : memref<20x20x2xf32, #tpu.memory_space<vmem>>, vector<16x16x2xf32>
    %40 = arith.maximumf %38, %39 : vector<16x16x2xf32>
    %c2_69 = arith.constant 2 : index
    %c2_70 = arith.constant 2 : index
    %c0_71 = arith.constant 0 : index
    %41 = vector.load %arg5[%c2_69, %c2_70, %c0_71] : memref<20x20x2xf32, #tpu.memory_space<vmem>>, vector<16x16x2xf32>
    %42 = arith.maximumf %40, %41 : vector<16x16x2xf32>
    %c3_72 = arith.constant 3 : index
    %c2_73 = arith.constant 2 : index
    %c0_74 = arith.constant 0 : index
    %43 = vector.load %arg5[%c3_72, %c2_73, %c0_74] : memref<20x20x2xf32, #tpu.memory_space<vmem>>, vector<16x16x2xf32>
    %44 = arith.maximumf %42, %43 : vector<16x16x2xf32>
    %c4_75 = arith.constant 4 : index
    %c2_76 = arith.constant 2 : index
    %c0_77 = arith.constant 0 : index
    %45 = vector.load %arg5[%c4_75, %c2_76, %c0_77] : memref<20x20x2xf32, #tpu.memory_space<vmem>>, vector<16x16x2xf32>
    %46 = arith.maximumf %44, %45 : vector<16x16x2xf32>
    %c0_78 = arith.constant 0 : index
    %c0_79 = arith.constant 0 : index
    %c0_80 = arith.constant 0 : index
    %c0_81 = arith.constant 0 : index
    %47 = vector.load %arg3[%c0_78, %c0_79, %c0_80, %c0_81] : memref<1x16x16x2xf32, #tpu.memory_space<vmem>>, vector<1x16x16x2xf32>
    %48 = vector.shape_cast %47 : vector<1x16x16x2xf32> to vector<16x16x2xf32>
    %49 = vector.shape_cast %46 : vector<16x16x2xf32> to vector<1x16x16x2xf32>
    tpu.vector_store %arg3[%c0_78, %c0_79, %c0_80, %c0_81], %49 {strides = array<i32>} : memref<1x16x16x2xf32, #tpu.memory_space<vmem>>, vector<1x16x16x2xf32>,
    %c2_82 = arith.constant 2 : index
    %c2_83 = arith.constant 2 : index
    %c0_84 = arith.constant 0 : index
    %50 = vector.load %arg5[%c2_82, %c2_83, %c0_84] : memref<20x20x2xf32, #tpu.memory_space<vmem>>, vector<16x16x2xf32>
    tpu.vector_store %arg5[%c2_82, %c2_83, %c0_84], %46 {strides = array<i32>} : memref<20x20x2xf32, #tpu.memory_space<vmem>>, vector<16x16x2xf32>,
    %c2_85 = arith.constant 2 : index
    %c0_86 = arith.constant 0 : index
    %c0_87 = arith.constant 0 : index
    %51 = vector.load %arg5[%c2_85, %c0_86, %c0_87] : memref<20x20x2xf32, #tpu.memory_space<vmem>>, vector<16x16x2xf32>
    %c2_88 = arith.constant 2 : index
    %c1_89 = arith.constant 1 : index
    %c0_90 = arith.constant 0 : index
    %52 = vector.load %arg5[%c2_88, %c1_89, %c0_90] : memref<20x20x2xf32, #tpu.memory_space<vmem>>, vector<16x16x2xf32>
    %53 = arith.maximumf %51, %52 : vector<16x16x2xf32>
    %c2_91 = arith.constant 2 : index
    %c2_92 = arith.constant 2 : index
    %c0_93 = arith.constant 0 : index
    %54 = vector.load %arg5[%c2_91, %c2_92, %c0_93] : memref<20x20x2xf32, #tpu.memory_space<vmem>>, vector<16x16x2xf32>
    %55 = arith.maximumf %53, %54 : vector<16x16x2xf32>
    %c2_94 = arith.constant 2 : index
    %c3_95 = arith.constant 3 : index
    %c0_96 = arith.constant 0 : index
    %56 = vector.load %arg5[%c2_94, %c3_95, %c0_96] : memref<20x20x2xf32, #tpu.memory_space<vmem>>, vector<16x16x2xf32>
    %57 = arith.maximumf %55, %56 : vector<16x16x2xf32>
    %c2_97 = arith.constant 2 : index
    %c4_98 = arith.constant 4 : index
    %c0_99 = arith.constant 0 : index
    %58 = vector.load %arg5[%c2_97, %c4_98, %c0_99] : memref<20x20x2xf32, #tpu.memory_space<vmem>>, vector<16x16x2xf32>
    %59 = arith.maximumf %57, %58 : vector<16x16x2xf32>
    %c2_100 = arith.constant 2 : index
    %c2_101 = arith.constant 2 : index
    %c0_102 = arith.constant 0 : index
    %60 = vector.load %arg5[%c2_100, %c2_101, %c0_102] : memref<20x20x2xf32, #tpu.memory_space<vmem>>, vector<16x16x2xf32>
    tpu.vector_store %arg5[%c2_100, %c2_101, %c0_102], %59 {strides = array<i32>} : memref<20x20x2xf32, #tpu.memory_space<vmem>>, vector<16x16x2xf32>,
    %c0_103 = arith.constant 0 : index
    %c2_104 = arith.constant 2 : index
    %c0_105 = arith.constant 0 : index
    %61 = vector.load %arg5[%c0_103, %c2_104, %c0_105] : memref<20x20x2xf32, #tpu.memory_space<vmem>>, vector<16x16x2xf32>
    %c1_106 = arith.constant 1 : index
    %c2_107 = arith.constant 2 : index
    %c0_108 = arith.constant 0 : index
    %62 = vector.load %arg5[%c1_106, %c2_107, %c0_108] : memref<20x20x2xf32, #tpu.memory_space<vmem>>, vector<16x16x2xf32>
    %63 = arith.maximumf %61, %62 : vector<16x16x2xf32>
    %c2_109 = arith.constant 2 : index
    %c2_110 = arith.constant 2 : index
    %c0_111 = arith.constant 0 : index
    %64 = vector.load %arg5[%c2_109, %c2_110, %c0_111] : memref<20x20x2xf32, #tpu.memory_space<vmem>>, vector<16x16x2xf32>
    %65 = arith.maximumf %63, %64 : vector<16x16x2xf32>
    %c3_112 = arith.constant 3 : index
    %c2_113 = arith.constant 2 : index
    %c0_114 = arith.constant 0 : index
    %66 = vector.load %arg5[%c3_112, %c2_113, %c0_114] : memref<20x20x2xf32, #tpu.memory_space<vmem>>, vector<16x16x2xf32>
    %67 = arith.maximumf %65, %66 : vector<16x16x2xf32>
    %c4_115 = arith.constant 4 : index
    %c2_116 = arith.constant 2 : index
    %c0_117 = arith.constant 0 : index
    %68 = vector.load %arg5[%c4_115, %c2_116, %c0_117] : memref<20x20x2xf32, #tpu.memory_space<vmem>>, vector<16x16x2xf32>
    %69 = arith.maximumf %67, %68 : vector<16x16x2xf32>
    %c0_118 = arith.constant 0 : index
    %c0_119 = arith.constant 0 : index
    %c0_120 = arith.constant 0 : index
    %c0_121 = arith.constant 0 : index
    %70 = vector.load %arg4[%c0_118, %c0_119, %c0_120, %c0_121] : memref<1x16x16x2xf32, #tpu.memory_space<vmem>>, vector<1x16x16x2xf32>
    %71 = vector.shape_cast %70 : vector<1x16x16x2xf32> to vector<16x16x2xf32>
    %72 = vector.shape_cast %69 : vector<16x16x2xf32> to vector<1x16x16x2xf32>
    tpu.vector_store %arg4[%c0_118, %c0_119, %c0_120, %c0_121], %72 {strides = array<i32>} : memref<1x16x16x2xf32, #tpu.memory_space<vmem>>, vector<1x16x16x2xf32>,
    return
  }
  func.func @transform_0(%arg0: i32) -> (i32, i32, i32, i32) {
    %c0_i32 = arith.constant 0 : i32
    %c0_i32_0 = arith.constant 0 : i32
    %c0_i32_1 = arith.constant 0 : i32
    %c0_i32_2 = arith.constant 0 : i32
    return %arg0, %c0_i32, %c0_i32_0, %c0_i32_1 : i32, i32, i32, i32
  }
  func.func @transform_1(%arg0: i32) -> (i32, i32, i32, i32) {
    %c0_i32 = arith.constant 0 : i32
    %c0_i32_0 = arith.constant 0 : i32
    %c0_i32_1 = arith.constant 0 : i32
    %c0_i32_2 = arith.constant 0 : i32
    return %arg0, %c0_i32, %c0_i32_0, %c0_i32_1 : i32, i32, i32, i32
  }
  func.func @transform_2(%arg0: i32) -> (i32, i32, i32, i32) {
    %c0_i32 = arith.constant 0 : i32
    %c0_i32_0 = arith.constant 0 : i32
    %c0_i32_1 = arith.constant 0 : i32
    %c0_i32_2 = arith.constant 0 : i32
    return %arg0, %c0_i32, %c0_i32_0, %c0_i32_1 : i32, i32, i32, i32
  }
  func.func @transform_3(%arg0: i32) -> (i32, i32, i32, i32) {
    %c0_i32 = arith.constant 0 : i32
    %c0_i32_0 = arith.constant 0 : i32
    %c0_i32_1 = arith.constant 0 : i32
    %c0_i32_2 = arith.constant 0 : i32
    return %arg0, %c0_i32, %c0_i32_0, %c0_i32_1 : i32, i32, i32, i32
  }
}

module attributes {stable_mosaic.version = 11 : i64} {
  func.func @_fused_pointwise_conv_kernel(%arg0: i32, %arg1: memref<256x2xf32, #tpu.memory_space<vmem>>, %arg2: memref<256x2xf32, #tpu.memory_space<vmem>>, %arg3: memref<256x2xf32, #tpu.memory_space<vmem>>, %arg4: memref<256x2xf32, #tpu.memory_space<vmem>>, %arg5: memref<2x8xf32, #tpu.memory_space<vmem>>, %arg6: memref<2x8xf32, #tpu.memory_space<vmem>>, %arg7: memref<2x8xf32, #tpu.memory_space<vmem>>, %arg8: memref<2x8xf32, #tpu.memory_space<vmem>>, %arg9: memref<1x8xf32, #tpu.memory_space<vmem>>, %arg10: memref<1x8xf32, #tpu.memory_space<vmem>>, %arg11: memref<256x8xf32, #tpu.memory_space<vmem>>) attributes {dimension_semantics = [#tpu.dimension_semantics<parallel>], iteration_bounds = array<i64: 2>, scalar_prefetch = 0 : i64, scratch_operands = 0 : i64, tpu.core_type = #tpu.core_type<tc>, window_params = [{transform_indices = @transform_0, window_bounds = array<i64: 256, 2>}, {transform_indices = @transform_1, window_bounds = array<i64: 256, 2>}, {transform_indices = @transform_2, window_bounds = array<i64: 256, 2>}, {transform_indices = @transform_3, window_bounds = array<i64: 256, 2>}, {pipeline_mode = #tpu.pipeline_mode<synchronous>, transform_indices = @transform_4, window_bounds = array<i64: 2, 8>}, {pipeline_mode = #tpu.pipeline_mode<synchronous>, transform_indices = @transform_5, window_bounds = array<i64: 2, 8>}, {pipeline_mode = #tpu.pipeline_mode<synchronous>, transform_indices = @transform_6, window_bounds = array<i64: 2, 8>}, {pipeline_mode = #tpu.pipeline_mode<synchronous>, transform_indices = @transform_7, window_bounds = array<i64: 2, 8>}, {pipeline_mode = #tpu.pipeline_mode<synchronous>, transform_indices = @transform_8, window_bounds = array<i64: 1, 8>}, {pipeline_mode = #tpu.pipeline_mode<synchronous>, transform_indices = @transform_9, window_bounds = array<i64: 1, 8>}, {transform_indices = @transform_10, window_bounds = array<i64: 256, 8>}]} {
    %c0 = arith.constant 0 : index
    %c0_0 = arith.constant 0 : index
    %0 = vector.load %arg1[%c0, %c0_0] : memref<256x2xf32, #tpu.memory_space<vmem>>, vector<256x2xf32>
    %c0_1 = arith.constant 0 : index
    %c0_2 = arith.constant 0 : index
    %1 = vector.load %arg5[%c0_1, %c0_2] : memref<2x8xf32, #tpu.memory_space<vmem>>, vector<2x8xf32>
    %cst = arith.constant dense<0.000000e+00> : vector<256x8xf32>
    %2 = tpu.matmul %0, %1, %cst {dimension_numbers = #tpu.dot_dimension_numbers<[1], [0], [0], [1], [0, 0, 1, 1], [], []>} : vector<256x2xf32>, vector<2x8xf32>, vector<256x8xf32> -> vector<256x8xf32>
    %c0_3 = arith.constant 0 : index
    %c0_4 = arith.constant 0 : index
    %3 = vector.load %arg2[%c0_3, %c0_4] : memref<256x2xf32, #tpu.memory_space<vmem>>, vector<256x2xf32>
    %c0_5 = arith.constant 0 : index
    %c0_6 = arith.constant 0 : index
    %4 = vector.load %arg6[%c0_5, %c0_6] : memref<2x8xf32, #tpu.memory_space<vmem>>, vector<2x8xf32>
    %cst_7 = arith.constant dense<0.000000e+00> : vector<256x8xf32>
    %5 = tpu.matmul %3, %4, %cst_7 {dimension_numbers = #tpu.dot_dimension_numbers<[1], [0], [0], [1], [0, 0, 1, 1], [], []>} : vector<256x2xf32>, vector<2x8xf32>, vector<256x8xf32> -> vector<256x8xf32>
    %6 = arith.addf %2, %5 : vector<256x8xf32>
    %c0_8 = arith.constant 0 : index
    %c0_9 = arith.constant 0 : index
    %7 = vector.load %arg3[%c0_8, %c0_9] : memref<256x2xf32, #tpu.memory_space<vmem>>, vector<256x2xf32>
    %c0_10 = arith.constant 0 : index
    %c0_11 = arith.constant 0 : index
    %8 = vector.load %arg7[%c0_10, %c0_11] : memref<2x8xf32, #tpu.memory_space<vmem>>, vector<2x8xf32>
    %cst_12 = arith.constant dense<0.000000e+00> : vector<256x8xf32>
    %9 = tpu.matmul %7, %8, %cst_12 {dimension_numbers = #tpu.dot_dimension_numbers<[1], [0], [0], [1], [0, 0, 1, 1], [], []>} : vector<256x2xf32>, vector<2x8xf32>, vector<256x8xf32> -> vector<256x8xf32>
    %10 = arith.addf %6, %9 : vector<256x8xf32>
    %c0_13 = arith.constant 0 : index
    %c0_14 = arith.constant 0 : index
    %11 = vector.load %arg4[%c0_13, %c0_14] : memref<256x2xf32, #tpu.memory_space<vmem>>, vector<256x2xf32>
    %c0_15 = arith.constant 0 : index
    %c0_16 = arith.constant 0 : index
    %12 = vector.load %arg8[%c0_15, %c0_16] : memref<2x8xf32, #tpu.memory_space<vmem>>, vector<2x8xf32>
    %cst_17 = arith.constant dense<0.000000e+00> : vector<256x8xf32>
    %13 = tpu.matmul %11, %12, %cst_17 {dimension_numbers = #tpu.dot_dimension_numbers<[1], [0], [0], [1], [0, 0, 1, 1], [], []>} : vector<256x2xf32>, vector<2x8xf32>, vector<256x8xf32> -> vector<256x8xf32>
    %14 = arith.addf %10, %13 : vector<256x8xf32>
    %c0_18 = arith.constant 0 : index
    %c0_19 = arith.constant 0 : index
    %15 = vector.load %arg9[%c0_18, %c0_19] : memref<1x8xf32, #tpu.memory_space<vmem>>, vector<1x8xf32>
    %16 = vector.broadcast %15 : vector<1x8xf32> to vector<256x8xf32>
    %17 = arith.mulf %14, %16 : vector<256x8xf32>
    %c0_20 = arith.constant 0 : index
    %c0_21 = arith.constant 0 : index
    %18 = vector.load %arg10[%c0_20, %c0_21] : memref<1x8xf32, #tpu.memory_space<vmem>>, vector<1x8xf32>
    %19 = vector.broadcast %18 : vector<1x8xf32> to vector<256x8xf32>
    %20 = arith.addf %17, %19 : vector<256x8xf32>
    %21 = arith.negf %20 : vector<256x8xf32>
    %22 = math.exp %21 : vector<256x8xf32>
    %cst_22 = arith.constant 1.000000e+00 : f32
    %23 = vector.broadcast %cst_22 : f32 to vector<256x8xf32>
    %24 = arith.addf %23, %22 : vector<256x8xf32>
    %25 = arith.divf %23, %24 : vector<256x8xf32>
    %26 = arith.mulf %20, %25 : vector<256x8xf32>
    %c0_23 = arith.constant 0 : index
    %c0_24 = arith.constant 0 : index
    %27 = vector.load %arg11[%c0_23, %c0_24] : memref<256x8xf32, #tpu.memory_space<vmem>>, vector<256x8xf32>
    tpu.vector_store %arg11[%c0_23, %c0_24], %26 {strides = array<i32>} : memref<256x8xf32, #tpu.memory_space<vmem>>, vector<256x8xf32>,
    return
  }
  func.func @transform_0(%arg0: i32) -> (i32, i32) {
    %c0_i32 = arith.constant 0 : i32
    %c0_i32_0 = arith.constant 0 : i32
    return %arg0, %c0_i32 : i32, i32
  }
  func.func @transform_1(%arg0: i32) -> (i32, i32) {
    %c0_i32 = arith.constant 0 : i32
    %c0_i32_0 = arith.constant 0 : i32
    return %arg0, %c0_i32 : i32, i32
  }
  func.func @transform_2(%arg0: i32) -> (i32, i32) {
    %c0_i32 = arith.constant 0 : i32
    %c0_i32_0 = arith.constant 0 : i32
    return %arg0, %c0_i32 : i32, i32
  }
  func.func @transform_3(%arg0: i32) -> (i32, i32) {
    %c0_i32 = arith.constant 0 : i32
    %c0_i32_0 = arith.constant 0 : i32
    return %arg0, %c0_i32 : i32, i32
  }
  func.func @transform_4(%arg0: i32) -> (i32, i32) {
    %c0_i32 = arith.constant 0 : i32
    %c0_i32_0 = arith.constant 0 : i32
    %c0_i32_1 = arith.constant 0 : i32
    return %c0_i32, %c0_i32_0 : i32, i32
  }
  func.func @transform_5(%arg0: i32) -> (i32, i32) {
    %c0_i32 = arith.constant 0 : i32
    %c0_i32_0 = arith.constant 0 : i32
    %c0_i32_1 = arith.constant 0 : i32
    return %c0_i32, %c0_i32_0 : i32, i32
  }
  func.func @transform_6(%arg0: i32) -> (i32, i32) {
    %c0_i32 = arith.constant 0 : i32
    %c0_i32_0 = arith.constant 0 : i32
    %c0_i32_1 = arith.constant 0 : i32
    return %c0_i32, %c0_i32_0 : i32, i32
  }
  func.func @transform_7(%arg0: i32) -> (i32, i32) {
    %c0_i32 = arith.constant 0 : i32
    %c0_i32_0 = arith.constant 0 : i32
    %c0_i32_1 = arith.constant 0 : i32
    return %c0_i32, %c0_i32_0 : i32, i32
  }
  func.func @transform_8(%arg0: i32) -> (i32, i32) {
    %c0_i32 = arith.constant 0 : i32
    %c0_i32_0 = arith.constant 0 : i32
    %c0_i32_1 = arith.constant 0 : i32
    return %c0_i32, %c0_i32_0 : i32, i32
  }
  func.func @transform_9(%arg0: i32) -> (i32, i32) {
    %c0_i32 = arith.constant 0 : i32
    %c0_i32_0 = arith.constant 0 : i32
    %c0_i32_1 = arith.constant 0 : i32
    return %c0_i32, %c0_i32_0 : i32, i32
  }
  func.func @transform_10(%arg0: i32) -> (i32, i32) {
    %c0_i32 = arith.constant 0 : i32
    %c0_i32_0 = arith.constant 0 : i32
    return %arg0, %c0_i32 : i32, i32
  }
}

</mosaic_0001>

<bundles_post_ra>
// kernel: sppf_bottleneck.3
= control target key start
LH: loop header
LB: loop body
LE: loop exit
PB: predicated region body
PF: predicated region fallthrough
CT: control target
= control target key end

     0   :  { %s1283_s15 = smov 0   ;;  %s1665_s0 = inlined_call_operand.vmem [shape: f32[512,4], index: 0, kind: input, shape index: {}]   ;;  %s1666_s1 = inlined_call_operand.vmem [shape: f32[4,2], index: 1, kind: input, shape index: {}]   ;;  %s1667_s2 = inlined_call_operand.vmem [shape: f32[1,2], index: 2, kind: input, shape index: {}]   ;;  %s1668_s3 = inlined_call_operand.vmem [shape: f32[1,2], index: 3, kind: input, shape index: {}]   ;;  %s1669_s4 = inlined_call_operand.vmem [shape: f32[512,2], index: 4, kind: output, shape index: {}]  }
   0x1 LB: > { %s951_s16 = sadd.s32 4294967295, %s1256_s15   ;;  %p955_p0 = scmp.ge.s32.totalorder %s1256_s15, 1  ;;  %s1256_s15 = sphi %s1283_s15, %s14_s15  }
   0x2   : > { %p163_p1 = scmp.lt.s32.totalorder %s1256_s15, 3 }
   0x4   : > { %p164_p2 = pnand %p955_p0, %p163_p1 }
   0x5   : > { %v233_v0 = vld [vmem:[%s1666_s1] sm:$0xf] (!%p164_p2)  ;;  %vm331_vm0 = vcmask (!%p164_p2), 1043456   ;;  %s956_s19 = sshll.u32 (!%p164_p2), %s951_s16, 5  ;;  %vm234_vm1 = vcmask (!%p164_p2), 31744   ;;  %vm862_vm2 = vcmask (!%p164_p2), 15360  }
   0x6   : > { %167 = sbr.rel (%p164_p2) target bundleno = 321 (0x141), region = 36  ;;  %1062 = vmatprep.subr.msk.mxu0 (!%p164_p2), %vm331_vm0, %v233_v0  ;;  %1112 = vmatprep.subr.msk.mxu1 (!%p164_p2), %vm331_vm0, %v233_v0  ;;  %p190_p3 = scmp.lt.s32.totalorder (!%p164_p2), %s956_s19, 63  ;;  %v1371_v33 = vld [vmem:[%s1667_s2] ss:$0 sm:$0xff] (!%p164_p2) }
   0x7   : > { %1063 = vmatpush3.msk.msra.mxu0 (!%p164_p2), %vm331_vm0, %v233_v0  ;;  %1113 = vmatpush3.msk.msra.mxu1 (!%p164_p2), %vm331_vm0, %v233_v0  ;;  %v1376_v35 = vld [vmem:[%s1668_s3] ss:$0 sm:$0xff] (!%p164_p2) }
   0xd   : > { %s1671_s19 = smov (!%p190_p3, %s956_s19), 63 }
   0xe   : > { %s957_s20 = sshll.u32 %s1671_s19, 3 }
   0xf   : > { %s1302_s23 = scalar_lea.vmem %s1665_s0, %s957_s20  ;;  %s1489_s30 = scalar_lea.vmem %s1669_s4, %s957_s20 }
  0x10   : > { %v201_v1 = vld [vmem:[%s1302_s23] sm:$0xff]  ;;  %v202_v3 = vld [vmem:[%s1302_s23 + $0x8] sm:$0xff]  ;;  %v203_v5 = vld [vmem:[%s1302_s23 + $0x10] sm:$0xff] }
  0x11   : > { %v217_v2 = vld [vmem:[%s1302_s23 + $0x80] sm:$0xff]  ;;  %1064 = vmatprep.mubr.msk.f32.mxu0 %vm234_vm1, %v201_v1  ;;  %v218_v4 = vld [vmem:[%s1302_s23 + $0x88] sm:$0xff]  ;;  %v219_v6 = vld [vmem:[%s1302_s23 + $0x90] sm:$0xff] }
  0x12   : > { %1088 = vmatprep.mubr.msk.f32.mxu1 %vm234_vm1, %v217_v2  ;;  %1065 = vmatmul.mubr.msk.f32.vlgmr.msra.gmra.mrb[0].mxu0 %vm234_vm1, %v202_v3  ;;  %v204_v7 = vld [vmem:[%s1302_s23 + $0x18] sm:$0xff]  ;;  %v205_v9 = vld [vmem:[%s1302_s23 + $0x20] sm:$0xff]  ;;  %v206_v11 = vld [vmem:[%s1302_s23 + $0x28] sm:$0xff] }
  0x13   : > { %1089 = vmatmul.mubr.msk.f32.vlgmr.msra.gmra.mrb[0].mxu1 %vm234_vm1, %v218_v4  ;;  %1067 = vmatprep.mubr.msk.f32.mxu0 %vm234_vm1, %v203_v5  ;;  %v220_v8 = vld [vmem:[%s1302_s23 + $0x98] sm:$0xff]  ;;  %v221_v10 = vld [vmem:[%s1302_s23 + $0xa0] sm:$0xff]  ;;  %v222_v12 = vld [vmem:[%s1302_s23 + $0xa8] sm:$0xff] }
  0x14   : > { %1091 = vmatprep.mubr.msk.f32.mxu1 %vm234_vm1, %v219_v6  ;;  %v207_v13 = vld [vmem:[%s1302_s23 + $0x30] sm:$0xff]  ;;  %v208_v15 = vld [vmem:[%s1302_s23 + $0x38] sm:$0xff]  ;;  %v209_v17 = vld [vmem:[%s1302_s23 + $0x40] sm:$0xff] }
  0x15   : > { %v223_v14 = vld [vmem:[%s1302_s23 + $0xb0] sm:$0xff]  ;;  %v224_v16 = vld [vmem:[%s1302_s23 + $0xb8] sm:$0xff]  ;;  %v225_v18 = vld [vmem:[%s1302_s23 + $0xc0] sm:$0xff] }
  0x16   : > { %1068 = vmatmul.mubr.msk.f32.gmra.mrb[2].mxu0 %vm234_vm1, %v204_v7  ;;  %v210_v19 = vld [vmem:[%s1302_s23 + $0x48] sm:$0xff]  ;;  %v211_v21 = vld [vmem:[%s1302_s23 + $0x50] sm:$0xff]  ;;  %v212_v23 = vld [vmem:[%s1302_s23 + $0x58] sm:$0xff] }
  0x17   : > { %1092 = vmatmul.mubr.msk.f32.gmra.mrb[2].mxu1 %vm234_vm1, %v220_v8  ;;  %1070 = vmatprep.mubr.msk.f32.mxu0 %vm234_vm1, %v205_v9  ;;  %v226_v20 = vld [vmem:[%s1302_s23 + $0xc8] sm:$0xff]  ;;  %v227_v22 = vld [vmem:[%s1302_s23 + $0xd0] sm:$0xff]  ;;  %v228_v24 = vld [vmem:[%s1302_s23 + $0xd8] sm:$0xff] }
  0x18   : > { %1094 = vmatprep.mubr.msk.f32.mxu1 %vm234_vm1, %v221_v10  ;;  %v213_v25 = vld [vmem:[%s1302_s23 + $0x60] sm:$0xff]  ;;  %v214_v27 = vld [vmem:[%s1302_s23 + $0x68] sm:$0xff]  ;;  %v215_v29 = vld [vmem:[%s1302_s23 + $0x70] sm:$0xff] }
  0x19   : > { %v229_v26 = vld [vmem:[%s1302_s23 + $0xe0] sm:$0xff]  ;;  %v230_v28 = vld [vmem:[%s1302_s23 + $0xe8] sm:$0xff]  ;;  %v231_v30 = vld [vmem:[%s1302_s23 + $0xf0] sm:$0xff] }
  0x1a   : > { %1071 = vmatmul.mubr.msk.f32.gmra.mrb[4].mxu0 %vm234_vm1, %v206_v11  ;;  %v216_v31 = vld [vmem:[%s1302_s23 + $0x78] sm:$0xff] }
  0x1b   : > { %1095 = vmatmul.mubr.msk.f32.gmra.mrb[4].mxu1 %vm234_vm1, %v222_v12  ;;  %1073 = vmatprep.mubr.msk.f32.mxu0 %vm234_vm1, %v207_v13  ;;  %v232_v32 = vld [vmem:[%s1302_s23 + $0xf8] sm:$0xff] }
  0x1c   : > { %1097 = vmatprep.mubr.msk.f32.mxu1 %vm234_vm1, %v223_v14 }
  0x1e   : > { %1074 = vmatmul.mubr.msk.f32.gmra.mrb[6].mxu0 %vm234_vm1, %v208_v15 }
  0x1f   : > { %1098 = vmatmul.mubr.msk.f32.gmra.mrb[6].mxu1 %vm234_vm1, %v224_v16  ;;  %1076 = vmatprep.mubr.msk.f32.mxu0 %vm234_vm1, %v209_v17 }
  0x20   : > { %1100 = vmatprep.mubr.msk.f32.mxu1 %vm234_vm1, %v225_v18 }
  0x22   : > { %1077 = vmatmul.mubr.msk.f32.gmra.mrb[8].mxu0 %vm234_vm1, %v210_v19 }
  0x23   : > { %1101 = vmatmul.mubr.msk.f32.gmra.mrb[8].mxu1 %vm234_vm1, %v226_v20  ;;  %1079 = vmatprep.mubr.msk.f32.mxu0 %vm234_vm1, %v211_v21 }
  0x24   : > { %1103 = vmatprep.mubr.msk.f32.mxu1 %vm234_vm1, %v227_v22 }
  0x26   : > { %1080 = vmatmul.mubr.msk.f32.gmra.mrb[10].mxu0 %vm234_vm1, %v212_v23 }
  0x27   : > { %1104 = vmatmul.mubr.msk.f32.gmra.mrb[10].mxu1 %vm234_vm1, %v228_v24  ;;  %1082 = vmatprep.mubr.msk.f32.mxu0 %vm234_vm1, %v213_v25 }
  0x28   : > { %1106 = vmatprep.mubr.msk.f32.mxu1 %vm234_vm1, %v229_v26 }
  0x2a   : > { %1083 = vmatmul.mubr.msk.f32.gmra.mrb[12].mxu0 %vm234_vm1, %v214_v27 }
  0x2b   : > { %1107 = vmatmul.mubr.msk.f32.gmra.mrb[12].mxu1 %vm234_vm1, %v230_v28  ;;  %1085 = vmatprep.mubr.msk.f32.mxu0 %vm234_vm1, %v215_v29 }
  0x2c   : > { %1109 = vmatprep.mubr.msk.f32.mxu1 %vm234_vm1, %v231_v30 }
  0x2e   : > { %1086 = vmatmul.mubr.msk.f32.gmra.mrb[14].mxu0 %vm234_vm1, %v216_v31 }
  0x2f   : > { %1110 = vmatmul.mubr.msk.f32.gmra.mrb[14].mxu1 %vm234_vm1, %v232_v32 }
  0xe5   : > { %v1066_v34 = vpop.f32.mrb[0].mxu0 }
  0xe6   : > { %v1090_v36 = vpop.f32.mrb[0].mxu1  ;;  %v568_v37 = vmul.f32 %v1066_v34, %v1371_v33  ;;  %v401_v39 = vpop.f32.mrb[1].mxu0 }
  0xe7   : > { %v584_v38 = vmul.f32 %v1090_v36, %v1371_v33  ;;  %v481_v40 = vpop.f32.mrb[1].mxu1  ;;  %v567_v41 = vmul.f32 %v1371_v33, %v401_v39 }
  0xe8   : > { %v583_v42 = vmul.f32 %v1371_v33, %v481_v40  ;;  %v1383_v43 = vadd.f32 %v1376_v35, %v568_v37 }
  0xe9   : > { %v1386_v44 = vadd.f32 %v1376_v35, %v584_v38  ;;  %v1389_v45 = vadd.f32 %v1376_v35, %v567_v41  ;;  %v1069_v47 = vpop.f32.mrb[2].mxu0 }
  0xea   : > { %v1392_v46 = vadd.f32 %v1376_v35, %v583_v42  ;;  %v1093_v48 = vpop.f32.mrb[2].mxu1  ;;  %v996_v49 = vmul.f32 -1.442695, %v1383_v43  ;;  %v570_v51 = vmul.f32 %v1069_v47, %v1371_v33  ;;  %v411_v53 = vpop.f32.mrb[3].mxu0 }
  0xeb   : > { %v1012_v50 = vmul.f32 -1.442695, %v1386_v44  ;;  %v586_v52 = vmul.f32 %v1093_v48, %v1371_v33  ;;  %v491_v54 = vpop.f32.mrb[3].mxu1  ;;  %v995_v55 = vmul.f32 -1.442695, %v1389_v45  ;;  %v569_v57 = vmul.f32 %v1371_v33, %v411_v53 }
  0xec   : > { %v1011_v56 = vmul.f32 -1.442695, %v1392_v46  ;;  %v585_v58 = vmul.f32 %v1371_v33, %v491_v54  ;;  %1122 = vpow2.f32 %v996_v49  ;;  %v1403_v59 = vadd.f32 %v1376_v35, %v570_v51 }
  0xed   : > { %v1406_v60 = vadd.f32 %v1376_v35, %v586_v52  ;;  %1124 = vpow2.f32 %v1012_v50  ;;  %v1409_v61 = vadd.f32 %v1376_v35, %v569_v57  ;;  %v1072_v63 = vpop.f32.mrb[4].mxu0 }
  0xee   : > { %v1412_v62 = vadd.f32 %v1376_v35, %v585_v58  ;;  %v1096_v0 = vpop.f32.mrb[4].mxu1  ;;  %1126 = vpow2.f32 %v995_v55  ;;  %v998_v1 = vmul.f32 -1.442695, %v1403_v59  ;;  %v572_v3 = vmul.f32 %v1072_v63, %v1371_v33  ;;  %v421_v4 = vpop.f32.mrb[5].mxu0 }
  0xef   : > { %v1014_v2 = vmul.f32 -1.442695, %v1406_v60  ;;  %v501_v5 = vpop.f32.mrb[5].mxu1  ;;  %1128 = vpow2.f32 %v1011_v56  ;;  %v997_v6 = vmul.f32 -1.442695, %v1409_v61  ;;  %v588_v8 = vmul.f32 %v1096_v0, %v1371_v33 }
  0xf0   : > { %v1013_v7 = vmul.f32 -1.442695, %v1412_v62  ;;  %1130 = vpow2.f32 %v998_v1  ;;  %v1421_v9 = vadd.f32 %v1376_v35, %v572_v3  ;;  %v571_v10 = vmul.f32 %v1371_v33, %v421_v4 }
  0xf1   : > { %v587_v11 = vmul.f32 %v1371_v33, %v501_v5  ;;  %1132 = vpow2.f32 %v1014_v2  ;;  %v1426_v12 = vadd.f32 %v1376_v35, %v588_v8  ;;  %v1075_v13 = vpop.f32.mrb[6].mxu0 }
  0xf2   : > { %v1099_v14 = vpop.f32.mrb[6].mxu1  ;;  %1134 = vpow2.f32 %v997_v6  ;;  %v1000_v15 = vmul.f32 -1.442695, %v1421_v9  ;;  %v1430_v16 = vadd.f32 %v1376_v35, %v571_v10  ;;  %v431_v18 = vpop.f32.mrb[7].mxu0  ;;  %v574_v23 = vmul.f32 %v1075_v13, %v1371_v33 }
  0xf3   : > { %v1433_v17 = vadd.f32 %v1376_v35, %v587_v11  ;;  %v511_v19 = vpop.f32.mrb[7].mxu1  ;;  %1136 = vpow2.f32 %v1013_v7  ;;  %v1016_v20 = vmul.f32 -1.442695, %v1426_v12  ;;  %v590_v27 = vmul.f32 %v1099_v14, %v1371_v33 }
  0xf4   : > { %1138 = vpow2.f32 %v1000_v15  ;;  %v999_v21 = vmul.f32 -1.442695, %v1430_v16  ;;  %v573_v36 = vmul.f32 %v1371_v33, %v431_v18  ;;  %v1442_v39 = vadd.f32 %v1376_v35, %v574_v23 }
  0xf5   : > { %v1015_v22 = vmul.f32 -1.442695, %v1433_v17  ;;  %1140 = vpow2.f32 %v1016_v20  ;;  %v1078_v24 = vpop.f32.mrb[8].mxu0  ;;  %v1445_v48 = vadd.f32 %v1376_v35, %v590_v27  ;;  %v589_v49 = vmul.f32 %v1371_v33, %v511_v19 }
  0xf6   : > { %v1102_v25 = vpop.f32.mrb[8].mxu1  ;;  %v1123_v26 = vpop.eup %1122  ;;  %1142 = vpow2.f32 %v999_v21  ;;  %v576_v53 = vmul.f32 %v1078_v24, %v1371_v33  ;;  %v1450_v57 = vadd.f32 %v1376_v35, %v573_v36  ;;  %v1002_v0 = vmul.f32 -1.442695, %v1442_v39 }
  0xf7   : > { %v441_v28 = vpop.f32.mrb[9].mxu0  ;;  %v521_v29 = vpop.f32.mrb[9].mxu1  ;;  %v735_v31 = vadd.f32 1.0, %v1123_v26  ;;  %1144 = vpow2.f32 %v1015_v22  ;;  %v592_v1 = vmul.f32 %v1102_v25, %v1371_v33  ;;  %v1018_v6 = vmul.f32 -1.442695, %v1445_v48 }
  0xf8   : > { %v1125_v30 = vpop.eup %1124  ;;  %v1458_v7 = vadd.f32 %v1376_v35, %v589_v49  ;;  %v1465_v14 = vadd.f32 %v1376_v35, %v576_v53  ;;  %v575_v15 = vmul.f32 %v1371_v33, %v441_v28  ;;  %v1001_v20 = vmul.f32 -1.442695, %v1450_v57 }
  0xf9   : > { %v1127_v32 = vpop.eup %1126  ;;  %v751_v34 = vadd.f32 1.0, %v1125_v30  ;;  %1146 = vrcp.f32 %v735_v31  ;;  %v1081_v40 = vpop.f32.mrb[10].mxu0  ;;  %v591_v21 = vmul.f32 %v1371_v33, %v521_v29  ;;  %v1471_v24 = vadd.f32 %v1376_v35, %v592_v1 }
  0xfa   : > { %v1129_v37 = vpop.eup %1128  ;;  %v734_v38 = vadd.f32 1.0, %v1127_v32  ;;  %v1105_v41 = vpop.f32.mrb[10].mxu1  ;;  %v578_v25 = vmul.f32 %v1081_v40, %v1371_v33  ;;  %v1017_v30 = vmul.f32 -1.442695, %v1458_v7  ;;  %v1004_v36 = vmul.f32 -1.442695, %v1465_v14 }
  0xfb   : > { %v1131_v42 = vpop.eup %1130  ;;  %1148 = vrcp.f32 %v751_v34  ;;  %v750_v47 = vadd.f32 1.0, %v1129_v37  ;;  %v451_v50 = vpop.f32.mrb[11].mxu0  ;;  %v594_v31 = vmul.f32 %v1105_v41, %v1371_v33  ;;  %v1493_v37 = vadd.f32 %v1376_v35, %v575_v15 }
  0xfc   : > { %v1133_v51 = vpop.eup %1132  ;;  %1150 = vrcp.f32 %v734_v38  ;;  %v737_v52 = vadd.f32 1.0, %v1131_v42  ;;  %v531_v54 = vpop.f32.mrb[11].mxu1  ;;  %v577_v38 = vmul.f32 %v1371_v33, %v451_v50  ;;  %v1498_v42 = vadd.f32 %v1376_v35, %v591_v21 }
  0xfd   : > { %v1135_v55 = vpop.eup %1134  ;;  %1152 = vrcp.f32 %v750_v47  ;;  %v753_v56 = vadd.f32 1.0, %v1133_v51  ;;  %v1084_v2 = vpop.f32.mrb[12].mxu0  ;;  %v593_v47 = vmul.f32 %v1371_v33, %v531_v54  ;;  %v1511_v54 = vadd.f32 %v1376_v35, %v594_v31 }
  0xfe   : > { %v1137_v58 = vpop.eup %1136  ;;  %1154 = vrcp.f32 %v737_v52  ;;  %v736_v63 = vadd.f32 1.0, %v1135_v55  ;;  %v1454_v3 = vpop.f32.mrb[12].mxu1  ;;  %v1503_v52 = vadd.f32 %v1376_v35, %v578_v25  ;;  %v580_v50 = vmul.f32 %v1084_v2, %v1371_v33 }
  0xff   : > { %v1139_v4 = vpop.eup %1138  ;;  %1156 = vrcp.f32 %v753_v56  ;;  %v752_v5 = vadd.f32 1.0, %v1137_v58  ;;  %v1460_v8 = vpop.f32.mrb[13].mxu0  ;;  %v1020_v55 = vmul.f32 -1.442695, %v1471_v24  ;;  %v1003_v58 = vmul.f32 -1.442695, %v1493_v37 }
 0x100   : > { %v1462_v10 = vpop.f32.mrb[13].mxu1  ;;  %v1141_v11 = vpop.eup %1140  ;;  %1158 = vrcp.f32 %v736_v63  ;;  %v739_v13 = vadd.f32 1.0, %v1139_v4  ;;  %v1518_v63 = vadd.f32 %v1376_v35, %v577_v38  ;;  %v1019_v1 = vmul.f32 -1.442695, %v1498_v42 }
 0x101   : > { %v1143_v18 = vpop.eup %1142  ;;  %1160 = vrcp.f32 %v752_v5  ;;  %v755_v19 = vadd.f32 1.0, %v1141_v11  ;;  %v1474_v26 = vpop.f32.mrb[14].mxu0  ;;  %v1525_v2 = vadd.f32 %v1376_v35, %v593_v47  ;;  %v1006_v5 = vmul.f32 -1.442695, %v1503_v52 }
 0x102   : > { %v1145_v22 = vpop.eup %1144  ;;  %1162 = vrcp.f32 %v739_v13  ;;  %v738_v23 = vadd.f32 1.0, %v1143_v18  ;;  %v1476_v27 = vpop.f32.mrb[14].mxu1  ;;  %v1022_v13 = vmul.f32 -1.442695, %v1511_v54  ;;  %v1005_v18 = vmul.f32 -1.442695, %v1518_v63 }
 0x103   : > { %1164 = vrcp.f32 %v755_v19  ;;  %v754_v28 = vadd.f32 1.0, %v1145_v22  ;;  %v1480_v32 = vpop.f32.mrb[15].mxu0  ;;  %v1482_v29 = vpop.f32.mrb[15].mxu1 }
 0x104   : > { %v1147_v34 = vpop.eup %1146  ;;  %1166 = vrcp.f32 %v738_v23 }
 0x105   : > { %v1149_v40 = vpop.eup %1148  ;;  %v831_v41 = vmul.f32 %v1147_v34, %v1383_v43  ;;  %1168 = vrcp.f32 %v754_v28 }
 0x106   : > { %v1151_v49 = vpop.eup %1150  ;;  %v847_v51 = vmul.f32 %v1149_v40, %v1386_v44  ;;  %1170 = vpow2.f32 %v1002_v0 }
 0x107   : > { %v1153_v53 = vpop.eup %1152  ;;  %864 = vst.msk [vmem:[%s1489_s30 + $0x8] sm:$0xff] %vm862_vm2, %v831_v41  ;;  %v830_v43 = vmul.f32 %v1151_v49, %v1389_v45  ;;  %1172 = vpow2.f32 %v1018_v6  ;;  %v1532_v6 = vadd.f32 %v1376_v35, %v580_v50  ;;  %v579_v49 = vmul.f32 %v1371_v33, %v1460_v8 }
 0x108   : > { %v1155_v44 = vpop.eup %1154  ;;  %880 = vst.msk [vmem:[%s1489_s30 + $0x88] sm:$0xff] %vm862_vm2, %v847_v51  ;;  %v846_v56 = vmul.f32 %v1153_v53, %v1392_v46  ;;  %1174 = vpow2.f32 %v1001_v20  ;;  %v595_v53 = vmul.f32 %v1371_v33, %v1462_v10  ;;  %v598_v8 = vmul.f32 %v1476_v27, %v1371_v33 }
 0x109   : > { %v1157_v45 = vpop.eup %1156  ;;  %863 = vst.msk [vmem:[%s1489_s30] sm:$0xff] %vm862_vm2, %v830_v43  ;;  %v833_v0 = vmul.f32 %v1155_v44, %v1403_v59  ;;  %1176 = vpow2.f32 %v1017_v30  ;;  %v582_v44 = vmul.f32 %v1474_v26, %v1371_v33  ;;  %v1574_v10 = vadd.f32 %v1376_v35, %v579_v49 }
 0x10a   : > { %v1159_v46 = vpop.eup %1158  ;;  %879 = vst.msk [vmem:[%s1489_s30 + $0x80] sm:$0xff] %vm862_vm2, %v846_v56  ;;  %v849_v4 = vmul.f32 %v1157_v45, %v1406_v60  ;;  %1178 = vpow2.f32 %v1004_v36 }
 0x10b   : > { %v1161_v59 = vpop.eup %1160  ;;  %866 = vst.msk [vmem:[%s1489_s30 + $0x18] sm:$0xff] %vm862_vm2, %v833_v0  ;;  %v832_v11 = vmul.f32 %v1159_v46, %v1409_v61  ;;  %1180 = vpow2.f32 %v1020_v55  ;;  %v1021_v61 = vmul.f32 -1.442695, %v1525_v2 }
 0x10c   : > { %v1163_v15 = vpop.eup %1162  ;;  %882 = vst.msk [vmem:[%s1489_s30 + $0x98] sm:$0xff] %vm862_vm2, %v849_v4  ;;  %v848_v60 = vmul.f32 %v1161_v59, %v1412_v62  ;;  %1182 = vpow2.f32 %v1003_v58  ;;  %v1008_v62 = vmul.f32 -1.442695, %v1532_v6  ;;  %v1579_v4 = vadd.f32 %v1376_v35, %v595_v53 }
 0x10d   : > { %v1165_v19 = vpop.eup %1164  ;;  %865 = vst.msk [vmem:[%s1489_s30 + $0x10] sm:$0xff] %vm862_vm2, %v832_v11  ;;  %v835_v20 = vmul.f32 %v1163_v15, %v1421_v9  ;;  %1184 = vpow2.f32 %v1019_v1  ;;  %v581_v1 = vmul.f32 %v1371_v33, %v1480_v32  ;;  %v1584_v11 = vadd.f32 %v1376_v35, %v582_v44 }
 0x10e   : > { %v1167_v21 = vpop.eup %1166  ;;  %881 = vst.msk [vmem:[%s1489_s30 + $0x90] sm:$0xff] %vm862_vm2, %v848_v60  ;;  %v851_v22 = vmul.f32 %v1165_v19, %v1426_v12  ;;  %1186 = vpow2.f32 %v1006_v5  ;;  %v597_v5 = vmul.f32 %v1371_v33, %v1482_v29  ;;  %v1588_v60 = vadd.f32 %v1376_v35, %v598_v8 }
 0x10f   : > { %v1169_v23 = vpop.eup %1168  ;;  %868 = vst.msk [vmem:[%s1489_s30 + $0x28] sm:$0xff] %vm862_vm2, %v835_v20  ;;  %v834_v25 = vmul.f32 %v1167_v21, %v1430_v16  ;;  %1188 = vpow2.f32 %v1022_v13  ;;  %v1592_v29 = vadd.f32 %v1376_v35, %v581_v1  ;;  %v1023_v21 = vmul.f32 -1.442695, %v1579_v4 }
 0x110   : > { %v1171_v9 = vpop.eup %1170  ;;  %884 = vst.msk [vmem:[%s1489_s30 + $0xa8] sm:$0xff] %vm862_vm2, %v851_v22  ;;  %v850_v28 = vmul.f32 %v1169_v23, %v1433_v17  ;;  %1190 = vpow2.f32 %v1005_v18  ;;  %v596_v17 = vmul.f32 %v1454_v3, %v1371_v33  ;;  %v1007_v33 = vmul.f32 -1.442695, %v1574_v10 }
 0x111   : > { %v1173_v30 = vpop.eup %1172  ;;  %867 = vst.msk [vmem:[%s1489_s30 + $0x20] sm:$0xff] %vm862_vm2, %v834_v25  ;;  %v741_v12 = vadd.f32 1.0, %v1171_v9  ;;  %1192 = vpow2.f32 %v1021_v61  ;;  %v1597_v22 = vadd.f32 %v1376_v35, %v597_v5  ;;  %v1010_v25 = vmul.f32 -1.442695, %v1584_v11 }
 0x112   : > { %v1175_v31 = vpop.eup %1174  ;;  %883 = vst.msk [vmem:[%s1489_s30 + $0xa0] sm:$0xff] %vm862_vm2, %v850_v28  ;;  %v757_v34 = vadd.f32 1.0, %v1173_v30  ;;  %1194 = vpow2.f32 %v1008_v62  ;;  %v1569_v58 = vadd.f32 %v1376_v35, %v596_v17 }
 0x113   : > { %v1177_v36 = vpop.eup %1176  ;;  %1196 = vrcp.f32 %v741_v12  ;;  %v740_v16 = vadd.f32 1.0, %v1175_v31 }
 0x114   : > { %v1179_v38 = vpop.eup %1178  ;;  %1198 = vrcp.f32 %v757_v34  ;;  %v756_v40 = vadd.f32 1.0, %v1177_v36  ;;  %v1024_v32 = vmul.f32 -1.442695, %v1569_v58 }
 0x115   : > { %v1181_v41 = vpop.eup %1180  ;;  %1200 = vrcp.f32 %v740_v16  ;;  %v743_v47 = vadd.f32 1.0, %v1179_v38 }
 0x116   : > { %v1183_v51 = vpop.eup %1182  ;;  %1202 = vrcp.f32 %v756_v40  ;;  %v759_v50 = vadd.f32 1.0, %v1181_v41 }
 0x117   : > { %v1185_v43 = vpop.eup %1184  ;;  %1204 = vrcp.f32 %v743_v47  ;;  %v742_v55 = vadd.f32 1.0, %v1183_v51 }
 0x118   : > { %v1187_v56 = vpop.eup %1186  ;;  %1206 = vrcp.f32 %v759_v50  ;;  %v758_v3 = vadd.f32 1.0, %v1185_v43 }
 0x119   : > { %v1189_v45 = vpop.eup %1188  ;;  %1208 = vrcp.f32 %v742_v55  ;;  %v745_v0 = vadd.f32 1.0, %v1187_v56 }
 0x11a   : > { %v1191_v46 = vpop.eup %1190  ;;  %1210 = vrcp.f32 %v758_v3  ;;  %v761_v26 = vadd.f32 1.0, %v1189_v45 }
 0x11b   : > { %v1193_v59 = vpop.eup %1192  ;;  %1212 = vrcp.f32 %v745_v0  ;;  %v744_v27 = vadd.f32 1.0, %v1191_v46 }
 0x11c   : > { %v1195_v13 = vpop.eup %1194  ;;  %1214 = vrcp.f32 %v761_v26  ;;  %v760_v15 = vadd.f32 1.0, %v1193_v59 }
 0x11d   : > { %v1197_v18 = vpop.eup %1196  ;;  %1216 = vrcp.f32 %v744_v27  ;;  %v747_v19 = vadd.f32 1.0, %v1195_v13 }
 0x11e   : > { %v1199_v20 = vpop.eup %1198  ;;  %v837_v61 = vmul.f32 %v1197_v18, %v1442_v39  ;;  %1218 = vrcp.f32 %v760_v15  ;;  %v1026_v39 = vmul.f32 -1.442695, %v1588_v60 }
 0x11f   : > { %v1201_v62 = vpop.eup %1200  ;;  %v853_v23 = vmul.f32 %v1199_v20, %v1445_v48  ;;  %1220 = vrcp.f32 %v747_v19  ;;  %v1009_v48 = vmul.f32 -1.442695, %v1592_v29 }
 0x120   : > { %v1203_v9 = vpop.eup %1202  ;;  %870 = vst.msk [vmem:[%s1489_s30 + $0x38] sm:$0xff] %vm862_vm2, %v837_v61  ;;  %v836_v28 = vmul.f32 %v1201_v62, %v1450_v57  ;;  %1222 = vpow2.f32 %v1024_v32  ;;  %v1025_v57 = vmul.f32 -1.442695, %v1597_v22 }
 0x121   : > { %v1205_v30 = vpop.eup %1204  ;;  %886 = vst.msk [vmem:[%s1489_s30 + $0xb8] sm:$0xff] %vm862_vm2, %v853_v23  ;;  %v852_v35 = vmul.f32 %v1203_v9, %v1458_v7  ;;  %1224 = vpow2.f32 %v1007_v33 }
 0x122   : > { %v1207_v12 = vpop.eup %1206  ;;  %869 = vst.msk [vmem:[%s1489_s30 + $0x30] sm:$0xff] %vm862_vm2, %v836_v28  ;;  %v839_v31 = vmul.f32 %v1205_v30, %v1465_v14  ;;  %1226 = vpow2.f32 %v1023_v21 }
 0x123   : > { %v1209_v34 = vpop.eup %1208  ;;  %885 = vst.msk [vmem:[%s1489_s30 + $0xb0] sm:$0xff] %vm862_vm2, %v852_v35  ;;  %v855_v36 = vmul.f32 %v1207_v12, %v1471_v24  ;;  %1228 = vpow2.f32 %v1010_v25 }
 0x124   : > { %v1211_v7 = vpop.eup %1210  ;;  %872 = vst.msk [vmem:[%s1489_s30 + $0x48] sm:$0xff] %vm862_vm2, %v839_v31  ;;  %v838_v16 = vmul.f32 %v1209_v34, %v1493_v37  ;;  %1230 = vpow2.f32 %v1026_v39 }
 0x125   : > { %v1213_v14 = vpop.eup %1212  ;;  %888 = vst.msk [vmem:[%s1489_s30 + $0xc8] sm:$0xff] %vm862_vm2, %v855_v36  ;;  %v854_v38 = vmul.f32 %v1211_v7, %v1498_v42  ;;  %1232 = vpow2.f32 %v1009_v48 }
 0x126   : > { %v1215_v40 = vpop.eup %1214  ;;  %871 = vst.msk [vmem:[%s1489_s30 + $0x40] sm:$0xff] %vm862_vm2, %v838_v16  ;;  %v841_v24 = vmul.f32 %v1213_v14, %v1503_v52  ;;  %1234 = vpow2.f32 %v1025_v57 }
 0x127   : > { %v1217_v17 = vpop.eup %1216  ;;  %887 = vst.msk [vmem:[%s1489_s30 + $0xc0] sm:$0xff] %vm862_vm2, %v854_v38  ;;  %v857_v37 = vmul.f32 %v1215_v40, %v1511_v54 }
 0x128   : > { %v1219_v41 = vpop.eup %1218  ;;  %874 = vst.msk [vmem:[%s1489_s30 + $0x58] sm:$0xff] %vm862_vm2, %v841_v24  ;;  %v840_v42 = vmul.f32 %v1217_v17, %v1518_v63 }
 0x129   : > { %v1221_v47 = vpop.eup %1220  ;;  %890 = vst.msk [vmem:[%s1489_s30 + $0xd8] sm:$0xff] %vm862_vm2, %v857_v37  ;;  %v856_v49 = vmul.f32 %v1219_v41, %v1525_v2 }
 0x12a   : > { %v1223_v51 = vpop.eup %1222  ;;  %873 = vst.msk [vmem:[%s1489_s30 + $0x50] sm:$0xff] %vm862_vm2, %v840_v42  ;;  %v843_v52 = vmul.f32 %v1221_v47, %v1532_v6 }
 0x12b   : > { %v1225_v50 = vpop.eup %1224  ;;  %889 = vst.msk [vmem:[%s1489_s30 + $0xd0] sm:$0xff] %vm862_vm2, %v856_v49  ;;  %v763_v53 = vadd.f32 1.0, %v1223_v51 }
 0x12c   : > { %v1227_v54 = vpop.eup %1226  ;;  %876 = vst.msk [vmem:[%s1489_s30 + $0x68] sm:$0xff] %vm862_vm2, %v843_v52  ;;  %v746_v43 = vadd.f32 1.0, %v1225_v50 }
 0x12d   : > { %v1229_v55 = vpop.eup %1228  ;;  %1236 = vrcp.f32 %v763_v53  ;;  %v762_v63 = vadd.f32 1.0, %v1227_v54 }
 0x12e   : > { %v1231_v44 = vpop.eup %1230  ;;  %1238 = vrcp.f32 %v746_v43  ;;  %v749_v56 = vadd.f32 1.0, %v1229_v55 }
 0x12f   : > { %v1233_v2 = vpop.eup %1232  ;;  %1240 = vrcp.f32 %v762_v63  ;;  %v765_v3 = vadd.f32 1.0, %v1231_v44 }
 0x130   : > { %v1235_v8 = vpop.eup %1234  ;;  %1242 = vrcp.f32 %v749_v56  ;;  %v748_v6 = vadd.f32 1.0, %v1233_v2 }
 0x131   : > { %1244 = vrcp.f32 %v765_v3  ;;  %v764_v45 = vadd.f32 1.0, %v1235_v8 }
 0x132   : > { %1246 = vrcp.f32 %v748_v6 }
 0x133   : > { %1248 = vrcp.f32 %v764_v45 }
 0x137   : > { %v1237_v0 = vpop.eup %1236 }
 0x138   : > { %v1239_v1 = vpop.eup %1238  ;;  %v859_v46 = vmul.f32 %v1237_v0, %v1569_v58 }
 0x139   : > { %v1241_v26 = vpop.eup %1240  ;;  %v842_v5 = vmul.f32 %v1239_v1, %v1574_v10 }
 0x13a   : > { %v1243_v59 = vpop.eup %1242  ;;  %892 = vst.msk [vmem:[%s1489_s30 + $0xe8] sm:$0xff] %vm862_vm2, %v859_v46  ;;  %v858_v27 = vmul.f32 %v1241_v26, %v1579_v4 }
 0x13b   : > { %v1245_v13 = vpop.eup %1244  ;;  %875 = vst.msk [vmem:[%s1489_s30 + $0x60] sm:$0xff] %vm862_vm2, %v842_v5  ;;  %v845_v15 = vmul.f32 %v1243_v59, %v1584_v11 }
 0x13c   : > { %v1247_v32 = vpop.eup %1246  ;;  %891 = vst.msk [vmem:[%s1489_s30 + $0xe0] sm:$0xff] %vm862_vm2, %v858_v27  ;;  %v861_v58 = vmul.f32 %v1245_v13, %v1588_v60 }
 0x13d   : > { %v1249_v18 = vpop.eup %1248  ;;  %878 = vst.msk [vmem:[%s1489_s30 + $0x78] sm:$0xff] %vm862_vm2, %v845_v15  ;;  %v844_v10 = vmul.f32 %v1247_v32, %v1592_v29 }
 0x13e   : > { %894 = vst.msk [vmem:[%s1489_s30 + $0xf8] sm:$0xff] %vm862_vm2, %v861_v58  ;;  %v860_v19 = vmul.f32 %v1249_v18, %v1597_v22 }
 0x13f   : > { %877 = vst.msk [vmem:[%s1489_s30 + $0x70] sm:$0xff] %vm862_vm2, %v844_v10 }
 0x140   : > { %893 = vst.msk [vmem:[%s1489_s30 + $0xf0] sm:$0xff] %vm862_vm2, %v860_v19 }
 0x141 PF: > { %s14_s15 = sadd.s32 1, %s1256_s15  }
 0x142   : > { %p11_p4 = scmp.ge.s32.totalorder %s14_s15, 4  }
 0x144   :  { %13 = sbr.rel (!%p11_p4) target bundleno = 1 (0x1), region = 66 }

// kernel: sppf_bottleneck.5
= control target key start
LH: loop header
LB: loop body
LE: loop exit
PB: predicated region body
PF: predicated region fallthrough
CT: control target
= control target key end

     0   :  { %s3160_s13 = smov 0   ;;  %s3745_s0 = inlined_call_operand.vmem [shape: f32[512,2], index: 0, kind: input, shape index: {}]   ;;  %s3746_s1 = inlined_call_operand.vmem [shape: f32[512,2], index: 1, kind: input, shape index: {}]   ;;  %s3747_s2 = inlined_call_operand.vmem [shape: f32[512,2], index: 2, kind: input, shape index: {}]   ;;  %s3748_s3 = inlined_call_operand.vmem [shape: f32[512,2], index: 3, kind: input, shape index: {}]   ;;  %s3749_s4 = inlined_call_operand.vmem [shape: f32[2,8], index: 4, kind: input, shape index: {}]   ;;  %s3750_s5 = inlined_call_operand.vmem [shape: f32[2,8], index: 5, kind: input, shape index: {}]   ;;  %s3751_s6 = inlined_call_operand.vmem [shape: f32[2,8], index: 6, kind: input, shape index: {}]   ;;  %s3752_s7 = inlined_call_operand.vmem [shape: f32[2,8], index: 7, kind: input, shape index: {}]   ;;  %s3753_s8 = inlined_call_operand.vmem [shape: f32[1,8], index: 8, kind: input, shape index: {}]   ;;  %s3754_s9 = inlined_call_operand.vmem [shape: f32[1,8], index: 9, kind: input, shape index: {}]   ;;  %s3755_s10 = inlined_call_operand.vmem [shape: f32[512,8], index: 10, kind: output, shape index: {}]  }
   0x1 LB: > { %s2350_s14 = sadd.s32 4294967295, %s3103_s13   ;;  %p2354_p0 = scmp.ge.s32.totalorder %s3103_s13, 1  ;;  %s3103_s13 = sphi %s3160_s13, %s20_s13  }
   0x2   : > { %p346_p1 = scmp.lt.s32.totalorder %s3103_s13, 3 }
   0x4   : > { %p347_p2 = pnand %p2354_p0, %p346_p1 }
   0x5   : > { %v494_v0 = vld [vmem:[%s3750_s5] sm:$0x3] (!%p347_p2)  ;;  %vm592_vm0 = vcmask (!%p347_p2), 1041408   ;;  %s2355_s19 = sshll.u32 (!%p347_p2), %s2350_s14, 5  ;;  %vm495_vm1 = vcmask (!%p347_p2), 15360   ;;  %vm2225_vm2 = vcmask (!%p347_p2), 64512  }
   0x6   : > { %350 = sbr.rel (%p347_p2) target bundleno = 395 (0x18b), region = 60  ;;  %v1177_v1 = vld [vmem:[%s3751_s6] sm:$0x3] (!%p347_p2)  ;;  %2665 = vmatprep.subr.msk.mxu1 (!%p347_p2), %vm592_vm0, %v494_v0  ;;  %p400_p3 = scmp.lt.s32.totalorder (!%p347_p2), %s2355_s19, 63 }
   0x7   : > { %2765 = vmatprep.subr.msk.mxu0 (!%p347_p2), %vm592_vm0, %v1177_v1  ;;  %v461_v2 = vld [vmem:[%s3749_s4] sm:$0x3] (!%p347_p2)  ;;  %2666 = vmatpush3.msk.msra.mxu1 (!%p347_p2), %vm592_vm0, %v494_v0 }
   0x8   : > { %v1566_v3 = vld [vmem:[%s3752_s7] sm:$0x3] (!%p347_p2)  ;;  %2766 = vmatpush3.msk.msra.mxu0 (!%p347_p2), %vm592_vm0, %v1177_v1  ;;  %2715 = vmatprep.subr.msk.mxu1 (!%p347_p2), %vm592_vm0, %v461_v2 }
   0x9   : > { %2815 = vmatprep.subr.msk.mxu0 (!%p347_p2), %vm592_vm0, %v1566_v3 }
   0xd   : > { %s3757_s19 = smov (!%p400_p3, %s2355_s19), 63 }
   0xe   : > { %s3186_s24 = sshll.u32 %s3757_s19, 3 }
   0xf   : > { %s3192_s27 = scalar_lea.vmem %s3746_s1, %s3186_s24  ;;  %s3198_s30 = scalar_lea.vmem %s3747_s2, %s3186_s24 }
  0x10   : > { %v462_v4 = vld [vmem:[%s3192_s27] sm:$0xff]  ;;  %v463_v6 = vld [vmem:[%s3192_s27 + $0x8] sm:$0xff]  ;;  %v464_v8 = vld [vmem:[%s3192_s27 + $0x10] sm:$0xff]  ;;  %s3326_s14 = scalar_lea.vmem %s3745_s0, %s3186_s24  ;;  %s3332_s17 = scalar_lea.vmem %s3748_s3, %s3186_s24 }
  0x11   : > { %v1145_v5 = vld [vmem:[%s3198_s30] sm:$0xff]  ;;  %2667 = vmatprep.mubr.msk.f32.mxu1 %vm495_vm1, %v462_v4  ;;  %v1146_v7 = vld [vmem:[%s3198_s30 + $0x8] sm:$0xff]  ;;  %v1147_v9 = vld [vmem:[%s3198_s30 + $0x10] sm:$0xff]  ;;  %s3554_s25 = scalar_lea.vmem %s3755_s10, %s3186_s24 }
  0x12   : > { %2767 = vmatprep.mubr.msk.f32.mxu0 %vm495_vm1, %v1145_v5  ;;  %2668 = vmatmul.mubr.msk.f32.vlgmr.msra.gmra.mrb[0].mxu1 %vm495_vm1, %v463_v6  ;;  %v465_v10 = vld [vmem:[%s3192_s27 + $0x18] sm:$0xff]  ;;  %v466_v12 = vld [vmem:[%s3192_s27 + $0x20] sm:$0xff]  ;;  %v467_v14 = vld [vmem:[%s3192_s27 + $0x28] sm:$0xff] }
  0x13   : > { %2768 = vmatmul.mubr.msk.f32.vlgmr.msra.gmra.mrb[0].mxu0 %vm495_vm1, %v1146_v7  ;;  %2716 = vmatpush3.msk.msra.mxu1 %vm592_vm0, %v461_v2  ;;  %v1148_v11 = vld [vmem:[%s3198_s30 + $0x18] sm:$0xff]  ;;  %v1149_v13 = vld [vmem:[%s3198_s30 + $0x20] sm:$0xff]  ;;  %v1150_v15 = vld [vmem:[%s3198_s30 + $0x28] sm:$0xff] }
  0x14   : > { %2816 = vmatpush3.msk.msra.mxu0 %vm592_vm0, %v1566_v3  ;;  %2670 = vmatprep.mubr.msk.f32.mxu1 %vm495_vm1, %v464_v8  ;;  %v468_v16 = vld [vmem:[%s3192_s27 + $0x30] sm:$0xff]  ;;  %v469_v18 = vld [vmem:[%s3192_s27 + $0x38] sm:$0xff]  ;;  %v470_v20 = vld [vmem:[%s3192_s27 + $0x40] sm:$0xff] }
  0x15   : > { %2770 = vmatprep.mubr.msk.f32.mxu0 %vm495_vm1, %v1147_v9  ;;  %v1151_v17 = vld [vmem:[%s3198_s30 + $0x30] sm:$0xff]  ;;  %v1152_v19 = vld [vmem:[%s3198_s30 + $0x38] sm:$0xff]  ;;  %v1153_v21 = vld [vmem:[%s3198_s30 + $0x40] sm:$0xff] }
  0x16   : > { %2671 = vmatmul.mubr.msk.f32.gmra.mrb[2].mxu1 %vm495_vm1, %v465_v10  ;;  %v471_v22 = vld [vmem:[%s3192_s27 + $0x48] sm:$0xff]  ;;  %v472_v24 = vld [vmem:[%s3192_s27 + $0x50] sm:$0xff]  ;;  %v473_v26 = vld [vmem:[%s3192_s27 + $0x58] sm:$0xff] }
  0x17   : > { %2771 = vmatmul.mubr.msk.f32.gmra.mrb[2].mxu0 %vm495_vm1, %v1148_v11  ;;  %2673 = vmatprep.mubr.msk.f32.mxu1 %vm495_vm1, %v466_v12  ;;  %v1154_v23 = vld [vmem:[%s3198_s30 + $0x48] sm:$0xff]  ;;  %v1155_v25 = vld [vmem:[%s3198_s30 + $0x50] sm:$0xff]  ;;  %v1156_v27 = vld [vmem:[%s3198_s30 + $0x58] sm:$0xff] }
  0x18   : > { %2773 = vmatprep.mubr.msk.f32.mxu0 %vm495_vm1, %v1149_v13  ;;  %v474_v28 = vld [vmem:[%s3192_s27 + $0x60] sm:$0xff]  ;;  %v475_v30 = vld [vmem:[%s3192_s27 + $0x68] sm:$0xff]  ;;  %v476_v32 = vld [vmem:[%s3192_s27 + $0x70] sm:$0xff] }
  0x19   : > { %v1157_v29 = vld [vmem:[%s3198_s30 + $0x60] sm:$0xff]  ;;  %v1158_v31 = vld [vmem:[%s3198_s30 + $0x68] sm:$0xff]  ;;  %v1159_v33 = vld [vmem:[%s3198_s30 + $0x70] sm:$0xff] }
  0x1a   : > { %2674 = vmatmul.mubr.msk.f32.gmra.mrb[4].mxu1 %vm495_vm1, %v467_v14  ;;  %v477_v34 = vld [vmem:[%s3192_s27 + $0x78] sm:$0xff]  ;;  %v478_v36 = vld [vmem:[%s3192_s27 + $0x80] sm:$0xff]  ;;  %v479_v38 = vld [vmem:[%s3192_s27 + $0x88] sm:$0xff] }
  0x1b   : > { %2774 = vmatmul.mubr.msk.f32.gmra.mrb[4].mxu0 %vm495_vm1, %v1150_v15  ;;  %2676 = vmatprep.mubr.msk.f32.mxu1 %vm495_vm1, %v468_v16  ;;  %v1160_v35 = vld [vmem:[%s3198_s30 + $0x78] sm:$0xff]  ;;  %v1161_v37 = vld [vmem:[%s3198_s30 + $0x80] sm:$0xff]  ;;  %v1162_v39 = vld [vmem:[%s3198_s30 + $0x88] sm:$0xff] }
  0x1c   : > { %2776 = vmatprep.mubr.msk.f32.mxu0 %vm495_vm1, %v1151_v17  ;;  %v480_v40 = vld [vmem:[%s3192_s27 + $0x90] sm:$0xff]  ;;  %v481_v42 = vld [vmem:[%s3192_s27 + $0x98] sm:$0xff]  ;;  %v482_v44 = vld [vmem:[%s3192_s27 + $0xa0] sm:$0xff] }
  0x1d   : > { %v1163_v41 = vld [vmem:[%s3198_s30 + $0x90] sm:$0xff]  ;;  %v1164_v43 = vld [vmem:[%s3198_s30 + $0x98] sm:$0xff]  ;;  %v1165_v45 = vld [vmem:[%s3198_s30 + $0xa0] sm:$0xff] }
  0x1e   : > { %2677 = vmatmul.mubr.msk.f32.gmra.mrb[6].mxu1 %vm495_vm1, %v469_v18  ;;  %v483_v46 = vld [vmem:[%s3192_s27 + $0xa8] sm:$0xff]  ;;  %v484_v48 = vld [vmem:[%s3192_s27 + $0xb0] sm:$0xff]  ;;  %v485_v50 = vld [vmem:[%s3192_s27 + $0xb8] sm:$0xff] }
  0x1f   : > { %2777 = vmatmul.mubr.msk.f32.gmra.mrb[6].mxu0 %vm495_vm1, %v1152_v19  ;;  %2679 = vmatprep.mubr.msk.f32.mxu1 %vm495_vm1, %v470_v20  ;;  %v1166_v47 = vld [vmem:[%s3198_s30 + $0xa8] sm:$0xff]  ;;  %v1167_v49 = vld [vmem:[%s3198_s30 + $0xb0] sm:$0xff]  ;;  %v1168_v51 = vld [vmem:[%s3198_s30 + $0xb8] sm:$0xff] }
  0x20   : > { %2779 = vmatprep.mubr.msk.f32.mxu0 %vm495_vm1, %v1153_v21  ;;  %v486_v52 = vld [vmem:[%s3192_s27 + $0xc0] sm:$0xff]  ;;  %v487_v54 = vld [vmem:[%s3192_s27 + $0xc8] sm:$0xff]  ;;  %v488_v56 = vld [vmem:[%s3192_s27 + $0xd0] sm:$0xff] }
  0x21   : > { %v1169_v53 = vld [vmem:[%s3198_s30 + $0xc0] sm:$0xff]  ;;  %v1170_v55 = vld [vmem:[%s3198_s30 + $0xc8] sm:$0xff]  ;;  %v1171_v57 = vld [vmem:[%s3198_s30 + $0xd0] sm:$0xff] }
  0x22   : > { %2680 = vmatmul.mubr.msk.f32.gmra.mrb[8].mxu1 %vm495_vm1, %v471_v22  ;;  %v489_v58 = vld [vmem:[%s3192_s27 + $0xd8] sm:$0xff]  ;;  %v490_v60 = vld [vmem:[%s3192_s27 + $0xe0] sm:$0xff]  ;;  %v491_v62 = vld [vmem:[%s3192_s27 + $0xe8] sm:$0xff] }
  0x23   : > { %2780 = vmatmul.mubr.msk.f32.gmra.mrb[8].mxu0 %vm495_vm1, %v1154_v23  ;;  %2682 = vmatprep.mubr.msk.f32.mxu1 %vm495_vm1, %v472_v24  ;;  %v1172_v59 = vld [vmem:[%s3198_s30 + $0xd8] sm:$0xff]  ;;  %v1173_v61 = vld [vmem:[%s3198_s30 + $0xe0] sm:$0xff]  ;;  %v1174_v63 = vld [vmem:[%s3198_s30 + $0xe8] sm:$0xff] }
  0x24   : > { %2782 = vmatprep.mubr.msk.f32.mxu0 %vm495_vm1, %v1155_v25  ;;  %v492_v0 = vld [vmem:[%s3192_s27 + $0xf0] sm:$0xff]  ;;  %v493_v2 = vld [vmem:[%s3192_s27 + $0xf8] sm:$0xff]  ;;  %v429_v4 = vld [vmem:[%s3326_s14] sm:$0xff] }
  0x25   : > { %v1175_v1 = vld [vmem:[%s3198_s30 + $0xf0] sm:$0xff]  ;;  %v1176_v3 = vld [vmem:[%s3198_s30 + $0xf8] sm:$0xff]  ;;  %v1534_v5 = vld [vmem:[%s3332_s17] sm:$0xff] }
  0x26   : > { %2683 = vmatmul.mubr.msk.f32.gmra.mrb[10].mxu1 %vm495_vm1, %v473_v26  ;;  %v430_v6 = vld [vmem:[%s3326_s14 + $0x8] sm:$0xff]  ;;  %v431_v8 = vld [vmem:[%s3326_s14 + $0x10] sm:$0xff]  ;;  %v432_v10 = vld [vmem:[%s3326_s14 + $0x18] sm:$0xff] }
  0x27   : > { %2783 = vmatmul.mubr.msk.f32.gmra.mrb[10].mxu0 %vm495_vm1, %v1156_v27  ;;  %2685 = vmatprep.mubr.msk.f32.mxu1 %vm495_vm1, %v474_v28  ;;  %v1535_v7 = vld [vmem:[%s3332_s17 + $0x8] sm:$0xff]  ;;  %v1536_v9 = vld [vmem:[%s3332_s17 + $0x10] sm:$0xff]  ;;  %v1537_v11 = vld [vmem:[%s3332_s17 + $0x18] sm:$0xff] }
  0x28   : > { %2785 = vmatprep.mubr.msk.f32.mxu0 %vm495_vm1, %v1157_v29  ;;  %v433_v12 = vld [vmem:[%s3326_s14 + $0x20] sm:$0xff]  ;;  %v434_v14 = vld [vmem:[%s3326_s14 + $0x28] sm:$0xff]  ;;  %v435_v16 = vld [vmem:[%s3326_s14 + $0x30] sm:$0xff] }
  0x29   : > { %v1538_v13 = vld [vmem:[%s3332_s17 + $0x20] sm:$0xff]  ;;  %v1539_v15 = vld [vmem:[%s3332_s17 + $0x28] sm:$0xff]  ;;  %v1540_v17 = vld [vmem:[%s3332_s17 + $0x30] sm:$0xff] }
  0x2a   : > { %2686 = vmatmul.mubr.msk.f32.gmra.mrb[12].mxu1 %vm495_vm1, %v475_v30  ;;  %v436_v18 = vld [vmem:[%s3326_s14 + $0x38] sm:$0xff]  ;;  %v437_v20 = vld [vmem:[%s3326_s14 + $0x40] sm:$0xff]  ;;  %v438_v22 = vld [vmem:[%s3326_s14 + $0x48] sm:$0xff] }
  0x2b   : > { %2786 = vmatmul.mubr.msk.f32.gmra.mrb[12].mxu0 %vm495_vm1, %v1158_v31  ;;  %2688 = vmatprep.mubr.msk.f32.mxu1 %vm495_vm1, %v476_v32  ;;  %v1541_v19 = vld [vmem:[%s3332_s17 + $0x38] sm:$0xff]  ;;  %v1542_v21 = vld [vmem:[%s3332_s17 + $0x40] sm:$0xff]  ;;  %v1543_v23 = vld [vmem:[%s3332_s17 + $0x48] sm:$0xff] }
  0x2c   : > { %2788 = vmatprep.mubr.msk.f32.mxu0 %vm495_vm1, %v1159_v33  ;;  %v439_v24 = vld [vmem:[%s3326_s14 + $0x50] sm:$0xff]  ;;  %v440_v26 = vld [vmem:[%s3326_s14 + $0x58] sm:$0xff]  ;;  %v441_v28 = vld [vmem:[%s3326_s14 + $0x60] sm:$0xff] }
  0x2d   : > { %v1544_v25 = vld [vmem:[%s3332_s17 + $0x50] sm:$0xff]  ;;  %v1545_v27 = vld [vmem:[%s3332_s17 + $0x58] sm:$0xff]  ;;  %v1546_v29 = vld [vmem:[%s3332_s17 + $0x60] sm:$0xff] }
  0x2e   : > { %2689 = vmatmul.mubr.msk.f32.gmra.mrb[14].mxu1 %vm495_vm1, %v477_v34  ;;  %v442_v30 = vld [vmem:[%s3326_s14 + $0x68] sm:$0xff]  ;;  %v443_v32 = vld [vmem:[%s3326_s14 + $0x70] sm:$0xff]  ;;  %v444_v34 = vld [vmem:[%s3326_s14 + $0x78] sm:$0xff] }
  0x2f   : > { %2789 = vmatmul.mubr.msk.f32.gmra.mrb[14].mxu0 %vm495_vm1, %v1160_v35  ;;  %2691 = vmatprep.mubr.msk.f32.mxu1 %vm495_vm1, %v478_v36  ;;  %v1547_v31 = vld [vmem:[%s3332_s17 + $0x68] sm:$0xff]  ;;  %v1548_v33 = vld [vmem:[%s3332_s17 + $0x70] sm:$0xff]  ;;  %v1549_v35 = vld [vmem:[%s3332_s17 + $0x78] sm:$0xff] }
  0x30   : > { %2791 = vmatprep.mubr.msk.f32.mxu0 %vm495_vm1, %v1161_v37  ;;  %v445_v36 = vld [vmem:[%s3326_s14 + $0x80] sm:$0xff] }
  0x31   : > { %v1550_v37 = vld [vmem:[%s3332_s17 + $0x80] sm:$0xff] }
  0x32   : > { %2692 = vmatmul.mubr.msk.f32.gmra.mrb[16].mxu1 %vm495_vm1, %v479_v38  ;;  %v446_v38 = vld [vmem:[%s3326_s14 + $0x88] sm:$0xff] }
  0x33   : > { %2792 = vmatmul.mubr.msk.f32.gmra.mrb[16].mxu0 %vm495_vm1, %v1162_v39  ;;  %2694 = vmatprep.mubr.msk.f32.mxu1 %vm495_vm1, %v480_v40  ;;  %v1551_v39 = vld [vmem:[%s3332_s17 + $0x88] sm:$0xff]  ;;  %v447_v40 = vld [vmem:[%s3326_s14 + $0x90] sm:$0xff] }
  0x34   : > { %2794 = vmatprep.mubr.msk.f32.mxu0 %vm495_vm1, %v1163_v41  ;;  %v1552_v41 = vld [vmem:[%s3332_s17 + $0x90] sm:$0xff] }
  0x36   : > { %2695 = vmatmul.mubr.msk.f32.gmra.mrb[18].mxu1 %vm495_vm1, %v481_v42  ;;  %v448_v42 = vld [vmem:[%s3326_s14 + $0x98] sm:$0xff] }
  0x37   : > { %2795 = vmatmul.mubr.msk.f32.gmra.mrb[18].mxu0 %vm495_vm1, %v1164_v43  ;;  %2697 = vmatprep.mubr.msk.f32.mxu1 %vm495_vm1, %v482_v44  ;;  %v1553_v43 = vld [vmem:[%s3332_s17 + $0x98] sm:$0xff]  ;;  %v449_v44 = vld [vmem:[%s3326_s14 + $0xa0] sm:$0xff] }
  0x38   : > { %2797 = vmatprep.mubr.msk.f32.mxu0 %vm495_vm1, %v1165_v45  ;;  %v1554_v45 = vld [vmem:[%s3332_s17 + $0xa0] sm:$0xff] }
  0x3a   : > { %2698 = vmatmul.mubr.msk.f32.gmra.mrb[20].mxu1 %vm495_vm1, %v483_v46  ;;  %v450_v46 = vld [vmem:[%s3326_s14 + $0xa8] sm:$0xff] }
  0x3b   : > { %2798 = vmatmul.mubr.msk.f32.gmra.mrb[20].mxu0 %vm495_vm1, %v1166_v47  ;;  %2700 = vmatprep.mubr.msk.f32.mxu1 %vm495_vm1, %v484_v48  ;;  %v1555_v47 = vld [vmem:[%s3332_s17 + $0xa8] sm:$0xff]  ;;  %v451_v48 = vld [vmem:[%s3326_s14 + $0xb0] sm:$0xff] }
  0x3c   : > { %2800 = vmatprep.mubr.msk.f32.mxu0 %vm495_vm1, %v1167_v49  ;;  %v1556_v49 = vld [vmem:[%s3332_s17 + $0xb0] sm:$0xff] }
  0x3e   : > { %2701 = vmatmul.mubr.msk.f32.gmra.mrb[22].mxu1 %vm495_vm1, %v485_v50  ;;  %v452_v50 = vld [vmem:[%s3326_s14 + $0xb8] sm:$0xff] }
  0x3f   : > { %2801 = vmatmul.mubr.msk.f32.gmra.mrb[22].mxu0 %vm495_vm1, %v1168_v51  ;;  %2703 = vmatprep.mubr.msk.f32.mxu1 %vm495_vm1, %v486_v52  ;;  %v1557_v51 = vld [vmem:[%s3332_s17 + $0xb8] sm:$0xff]  ;;  %v453_v52 = vld [vmem:[%s3326_s14 + $0xc0] sm:$0xff] }
  0x40   : > { %2803 = vmatprep.mubr.msk.f32.mxu0 %vm495_vm1, %v1169_v53  ;;  %v1558_v53 = vld [vmem:[%s3332_s17 + $0xc0] sm:$0xff] }
  0x42   : > { %2704 = vmatmul.mubr.msk.f32.gmra.mrb[24].mxu1 %vm495_vm1, %v487_v54  ;;  %v454_v54 = vld [vmem:[%s3326_s14 + $0xc8] sm:$0xff] }
  0x43   : > { %2804 = vmatmul.mubr.msk.f32.gmra.mrb[24].mxu0 %vm495_vm1, %v1170_v55  ;;  %2706 = vmatprep.mubr.msk.f32.mxu1 %vm495_vm1, %v488_v56  ;;  %v1559_v55 = vld [vmem:[%s3332_s17 + $0xc8] sm:$0xff]  ;;  %v455_v56 = vld [vmem:[%s3326_s14 + $0xd0] sm:$0xff] }
  0x44   : > { %2806 = vmatprep.mubr.msk.f32.mxu0 %vm495_vm1, %v1171_v57  ;;  %v1560_v57 = vld [vmem:[%s3332_s17 + $0xd0] sm:$0xff] }
  0x46   : > { %2707 = vmatmul.mubr.msk.f32.gmra.mrb[26].mxu1 %vm495_vm1, %v489_v58  ;;  %v456_v58 = vld [vmem:[%s3326_s14 + $0xd8] sm:$0xff] }
  0x47   : > { %2807 = vmatmul.mubr.msk.f32.gmra.mrb[26].mxu0 %vm495_vm1, %v1172_v59  ;;  %2709 = vmatprep.mubr.msk.f32.mxu1 %vm495_vm1, %v490_v60  ;;  %v1561_v59 = vld [vmem:[%s3332_s17 + $0xd8] sm:$0xff]  ;;  %v457_v60 = vld [vmem:[%s3326_s14 + $0xe0] sm:$0xff] }
  0x48   : > { %2809 = vmatprep.mubr.msk.f32.mxu0 %vm495_vm1, %v1173_v61  ;;  %v1562_v61 = vld [vmem:[%s3332_s17 + $0xe0] sm:$0xff] }
  0x4a   : > { %2710 = vmatmul.mubr.msk.f32.gmra.mrb[28].mxu1 %vm495_vm1, %v491_v62  ;;  %v458_v62 = vld [vmem:[%s3326_s14 + $0xe8] sm:$0xff] }
  0x4b   : > { %2810 = vmatmul.mubr.msk.f32.gmra.mrb[28].mxu0 %vm495_vm1, %v1174_v63  ;;  %2712 = vmatprep.mubr.msk.f32.mxu1 %vm495_vm1, %v492_v0  ;;  %v1563_v63 = vld [vmem:[%s3332_s17 + $0xe8] sm:$0xff]  ;;  %v459_v0 = vld [vmem:[%s3326_s14 + $0xf0] sm:$0xff] }
  0x4c   : > { %2812 = vmatprep.mubr.msk.f32.mxu0 %vm495_vm1, %v1175_v1  ;;  %v1564_v1 = vld [vmem:[%s3332_s17 + $0xf0] sm:$0xff] }
  0x4e   : > { %2713 = vmatmul.mubr.msk.f32.gmra.mrb[30].mxu1 %vm495_vm1, %v493_v2  ;;  %v460_v2 = vld [vmem:[%s3326_s14 + $0xf8] sm:$0xff] }
  0x4f   : > { %2813 = vmatmul.mubr.msk.f32.gmra.mrb[30].mxu0 %vm495_vm1, %v1176_v3  ;;  %2717 = vmatprep.mubr.msk.f32.mxu1 %vm495_vm1, %v429_v4  ;;  %v1565_v3 = vld [vmem:[%s3332_s17 + $0xf8] sm:$0xff] }
  0x50   : > { %2817 = vmatprep.mubr.msk.f32.mxu0 %vm495_vm1, %v1534_v5 }
  0x52   : > { %2718 = vmatmul.mubr.msk.f32.vlgmr.msra.gmra.mrb[0].mxu1 %vm495_vm1, %v430_v6  ;;  %v3473_v6 = vld [vmem:[%s3753_s8] ss:$0 sm:$0xff] }
  0x53   : > { %2818 = vmatmul.mubr.msk.f32.vlgmr.msra.gmra.mrb[0].mxu0 %vm495_vm1, %v1535_v7  ;;  %2720 = vmatprep.mubr.msk.f32.mxu1 %vm495_vm1, %v431_v8 }
  0x54   : > { %2820 = vmatprep.mubr.msk.f32.mxu0 %vm495_vm1, %v1536_v9 }
  0x56   : > { %2721 = vmatmul.mubr.msk.f32.gmra.mrb[2].mxu1 %vm495_vm1, %v432_v10  ;;  %v3478_v10 = vld [vmem:[%s3754_s9] ss:$0 sm:$0xff] }
  0x57   : > { %2821 = vmatmul.mubr.msk.f32.gmra.mrb[2].mxu0 %vm495_vm1, %v1537_v11  ;;  %2723 = vmatprep.mubr.msk.f32.mxu1 %vm495_vm1, %v433_v12 }
  0x58   : > { %2823 = vmatprep.mubr.msk.f32.mxu0 %vm495_vm1, %v1538_v13 }
  0x5a   : > { %2724 = vmatmul.mubr.msk.f32.gmra.mrb[4].mxu1 %vm495_vm1, %v434_v14 }
  0x5b   : > { %2824 = vmatmul.mubr.msk.f32.gmra.mrb[4].mxu0 %vm495_vm1, %v1539_v15  ;;  %2726 = vmatprep.mubr.msk.f32.mxu1 %vm495_vm1, %v435_v16 }
  0x5c   : > { %2826 = vmatprep.mubr.msk.f32.mxu0 %vm495_vm1, %v1540_v17 }
  0x5e   : > { %2727 = vmatmul.mubr.msk.f32.gmra.mrb[6].mxu1 %vm495_vm1, %v436_v18 }
  0x5f   : > { %2827 = vmatmul.mubr.msk.f32.gmra.mrb[6].mxu0 %vm495_vm1, %v1541_v19  ;;  %2729 = vmatprep.mubr.msk.f32.mxu1 %vm495_vm1, %v437_v20 }
  0x60   : > { %2829 = vmatprep.mubr.msk.f32.mxu0 %vm495_vm1, %v1542_v21 }
  0x62   : > { %2730 = vmatmul.mubr.msk.f32.gmra.mrb[8].mxu1 %vm495_vm1, %v438_v22 }
  0x63   : > { %2830 = vmatmul.mubr.msk.f32.gmra.mrb[8].mxu0 %vm495_vm1, %v1543_v23  ;;  %2732 = vmatprep.mubr.msk.f32.mxu1 %vm495_vm1, %v439_v24 }
  0x64   : > { %2832 = vmatprep.mubr.msk.f32.mxu0 %vm495_vm1, %v1544_v25 }
  0x66   : > { %2733 = vmatmul.mubr.msk.f32.gmra.mrb[10].mxu1 %vm495_vm1, %v440_v26 }
  0x67   : > { %2833 = vmatmul.mubr.msk.f32.gmra.mrb[10].mxu0 %vm495_vm1, %v1545_v27  ;;  %2735 = vmatprep.mubr.msk.f32.mxu1 %vm495_vm1, %v441_v28 }
  0x68   : > { %2835 = vmatprep.mubr.msk.f32.mxu0 %vm495_vm1, %v1546_v29 }
  0x6a   : > { %2736 = vmatmul.mubr.msk.f32.gmra.mrb[12].mxu1 %vm495_vm1, %v442_v30 }
  0x6b   : > { %2836 = vmatmul.mubr.msk.f32.gmra.mrb[12].mxu0 %vm495_vm1, %v1547_v31  ;;  %2738 = vmatprep.mubr.msk.f32.mxu1 %vm495_vm1, %v443_v32 }
  0x6c   : > { %2838 = vmatprep.mubr.msk.f32.mxu0 %vm495_vm1, %v1548_v33 }
  0x6e   : > { %2739 = vmatmul.mubr.msk.f32.gmra.mrb[14].mxu1 %vm495_vm1, %v444_v34 }
  0x6f   : > { %2839 = vmatmul.mubr.msk.f32.gmra.mrb[14].mxu0 %vm495_vm1, %v1549_v35  ;;  %2741 = vmatprep.mubr.msk.f32.mxu1 %vm495_vm1, %v445_v36 }
  0x70   : > { %2841 = vmatprep.mubr.msk.f32.mxu0 %vm495_vm1, %v1550_v37 }
  0x72   : > { %2742 = vmatmul.mubr.msk.f32.gmra.mrb[16].mxu1 %vm495_vm1, %v446_v38 }
  0x73   : > { %2842 = vmatmul.mubr.msk.f32.gmra.mrb[16].mxu0 %vm495_vm1, %v1551_v39  ;;  %2744 = vmatprep.mubr.msk.f32.mxu1 %vm495_vm1, %v447_v40 }
  0x74   : > { %2844 = vmatprep.mubr.msk.f32.mxu0 %vm495_vm1, %v1552_v41 }
  0x76   : > { %2745 = vmatmul.mubr.msk.f32.gmra.mrb[18].mxu1 %vm495_vm1, %v448_v42 }
  0x77   : > { %2845 = vmatmul.mubr.msk.f32.gmra.mrb[18].mxu0 %vm495_vm1, %v1553_v43  ;;  %2747 = vmatprep.mubr.msk.f32.mxu1 %vm495_vm1, %v449_v44 }
  0x78   : > { %2847 = vmatprep.mubr.msk.f32.mxu0 %vm495_vm1, %v1554_v45 }
  0x7a   : > { %2748 = vmatmul.mubr.msk.f32.gmra.mrb[20].mxu1 %vm495_vm1, %v450_v46 }
  0x7b   : > { %2848 = vmatmul.mubr.msk.f32.gmra.mrb[20].mxu0 %vm495_vm1, %v1555_v47  ;;  %2750 = vmatprep.mubr.msk.f32.mxu1 %vm495_vm1, %v451_v48 }
  0x7c   : > { %2850 = vmatprep.mubr.msk.f32.mxu0 %vm495_vm1, %v1556_v49 }
  0x7e   : > { %2751 = vmatmul.mubr.msk.f32.gmra.mrb[22].mxu1 %vm495_vm1, %v452_v50 }
  0x7f   : > { %2851 = vmatmul.mubr.msk.f32.gmra.mrb[22].mxu0 %vm495_vm1, %v1557_v51  ;;  %2753 = vmatprep.mubr.msk.f32.mxu1 %vm495_vm1, %v453_v52 }
  0x80   : > { %2853 = vmatprep.mubr.msk.f32.mxu0 %vm495_vm1, %v1558_v53 }
  0x82   : > { %2754 = vmatmul.mubr.msk.f32.gmra.mrb[24].mxu1 %vm495_vm1, %v454_v54 }
  0x83   : > { %2854 = vmatmul.mubr.msk.f32.gmra.mrb[24].mxu0 %vm495_vm1, %v1559_v55  ;;  %2756 = vmatprep.mubr.msk.f32.mxu1 %vm495_vm1, %v455_v56 }
  0x84   : > { %2856 = vmatprep.mubr.msk.f32.mxu0 %vm495_vm1, %v1560_v57 }
  0x86   : > { %2757 = vmatmul.mubr.msk.f32.gmra.mrb[26].mxu1 %vm495_vm1, %v456_v58 }
  0x87   : > { %2857 = vmatmul.mubr.msk.f32.gmra.mrb[26].mxu0 %vm495_vm1, %v1561_v59  ;;  %2759 = vmatprep.mubr.msk.f32.mxu1 %vm495_vm1, %v457_v60 }
  0x88   : > { %2859 = vmatprep.mubr.msk.f32.mxu0 %vm495_vm1, %v1562_v61 }
  0x8a   : > { %2760 = vmatmul.mubr.msk.f32.gmra.mrb[28].mxu1 %vm495_vm1, %v458_v62 }
  0x8b   : > { %2860 = vmatmul.mubr.msk.f32.gmra.mrb[28].mxu0 %vm495_vm1, %v1563_v63  ;;  %2762 = vmatprep.mubr.msk.f32.mxu1 %vm495_vm1, %v459_v0 }
  0x8c   : > { %2862 = vmatprep.mubr.msk.f32.mxu0 %vm495_vm1, %v1564_v1 }
  0x8e   : > { %2763 = vmatmul.mubr.msk.f32.gmra.mrb[30].mxu1 %vm495_vm1, %v460_v2 }
  0x8f   : > { %2863 = vmatmul.mubr.msk.f32.gmra.mrb[30].mxu0 %vm495_vm1, %v1565_v3 }
 0x125   : > { %v2719_v4 = vpop.f32.mrb[0].mxu1 }
 0x126   : > { %v2819_v5 = vpop.f32.mrb[0].mxu0  ;;  %v986_v8 = vpop.f32.mrb[1].mxu1 }
 0x127   : > { %v2865_v7 = vadd.f32 %v2819_v5, %v2719_v4  ;;  %v1732_v9 = vpop.f32.mrb[1].mxu0 }
 0x128   : > { %v2866_v11 = vadd.f32 %v1732_v9, %v986_v8 }
 0x129   : > { %v1931_v12 = vmul.f32 %v2865_v7, %v3473_v6  ;;  %v2722_v14 = vpop.f32.mrb[2].mxu1 }
 0x12a   : > { %v1930_v13 = vmul.f32 %v2866_v11, %v3473_v6  ;;  %v2822_v15 = vpop.f32.mrb[2].mxu0  ;;  %v996_v18 = vpop.f32.mrb[3].mxu1 }
 0x12b   : > { %v3483_v16 = vadd.f32 %v3478_v10, %v1931_v12  ;;  %v2867_v17 = vadd.f32 %v2822_v15, %v2722_v14  ;;  %v1742_v19 = vpop.f32.mrb[3].mxu0 }
 0x12c   : > { %v3486_v20 = vadd.f32 %v3478_v10, %v1930_v13  ;;  %v2868_v21 = vadd.f32 %v1742_v19, %v996_v18 }
 0x12d   : > { %v2500_v22 = vmul.f32 -1.442695, %v3483_v16  ;;  %v1933_v23 = vmul.f32 %v2867_v17, %v3473_v6  ;;  %v2725_v26 = vpop.f32.mrb[4].mxu1 }
 0x12e   : > { %v2499_v24 = vmul.f32 -1.442695, %v3486_v20  ;;  %v1932_v25 = vmul.f32 %v2868_v21, %v3473_v6  ;;  %v2825_v27 = vpop.f32.mrb[4].mxu0  ;;  %v1006_v30 = vpop.f32.mrb[5].mxu1 }
 0x12f   : > { %2969 = vpow2.f32 %v2500_v22  ;;  %v3493_v28 = vadd.f32 %v3478_v10, %v1933_v23  ;;  %v2869_v29 = vadd.f32 %v2825_v27, %v2725_v26  ;;  %v1752_v31 = vpop.f32.mrb[5].mxu0 }
 0x130   : > { %2971 = vpow2.f32 %v2499_v24  ;;  %v3496_v32 = vadd.f32 %v3478_v10, %v1932_v25  ;;  %v2870_v33 = vadd.f32 %v1752_v31, %v1006_v30 }
 0x131   : > { %v2502_v34 = vmul.f32 -1.442695, %v3493_v28  ;;  %v1935_v35 = vmul.f32 %v2869_v29, %v3473_v6  ;;  %v2728_v38 = vpop.f32.mrb[6].mxu1 }
 0x132   : > { %v2501_v36 = vmul.f32 -1.442695, %v3496_v32  ;;  %v1934_v37 = vmul.f32 %v2870_v33, %v3473_v6  ;;  %v2828_v39 = vpop.f32.mrb[6].mxu0  ;;  %v1016_v42 = vpop.f32.mrb[7].mxu1 }
 0x133   : > { %2973 = vpow2.f32 %v2502_v34  ;;  %v3503_v40 = vadd.f32 %v3478_v10, %v1935_v35  ;;  %v2871_v41 = vadd.f32 %v2828_v39, %v2728_v38  ;;  %v1762_v43 = vpop.f32.mrb[7].mxu0 }
 0x134   : > { %2975 = vpow2.f32 %v2501_v36  ;;  %v3506_v44 = vadd.f32 %v3478_v10, %v1934_v37  ;;  %v2872_v45 = vadd.f32 %v1762_v43, %v1016_v42 }
 0x135   : > { %v2504_v46 = vmul.f32 -1.442695, %v3503_v40  ;;  %v1937_v47 = vmul.f32 %v2871_v41, %v3473_v6  ;;  %v2731_v50 = vpop.f32.mrb[8].mxu1 }
 0x136   : > { %v2503_v48 = vmul.f32 -1.442695, %v3506_v44  ;;  %v1936_v49 = vmul.f32 %v2872_v45, %v3473_v6  ;;  %v2831_v51 = vpop.f32.mrb[8].mxu0  ;;  %v1026_v54 = vpop.f32.mrb[9].mxu1 }
 0x137   : > { %2977 = vpow2.f32 %v2504_v46  ;;  %v3513_v52 = vadd.f32 %v3478_v10, %v1937_v47  ;;  %v2873_v53 = vadd.f32 %v2831_v51, %v2731_v50  ;;  %v1772_v55 = vpop.f32.mrb[9].mxu0 }
 0x138   : > { %2979 = vpow2.f32 %v2503_v48  ;;  %v3516_v56 = vadd.f32 %v3478_v10, %v1936_v49  ;;  %v2874_v57 = vadd.f32 %v1772_v55, %v1026_v54 }
 0x139   : > { %v2970_v58 = vpop.eup %2969  ;;  %v2506_v59 = vmul.f32 -1.442695, %v3513_v52  ;;  %v1939_v60 = vmul.f32 %v2873_v53, %v3473_v6  ;;  %v2734_v1 = vpop.f32.mrb[10].mxu1 }
 0x13a   : > { %v2972_v61 = vpop.eup %2971  ;;  %v2098_v62 = vadd.f32 1.0, %v2970_v58  ;;  %v2505_v63 = vmul.f32 -1.442695, %v3516_v56  ;;  %v1938_v0 = vmul.f32 %v2874_v57, %v3473_v6  ;;  %v2834_v2 = vpop.f32.mrb[10].mxu0 }
 0x13b   : > { %v2097_v3 = vadd.f32 1.0, %v2972_v61  ;;  %2981 = vpow2.f32 %v2506_v59  ;;  %v3523_v4 = vadd.f32 %v3478_v10, %v1939_v60  ;;  %v2875_v5 = vadd.f32 %v2834_v2, %v2734_v1  ;;  %v1036_v7 = vpop.f32.mrb[11].mxu1  ;;  %v1782_v8 = vpop.f32.mrb[11].mxu0 }
 0x13c   : > { %2983 = vrcp.f32 %v2098_v62  ;;  %v3526_v9 = vadd.f32 %v3478_v10, %v1938_v0  ;;  %v2876_v11 = vadd.f32 %v1782_v8, %v1036_v7 }
 0x13d   : > { %v2974_v12 = vpop.eup %2973  ;;  %2985 = vrcp.f32 %v2097_v3  ;;  %v2508_v13 = vmul.f32 -1.442695, %v3523_v4  ;;  %v1941_v14 = vmul.f32 %v2875_v5, %v3473_v6  ;;  %v2737_v21 = vpop.f32.mrb[12].mxu1 }
 0x13e   : > { %v2976_v15 = vpop.eup %2975  ;;  %v2100_v17 = vadd.f32 1.0, %v2974_v12  ;;  %2987 = vpow2.f32 %v2505_v63  ;;  %v2507_v18 = vmul.f32 -1.442695, %v3526_v9  ;;  %v1940_v19 = vmul.f32 %v2876_v11, %v3473_v6  ;;  %v2837_v22 = vpop.f32.mrb[12].mxu0 }
 0x13f   : > { %v2099_v23 = vadd.f32 1.0, %v2976_v15  ;;  %2989 = vpow2.f32 %v2508_v13  ;;  %v3533_v24 = vadd.f32 %v3478_v10, %v1941_v14  ;;  %v2877_v25 = vadd.f32 %v2837_v22, %v2737_v21  ;;  %v1046_v26 = vpop.f32.mrb[13].mxu1  ;;  %v1792_v27 = vpop.f32.mrb[13].mxu0 }
 0x140   : > { %2991 = vrcp.f32 %v2100_v17  ;;  %v3536_v29 = vadd.f32 %v3478_v10, %v1940_v19  ;;  %v2878_v30 = vadd.f32 %v1792_v27, %v1046_v26 }
 0x141   : > { %v2978_v31 = vpop.eup %2977  ;;  %2993 = vrcp.f32 %v2099_v23  ;;  %v2510_v33 = vmul.f32 -1.442695, %v3533_v24  ;;  %v1943_v34 = vmul.f32 %v2877_v25, %v3473_v6  ;;  %v2740_v39 = vpop.f32.mrb[14].mxu1 }
 0x142   : > { %v2980_v35 = vpop.eup %2979  ;;  %v2102_v36 = vadd.f32 1.0, %v2978_v31  ;;  %2995 = vpow2.f32 %v2507_v18  ;;  %v2509_v37 = vmul.f32 -1.442695, %v3536_v29  ;;  %v1942_v38 = vmul.f32 %v2878_v30, %v3473_v6  ;;  %v2840_v41 = vpop.f32.mrb[14].mxu0 }
 0x143   : > { %v2101_v42 = vadd.f32 1.0, %v2980_v35  ;;  %2997 = vpow2.f32 %v2510_v33  ;;  %v3543_v43 = vadd.f32 %v3478_v10, %v1943_v34  ;;  %v2879_v45 = vadd.f32 %v2840_v41, %v2740_v39  ;;  %v1056_v46 = vpop.f32.mrb[15].mxu1  ;;  %v1802_v47 = vpop.f32.mrb[15].mxu0 }
 0x144   : > { %2999 = vrcp.f32 %v2102_v36  ;;  %v3546_v48 = vadd.f32 %v3478_v10, %v1942_v38  ;;  %v2880_v49 = vadd.f32 %v1802_v47, %v1056_v46 }
 0x145   : > { %v2982_v50 = vpop.eup %2981  ;;  %3001 = vrcp.f32 %v2101_v42  ;;  %v2512_v51 = vmul.f32 -1.442695, %v3543_v43  ;;  %v1945_v53 = vmul.f32 %v2879_v45, %v3473_v6  ;;  %v2743_v59 = vpop.f32.mrb[16].mxu1 }
 0x146   : > { %v2984_v54 = vpop.eup %2983  ;;  %v2104_v55 = vadd.f32 1.0, %v2982_v50  ;;  %3003 = vpow2.f32 %v2509_v37  ;;  %v2511_v57 = vmul.f32 -1.442695, %v3546_v48  ;;  %v1944_v58 = vmul.f32 %v2880_v49, %v3473_v6  ;;  %v2843_v60 = vpop.f32.mrb[16].mxu0 }
 0x147   : > { %v2986_v61 = vpop.eup %2985  ;;  %v2194_v62 = vmul.f32 %v2984_v54, %v3483_v16  ;;  %3005 = vpow2.f32 %v2512_v51  ;;  %v3560_v63 = vadd.f32 %v3478_v10, %v1945_v53  ;;  %v2881_v0 = vadd.f32 %v2843_v60, %v2743_v59  ;;  %v1066_v1 = vpop.f32.mrb[17].mxu1 }
 0x148   : > { %v1812_v2 = vpop.f32.mrb[17].mxu0  ;;  %v2988_v3 = vpop.eup %2987  ;;  %v2193_v5 = vmul.f32 %v2986_v61, %v3486_v20  ;;  %3007 = vrcp.f32 %v2104_v55  ;;  %v3564_v7 = vadd.f32 %v3478_v10, %v1944_v58 }
 0x149   : > { %v2882_v8 = vadd.f32 %v1812_v2, %v1066_v1  ;;  %v2990_v11 = vpop.eup %2989  ;;  %2227 = vst.msk [vmem:[%s3554_s25 + $0x8] sm:$0xff] %vm2225_vm2, %v2194_v62  ;;  %v2103_v16 = vadd.f32 1.0, %v2988_v3  ;;  %3009 = vpow2.f32 %v2511_v57  ;;  %v2514_v12 = vmul.f32 -1.442695, %v3560_v63  ;;  %v2746_v18 = vpop.f32.mrb[18].mxu1 }
 0x14a   : > { %v1947_v13 = vmul.f32 %v2881_v0, %v3473_v6  ;;  %v2992_v14 = vpop.eup %2991  ;;  %2226 = vst.msk [vmem:[%s3554_s25] sm:$0xff] %vm2225_vm2, %v2193_v5  ;;  %v2106_v15 = vadd.f32 1.0, %v2990_v11  ;;  %v2513_v20 = vmul.f32 -1.442695, %v3564_v7  ;;  %v2846_v19 = vpop.f32.mrb[18].mxu0 }
 0x14b   : > { %v1946_v17 = vmul.f32 %v2882_v8, %v3473_v6  ;;  %v2994_v21 = vpop.eup %2993  ;;  %v2196_v22 = vmul.f32 %v2992_v14, %v3493_v28  ;;  %3011 = vrcp.f32 %v2103_v16  ;;  %v2883_v25 = vadd.f32 %v2846_v19, %v2746_v18  ;;  %v1076_v26 = vpop.f32.mrb[19].mxu1 }
 0x14c   : > { %v3576_v23 = vadd.f32 %v3478_v10, %v1947_v13  ;;  %v1822_v27 = vpop.f32.mrb[19].mxu0  ;;  %v2996_v30 = vpop.eup %2995  ;;  %v2195_v31 = vmul.f32 %v2994_v21, %v3496_v32  ;;  %3013 = vrcp.f32 %v2106_v15 }
 0x14d   : > { %v3580_v33 = vadd.f32 %v3478_v10, %v1946_v17  ;;  %v2884_v34 = vadd.f32 %v1822_v27, %v1076_v26  ;;  %v2998_v35 = vpop.eup %2997  ;;  %2229 = vst.msk [vmem:[%s3554_s25 + $0x18] sm:$0xff] %vm2225_vm2, %v2196_v22  ;;  %v2105_v28 = vadd.f32 1.0, %v2996_v30  ;;  %3015 = vpow2.f32 %v2514_v12  ;;  %v2749_v42 = vpop.f32.mrb[20].mxu1 }
 0x14e   : > { %v2516_v36 = vmul.f32 -1.442695, %v3576_v23  ;;  %v1949_v37 = vmul.f32 %v2883_v25, %v3473_v6  ;;  %v3000_v38 = vpop.eup %2999  ;;  %2228 = vst.msk [vmem:[%s3554_s25 + $0x10] sm:$0xff] %vm2225_vm2, %v2195_v31  ;;  %v2108_v39 = vadd.f32 1.0, %v2998_v35  ;;  %3017 = vpow2.f32 %v2513_v20  ;;  %v2849_v45 = vpop.f32.mrb[20].mxu0 }
 0x14f   : > { %v2515_v32 = vmul.f32 -1.442695, %v3580_v33  ;;  %v1948_v41 = vmul.f32 %v2884_v34, %v3473_v6  ;;  %v3002_v46 = vpop.eup %3001  ;;  %v2198_v47 = vmul.f32 %v3000_v38, %v3503_v40  ;;  %3019 = vrcp.f32 %v2105_v28  ;;  %v1086_v51 = vpop.f32.mrb[21].mxu1 }
 0x150   : > { %v3592_v49 = vadd.f32 %v3478_v10, %v1949_v37  ;;  %v2885_v50 = vadd.f32 %v2849_v45, %v2749_v42  ;;  %v1832_v53 = vpop.f32.mrb[21].mxu0  ;;  %v3004_v54 = vpop.eup %3003  ;;  %v2197_v55 = vmul.f32 %v3002_v46, %v3506_v44  ;;  %3021 = vrcp.f32 %v2108_v39 }
 0x151   : > { %v3596_v57 = vadd.f32 %v3478_v10, %v1948_v41  ;;  %v2886_v58 = vadd.f32 %v1832_v53, %v1086_v51  ;;  %v3006_v59 = vpop.eup %3005  ;;  %2231 = vst.msk [vmem:[%s3554_s25 + $0x28] sm:$0xff] %vm2225_vm2, %v2198_v47  ;;  %v2107_v40 = vadd.f32 1.0, %v3004_v54  ;;  %3023 = vpow2.f32 %v2516_v36  ;;  %v2752_v2 = vpop.f32.mrb[22].mxu1 }
 0x152   : > { %v2518_v60 = vmul.f32 -1.442695, %v3592_v49  ;;  %v1951_v61 = vmul.f32 %v2885_v50, %v3473_v6  ;;  %v3008_v62 = vpop.eup %3007  ;;  %2230 = vst.msk [vmem:[%s3554_s25 + $0x20] sm:$0xff] %vm2225_vm2, %v2197_v55  ;;  %v2110_v0 = vadd.f32 1.0, %v3006_v59  ;;  %3025 = vpow2.f32 %v2515_v32  ;;  %v2852_v3 = vpop.f32.mrb[22].mxu0 }
 0x153   : > { %v2517_v44 = vmul.f32 -1.442695, %v3596_v57  ;;  %v1950_v1 = vmul.f32 %v2886_v58, %v3473_v6  ;;  %v3010_v5 = vpop.eup %3009  ;;  %v2200_v8 = vmul.f32 %v3008_v62, %v3513_v52  ;;  %3027 = vrcp.f32 %v2107_v40  ;;  %v1096_v12 = vpop.f32.mrb[23].mxu1 }
 0x154   : > { %v3608_v11 = vadd.f32 %v3478_v10, %v1951_v61  ;;  %v2887_v16 = vadd.f32 %v2852_v3, %v2752_v2  ;;  %v1842_v13 = vpop.f32.mrb[23].mxu0  ;;  %3029 = vrcp.f32 %v2110_v0  ;;  %v2109_v14 = vadd.f32 1.0, %v3010_v5 }
 0x155   : > { %v3611_v15 = vadd.f32 %v3478_v10, %v1950_v1  ;;  %v2888_v20 = vadd.f32 %v1842_v13, %v1096_v12  ;;  %v3012_v17 = vpop.eup %3011  ;;  %2233 = vst.msk [vmem:[%s3554_s25 + $0x38] sm:$0xff] %vm2225_vm2, %v2200_v8  ;;  %3031 = vpow2.f32 %v2518_v60  ;;  %v2755_v26 = vpop.f32.mrb[24].mxu1 }
 0x156   : > { %v2520_v18 = vmul.f32 -1.442695, %v3608_v11  ;;  %v1953_v52 = vmul.f32 %v2887_v16, %v3473_v6  ;;  %v3014_v19 = vpop.eup %3013  ;;  %v2199_v21 = vmul.f32 %v3012_v17, %v3516_v56  ;;  %3033 = vrcp.f32 %v2109_v14  ;;  %v2855_v27 = vpop.f32.mrb[24].mxu0 }
 0x157   : > { %v2519_v22 = vmul.f32 -1.442695, %v3611_v15  ;;  %v1952_v25 = vmul.f32 %v2888_v20, %v3473_v6  ;;  %v3016_v30 = vpop.eup %3015  ;;  %v2202_v31 = vmul.f32 %v3014_v19, %v3523_v4  ;;  %3035 = vpow2.f32 %v2517_v44  ;;  %v1106_v28 = vpop.f32.mrb[25].mxu1 }
 0x158   : > { %v3622_v34 = vadd.f32 %v3478_v10, %v1953_v52  ;;  %v2889_v35 = vadd.f32 %v2855_v27, %v2755_v26  ;;  %v1852_v36 = vpop.f32.mrb[25].mxu0  ;;  %v3018_v37 = vpop.eup %3017  ;;  %2232 = vst.msk [vmem:[%s3554_s25 + $0x30] sm:$0xff] %vm2225_vm2, %v2199_v21  ;;  %v2112_v56 = vadd.f32 1.0, %v3016_v30  ;;  %3037 = vpow2.f32 %v2520_v18 }
 0x159   : > { %v3627_v38 = vadd.f32 %v3478_v10, %v1952_v25  ;;  %v2890_v39 = vadd.f32 %v1852_v36, %v1106_v28  ;;  %v3020_v32 = vpop.eup %3019  ;;  %2235 = vst.msk [vmem:[%s3554_s25 + $0x48] sm:$0xff] %vm2225_vm2, %v2202_v31  ;;  %v2111_v4 = vadd.f32 1.0, %v3018_v37  ;;  %3039 = vpow2.f32 %v2519_v22  ;;  %v2758_v51 = vpop.f32.mrb[26].mxu1 }
 0x15a   : > { %v2522_v41 = vmul.f32 -1.442695, %v3622_v34  ;;  %v1955_v42 = vmul.f32 %v2889_v35, %v3473_v6  ;;  %v3022_v45 = vpop.eup %3021  ;;  %v2201_v46 = vmul.f32 %v3020_v32, %v3526_v9  ;;  %3041 = vrcp.f32 %v2112_v56  ;;  %v2858_v53 = vpop.f32.mrb[26].mxu0 }
 0x15b   : > { %v2521_v47 = vmul.f32 -1.442695, %v3627_v38  ;;  %v1954_v50 = vmul.f32 %v2890_v39, %v3473_v6  ;;  %v3024_v54 = vpop.eup %3023  ;;  %v2204_v55 = vmul.f32 %v3022_v45, %v3533_v24  ;;  %3043 = vrcp.f32 %v2111_v4  ;;  %v1116_v40 = vpop.f32.mrb[27].mxu1 }
 0x15c   : > { %v3638_v58 = vadd.f32 %v3478_v10, %v1955_v42  ;;  %v2891_v59 = vadd.f32 %v2858_v53, %v2758_v51  ;;  %v1862_v60 = vpop.f32.mrb[27].mxu0  ;;  %v3026_v61 = vpop.eup %3025  ;;  %2234 = vst.msk [vmem:[%s3554_s25 + $0x40] sm:$0xff] %vm2225_vm2, %v2201_v46  ;;  %v2114_v9 = vadd.f32 1.0, %v3024_v54  ;;  %3045 = vpow2.f32 %v2522_v41 }
 0x15d   : > { %v3643_v62 = vadd.f32 %v3478_v10, %v1954_v50  ;;  %v2892_v0 = vadd.f32 %v1862_v60, %v1116_v40  ;;  %v3028_v44 = vpop.eup %3027  ;;  %2237 = vst.msk [vmem:[%s3554_s25 + $0x58] sm:$0xff] %vm2225_vm2, %v2204_v55  ;;  %v2113_v24 = vadd.f32 1.0, %v3026_v61  ;;  %3047 = vpow2.f32 %v2521_v47  ;;  %v2761_v12 = vpop.f32.mrb[28].mxu1 }
 0x15e   : > { %v2524_v1 = vmul.f32 -1.442695, %v3638_v58  ;;  %v1957_v2 = vmul.f32 %v2891_v59, %v3473_v6  ;;  %v3030_v3 = vpop.eup %3029  ;;  %v2203_v5 = vmul.f32 %v3028_v44, %v3536_v29  ;;  %3049 = vrcp.f32 %v2114_v9  ;;  %v2861_v13 = vpop.f32.mrb[28].mxu0 }
 0x15f   : > { %v2523_v8 = vmul.f32 -1.442695, %v3643_v62  ;;  %v1956_v16 = vmul.f32 %v2892_v0, %v3473_v6  ;;  %v3032_v14 = vpop.eup %3031  ;;  %v2206_v20 = vmul.f32 %v3030_v3, %v3543_v43  ;;  %3051 = vrcp.f32 %v2113_v24  ;;  %v1126_v52 = vpop.f32.mrb[29].mxu1 }
 0x160   : > { %v3654_v17 = vadd.f32 %v3478_v10, %v1957_v2  ;;  %v2893_v18 = vadd.f32 %v2861_v13, %v2761_v12  ;;  %v1872_v19 = vpop.f32.mrb[29].mxu0  ;;  %v3034_v21 = vpop.eup %3033  ;;  %2236 = vst.msk [vmem:[%s3554_s25 + $0x50] sm:$0xff] %vm2225_vm2, %v2203_v5  ;;  %v2116_v29 = vadd.f32 1.0, %v3032_v14  ;;  %3053 = vpow2.f32 %v2524_v1 }
 0x161   : > { %v3659_v22 = vadd.f32 %v3478_v10, %v1956_v16  ;;  %v2894_v25 = vadd.f32 %v1872_v19, %v1126_v52  ;;  %v3036_v26 = vpop.eup %3035  ;;  %2239 = vst.msk [vmem:[%s3554_s25 + $0x68] sm:$0xff] %vm2225_vm2, %v2206_v20  ;;  %v2205_v43 = vmul.f32 %v3034_v21, %v3546_v48  ;;  %3055 = vpow2.f32 %v2523_v8  ;;  %v2764_v37 = vpop.f32.mrb[30].mxu1 }
 0x162   : > { %v2526_v27 = vmul.f32 -1.442695, %v3654_v17  ;;  %v1959_v30 = vmul.f32 %v2893_v18, %v3473_v6  ;;  %v3038_v31 = vpop.eup %3037  ;;  %3057 = vrcp.f32 %v2116_v29  ;;  %v2115_v35 = vadd.f32 1.0, %v3036_v26  ;;  %v2864_v56 = vpop.f32.mrb[30].mxu0 }
 0x163   : > { %v2525_v28 = vmul.f32 -1.442695, %v3659_v22  ;;  %v1958_v36 = vmul.f32 %v2894_v25, %v3473_v6  ;;  %v3040_v39 = vpop.eup %3039  ;;  %2238 = vst.msk [vmem:[%s3554_s25 + $0x60] sm:$0xff] %vm2225_vm2, %v2205_v43  ;;  %v2118_v32 = vadd.f32 1.0, %v3038_v31  ;;  %v2895_v4 = vadd.f32 %v2864_v56, %v2764_v37  ;;  %v1136_v41 = vpop.f32.mrb[31].mxu1 }
 0x164   : > { %3059 = vpow2.f32 %v2526_v27  ;;  %v3671_v48 = vadd.f32 %v3478_v10, %v1959_v30  ;;  %v1882_v42 = vpop.f32.mrb[31].mxu0  ;;  %v3042_v45 = vpop.eup %3041  ;;  %v2117_v46 = vadd.f32 1.0, %v3040_v39 }
 0x165   : > { %3061 = vrcp.f32 %v2115_v35  ;;  %v3674_v47 = vadd.f32 %v3478_v10, %v1958_v36  ;;  %v2896_v50 = vadd.f32 %v1882_v42, %v1136_v41  ;;  %v3044_v51 = vpop.eup %3043  ;;  %v2208_v53 = vmul.f32 %v3042_v45, %v3560_v63 }
 0x166   : > { %3063 = vrcp.f32 %v2118_v32  ;;  %v2528_v54 = vmul.f32 -1.442695, %v3671_v48  ;;  %v1961_v55 = vmul.f32 %v2895_v4, %v3473_v6  ;;  %v3046_v59 = vpop.eup %3045  ;;  %v2207_v40 = vmul.f32 %v3044_v51, %v3564_v7 }
 0x167   : > { %3065 = vrcp.f32 %v2117_v46  ;;  %v1960_v60 = vmul.f32 %v2896_v50, %v3473_v6  ;;  %v3048_v61 = vpop.eup %3047  ;;  %2241 = vst.msk [vmem:[%s3554_s25 + $0x78] sm:$0xff] %vm2225_vm2, %v2208_v53  ;;  %v2120_v9 = vadd.f32 1.0, %v3046_v59  ;;  %v2527_v0 = vmul.f32 -1.442695, %v3674_v47 }
 0x168   : > { %3067 = vpow2.f32 %v2525_v28  ;;  %v3685_v63 = vadd.f32 %v3478_v10, %v1961_v55  ;;  %v3050_v44 = vpop.eup %3049  ;;  %2240 = vst.msk [vmem:[%s3554_s25 + $0x70] sm:$0xff] %vm2225_vm2, %v2207_v40  ;;  %v2119_v24 = vadd.f32 1.0, %v3048_v61 }
 0x169   : > { %3069 = vpow2.f32 %v2528_v54  ;;  %v3690_v7 = vadd.f32 %v3478_v10, %v1960_v60  ;;  %v3052_v6 = vpop.eup %3051  ;;  %v2210_v1 = vmul.f32 %v3050_v44, %v3576_v23 }
 0x16a   : > { %3071 = vrcp.f32 %v2120_v9  ;;  %v2530_v2 = vmul.f32 -1.442695, %v3685_v63  ;;  %v3054_v3 = vpop.eup %3053  ;;  %v2209_v5 = vmul.f32 %v3052_v6, %v3580_v33 }
 0x16b   : > { %3073 = vrcp.f32 %v2119_v24  ;;  %v3056_v8 = vpop.eup %3055  ;;  %2243 = vst.msk [vmem:[%s3554_s25 + $0x88] sm:$0xff] %vm2225_vm2, %v2210_v1  ;;  %v2122_v16 = vadd.f32 1.0, %v3054_v3  ;;  %v2529_v12 = vmul.f32 -1.442695, %v3690_v7 }
 0x16c   : > { %3075 = vpow2.f32 %v2527_v0  ;;  %v3058_v10 = vpop.eup %3057  ;;  %2242 = vst.msk [vmem:[%s3554_s25 + $0x80] sm:$0xff] %vm2225_vm2, %v2209_v5  ;;  %v2121_v13 = vadd.f32 1.0, %v3056_v8 }
 0x16d   : > { %3077 = vpow2.f32 %v2530_v2  ;;  %v2212_v14 = vmul.f32 %v3058_v10, %v3592_v49 }
 0x16e   : > { %v3060_v23 = vpop.eup %3059  ;;  %3079 = vrcp.f32 %v2122_v16 }
 0x16f   : > { %v3062_v33 = vpop.eup %3061  ;;  %3081 = vrcp.f32 %v2121_v13  ;;  %v2124_v20 = vadd.f32 1.0, %v3060_v23  ;;  %2245 = vst.msk [vmem:[%s3554_s25 + $0x98] sm:$0xff] %vm2225_vm2, %v2212_v14 }
 0x170   : > { %v3064_v18 = vpop.eup %3063  ;;  %v2211_v52 = vmul.f32 %v3062_v33, %v3596_v57  ;;  %3083 = vpow2.f32 %v2529_v12 }
 0x171   : > { %v3066_v19 = vpop.eup %3065  ;;  %v2214_v21 = vmul.f32 %v3064_v18, %v3608_v11  ;;  %3085 = vrcp.f32 %v2124_v20 }
 0x172   : > { %v3068_v29 = vpop.eup %3067  ;;  %2244 = vst.msk [vmem:[%s3554_s25 + $0x90] sm:$0xff] %vm2225_vm2, %v2211_v52  ;;  %v2213_v49 = vmul.f32 %v3066_v19, %v3611_v15 }
 0x173   : > { %v3070_v25 = vpop.eup %3069  ;;  %2247 = vst.msk [vmem:[%s3554_s25 + $0xa8] sm:$0xff] %vm2225_vm2, %v2214_v21  ;;  %v2123_v26 = vadd.f32 1.0, %v3068_v29 }
 0x174   : > { %v3072_v43 = vpop.eup %3071  ;;  %2246 = vst.msk [vmem:[%s3554_s25 + $0xa0] sm:$0xff] %vm2225_vm2, %v2213_v49  ;;  %v2126_v57 = vadd.f32 1.0, %v3070_v25 }
 0x175   : > { %v3074_v27 = vpop.eup %3073  ;;  %v2216_v30 = vmul.f32 %v3072_v43, %v3622_v34  ;;  %3087 = vrcp.f32 %v2123_v26 }
 0x176   : > { %v3076_v11 = vpop.eup %3075  ;;  %v2215_v31 = vmul.f32 %v3074_v27, %v3627_v38  ;;  %3089 = vrcp.f32 %v2126_v57 }
 0x177   : > { %v3078_v15 = vpop.eup %3077  ;;  %2249 = vst.msk [vmem:[%s3554_s25 + $0xb8] sm:$0xff] %vm2225_vm2, %v2216_v30  ;;  %v2125_v35 = vadd.f32 1.0, %v3076_v11 }
 0x178   : > { %v3080_v28 = vpop.eup %3079  ;;  %2248 = vst.msk [vmem:[%s3554_s25 + $0xb0] sm:$0xff] %vm2225_vm2, %v2215_v31  ;;  %v2128_v36 = vadd.f32 1.0, %v3078_v15 }
 0x179   : > { %v3082_v37 = vpop.eup %3081  ;;  %v2218_v56 = vmul.f32 %v3080_v28, %v3638_v58  ;;  %3091 = vrcp.f32 %v2125_v35 }
 0x17a   : > { %v3084_v34 = vpop.eup %3083  ;;  %v2217_v38 = vmul.f32 %v3082_v37, %v3643_v62  ;;  %3093 = vrcp.f32 %v2128_v36 }
 0x17b   : > { %v3086_v39 = vpop.eup %3085  ;;  %2251 = vst.msk [vmem:[%s3554_s25 + $0xc8] sm:$0xff] %vm2225_vm2, %v2218_v56  ;;  %v2127_v32 = vadd.f32 1.0, %v3084_v34 }
 0x17c   : > { %2250 = vst.msk [vmem:[%s3554_s25 + $0xc0] sm:$0xff] %vm2225_vm2, %v2217_v38  ;;  %v2220_v4 = vmul.f32 %v3086_v39, %v3654_v17 }
 0x17d   : > { %3095 = vrcp.f32 %v2127_v32 }
 0x17e   : > { %2253 = vst.msk [vmem:[%s3554_s25 + $0xd8] sm:$0xff] %vm2225_vm2, %v2220_v4 }
 0x17f   : > { %v3088_v58 = vpop.eup %3087 }
 0x180   : > { %v3090_v41 = vpop.eup %3089  ;;  %v2219_v42 = vmul.f32 %v3088_v58, %v3659_v22 }
 0x181   : > { %v2222_v62 = vmul.f32 %v3090_v41, %v3671_v48 }
 0x182   : > { %2252 = vst.msk [vmem:[%s3554_s25 + $0xd0] sm:$0xff] %vm2225_vm2, %v2219_v42 }
 0x183   : > { %v3092_v45 = vpop.eup %3091  ;;  %2255 = vst.msk [vmem:[%s3554_s25 + $0xe8] sm:$0xff] %vm2225_vm2, %v2222_v62 }
 0x184   : > { %v3094_v46 = vpop.eup %3093  ;;  %v2221_v50 = vmul.f32 %v3092_v45, %v3674_v47 }
 0x185   : > { %v2224_v17 = vmul.f32 %v3094_v46, %v3685_v63 }
 0x186   : > { %2254 = vst.msk [vmem:[%s3554_s25 + $0xe0] sm:$0xff] %vm2225_vm2, %v2221_v50 }
 0x187   : > { %v3096_v51 = vpop.eup %3095  ;;  %2257 = vst.msk [vmem:[%s3554_s25 + $0xf8] sm:$0xff] %vm2225_vm2, %v2224_v17 }
 0x188   : > { %v2223_v53 = vmul.f32 %v3096_v51, %v3690_v7 }
 0x18a   : > { %2256 = vst.msk [vmem:[%s3554_s25 + $0xf0] sm:$0xff] %vm2225_vm2, %v2223_v53 }
 0x18b PF: > { %s20_s13 = sadd.s32 1, %s3103_s13  }
 0x18c   : > { %p17_p4 = scmp.ge.s32.totalorder %s20_s13, 4  }
 0x18e   :  { %19 = sbr.rel (!%p17_p4) target bundleno = 1 (0x1), region = 99 }

// kernel: sppf_bottleneck.4
= control target key start
LH: loop header
LB: loop body
LE: loop exit
PB: predicated region body
PF: predicated region fallthrough
CT: control target
= control target key end

     0   :  { %s2488_s12 = smov 0   ;;  %s3902_s0 = inlined_call_operand.vmem [shape: f32[2,16,16,2], index: 0, kind: input, shape index: {}]   ;;  %s3903_s1 = inlined_call_operand.vmem [shape: f32[2,16,16,2], index: 1, kind: output, shape index: {0}]   ;;  %s3904_s2 = inlined_call_operand.vmem [shape: f32[2,16,16,2], index: 2, kind: output, shape index: {1}]   ;;  %s3905_s3 = inlined_call_operand.vmem [shape: f32[2,16,16,2], index: 3, kind: output, shape index: {2}]  }
   0x1 LB: > { %s2431_s13 = sadd.s32 4294967295, %s2465_s12   ;;  %p2435_p0 = scmp.ge.s32.totalorder %s2465_s12, 1  ;;  %s2465_s12 = sphi %s2488_s12, %s14_s12  }
   0x2   : > { %p142_p1 = scmp.lt.s32.totalorder %s2465_s12, 3 }
   0x4   : > { %p143_p2 = pnand %p2435_p0, %p142_p1 }
   0x6   : > { %146 = sbr.rel (%p143_p2) target bundleno = 326 (0x146), region = 24 }
   0xd   : > { %vm196_vm0 = vcmask 15360   ;;  %vm199_vm1 = vcmask 11264   ;;  %p2498_p3 = scmp.lt.s32.totalorder %s2431_s13, 1  ;;  %v2467_v0 = vmov -inf  }
   0xe   : > { %204 = vst.msk [vmem:[#allocation2 + $0x30] sm:$0xff] %vm196_vm0, %v2467_v0  ;;  %197 = vst.msk [vmem:[#allocation2] sm:$0xff] %vm196_vm0, %v2467_v0 }
   0xf   : > { %198 = vst.msk [vmem:[#allocation2 + $0x8] sm:$0xff] %vm196_vm0, %v2467_v0  ;;  %201 = vst.msk [vmem:[#allocation2 + $0x18] sm:$0xff] %vm196_vm0, %v2467_v0  ;;  %s3952_s13 = smov (!%p2498_p3, %s2431_s13), 1 }
  0x10   : > { %202 = vst.msk [vmem:[#allocation2 + $0x20] sm:$0xff] %vm196_vm0, %v2467_v0  ;;  %205 = vst.msk [vmem:[#allocation2 + $0x38] sm:$0xff] %vm196_vm0, %v2467_v0  ;;  %s2566_s15 = sshll.u32 %s3952_s13, 8 }
  0x11   : > { %207 = vst.msk [vmem:[#allocation2 + $0x48] sm:$0xff] %vm196_vm0, %v2467_v0  ;;  %208 = vst.msk [vmem:[#allocation2 + $0x50] sm:$0xff] %vm196_vm0, %v2467_v0  ;;  %s2572_s18 = scalar_lea.vmem %s3902_s0, %s2566_s15  ;;  %s2674_s21 = scalar_lea.vmem %s3903_s1, %s2566_s15 }
  0x12   : > { %210 = vst.msk [vmem:[#allocation2 + $0x60] sm:$0xff] %vm196_vm0, %v2467_v0  ;;  %211 = vst.msk [vmem:[#allocation2 + $0x68] sm:$0xff] %vm196_vm0, %v2467_v0  ;;  %v258_v1 = vld [vmem:[%s2572_s18] sm:$0xff]  ;;  %v259_v2 = vld [vmem:[%s2572_s18 + $0x8] sm:$0xff]  ;;  %s3268_s24 = scalar_lea.vmem %s3904_s2, %s2566_s15  ;;  %s3833_s27 = scalar_lea.vmem %s3905_s3, %s2566_s15 }
  0x13   : > { %213 = vst.msk [vmem:[#allocation2 + $0x78] sm:$0xff] %vm196_vm0, %v2467_v0  ;;  %214 = vst.msk [vmem:[#allocation2 + $0x80] sm:$0xff] %vm196_vm0, %v2467_v0  ;;  %v260_v3 = vld [vmem:[%s2572_s18 + $0x10] sm:$0xff]  ;;  %v261_v4 = vld [vmem:[%s2572_s18 + $0x18] sm:$0xff] }
  0x14   : > { %216 = vst.msk [vmem:[#allocation2 + $0x90] sm:$0xff] %vm196_vm0, %v2467_v0  ;;  %217 = vst.msk [vmem:[#allocation2 + $0x98] sm:$0xff] %vm196_vm0, %v2467_v0  ;;  %v262_v5 = vld [vmem:[%s2572_s18 + $0x20] sm:$0xff]  ;;  %v263_v6 = vld [vmem:[%s2572_s18 + $0x28] sm:$0xff] }
  0x15   : > { %219 = vst.msk [vmem:[#allocation2 + $0xa8] sm:$0xff] %vm196_vm0, %v2467_v0  ;;  %220 = vst.msk [vmem:[#allocation2 + $0xb0] sm:$0xff] %vm196_vm0, %v2467_v0  ;;  %v264_v7 = vld [vmem:[%s2572_s18 + $0x30] sm:$0xff]  ;;  %v265_v8 = vld [vmem:[%s2572_s18 + $0x38] sm:$0xff] }
  0x16   : > { %222 = vst.msk [vmem:[#allocation2 + $0xc0] sm:$0xff] %vm196_vm0, %v2467_v0  ;;  %223 = vst.msk [vmem:[#allocation2 + $0xc8] sm:$0xff] %vm196_vm0, %v2467_v0  ;;  %v266_v9 = vld [vmem:[%s2572_s18 + $0x40] sm:$0xff]  ;;  %v267_v10 = vld [vmem:[%s2572_s18 + $0x48] sm:$0xff] }
  0x17   : > { %225 = vst.msk [vmem:[#allocation2 + $0xd8] sm:$0xff] %vm196_vm0, %v2467_v0  ;;  %226 = vst.msk [vmem:[#allocation2 + $0xe0] sm:$0xff] %vm196_vm0, %v2467_v0  ;;  %v268_v11 = vld [vmem:[%s2572_s18 + $0x50] sm:$0xff]  ;;  %v269_v12 = vld [vmem:[%s2572_s18 + $0x58] sm:$0xff] }
  0x18   : > { %228 = vst.msk [vmem:[#allocation2 + $0xf0] sm:$0xff] %vm196_vm0, %v2467_v0  ;;  %229 = vst.msk [vmem:[#allocation2 + $0xf8] sm:$0xff] %vm196_vm0, %v2467_v0  ;;  %v270_v13 = vld [vmem:[%s2572_s18 + $0x60] sm:$0xff]  ;;  %v271_v14 = vld [vmem:[%s2572_s18 + $0x68] sm:$0xff] }
  0x19   : > { %231 = vst.msk [vmem:[#allocation2 + $0x108] sm:$0xff] %vm196_vm0, %v2467_v0  ;;  %232 = vst.msk [vmem:[#allocation2 + $0x110] sm:$0xff] %vm196_vm0, %v2467_v0  ;;  %v272_v15 = vld [vmem:[%s2572_s18 + $0x70] sm:$0xff]  ;;  %v273_v16 = vld [vmem:[%s2572_s18 + $0x78] sm:$0xff] }
  0x1a   : > { %234 = vst.msk [vmem:[#allocation2 + $0x120] sm:$0xff] %vm196_vm0, %v2467_v0  ;;  %235 = vst.msk [vmem:[#allocation2 + $0x128] sm:$0xff] %vm196_vm0, %v2467_v0  ;;  %v274_v17 = vld [vmem:[%s2572_s18 + $0x80] sm:$0xff]  ;;  %v275_v18 = vld [vmem:[%s2572_s18 + $0x88] sm:$0xff] }
  0x1b   : > { %237 = vst.msk [vmem:[#allocation2 + $0x138] sm:$0xff] %vm196_vm0, %v2467_v0  ;;  %238 = vst.msk [vmem:[#allocation2 + $0x140] sm:$0xff] %vm196_vm0, %v2467_v0  ;;  %v276_v19 = vld [vmem:[%s2572_s18 + $0x90] sm:$0xff]  ;;  %v277_v20 = vld [vmem:[%s2572_s18 + $0x98] sm:$0xff] }
  0x1c   : > { %240 = vst.msk [vmem:[#allocation2 + $0x150] sm:$0xff] %vm196_vm0, %v2467_v0  ;;  %241 = vst.msk [vmem:[#allocation2 + $0x158] sm:$0xff] %vm196_vm0, %v2467_v0  ;;  %v278_v21 = vld [vmem:[%s2572_s18 + $0xa0] sm:$0xff]  ;;  %v279_v22 = vld [vmem:[%s2572_s18 + $0xa8] sm:$0xff] }
  0x1d   : > { %243 = vst.msk [vmem:[#allocation2 + $0x168] sm:$0xff] %vm196_vm0, %v2467_v0  ;;  %244 = vst.msk [vmem:[#allocation2 + $0x170] sm:$0xff] %vm196_vm0, %v2467_v0  ;;  %v280_v23 = vld [vmem:[%s2572_s18 + $0xb0] sm:$0xff]  ;;  %v281_v24 = vld [vmem:[%s2572_s18 + $0xb8] sm:$0xff] }
  0x1e   : > { %246 = vst.msk [vmem:[#allocation2 + $0x180] sm:$0xff] %vm196_vm0, %v2467_v0  ;;  %247 = vst.msk [vmem:[#allocation2 + $0x188] sm:$0xff] %vm196_vm0, %v2467_v0  ;;  %v282_v25 = vld [vmem:[%s2572_s18 + $0xc0] sm:$0xff]  ;;  %v283_v26 = vld [vmem:[%s2572_s18 + $0xc8] sm:$0xff] }
  0x1f   : > { %249 = vst.msk [vmem:[#allocation2 + $0x198] sm:$0xff] %vm196_vm0, %v2467_v0  ;;  %250 = vst.msk [vmem:[#allocation2 + $0x1a0] sm:$0xff] %vm196_vm0, %v2467_v0  ;;  %v284_v27 = vld [vmem:[%s2572_s18 + $0xd0] sm:$0xff]  ;;  %v285_v28 = vld [vmem:[%s2572_s18 + $0xd8] sm:$0xff] }
  0x20   : > { %252 = vst.msk [vmem:[#allocation2 + $0x1b0] sm:$0xff] %vm196_vm0, %v2467_v0  ;;  %253 = vst.msk [vmem:[#allocation2 + $0x1b8] sm:$0xff] %vm196_vm0, %v2467_v0  ;;  %v286_v29 = vld [vmem:[%s2572_s18 + $0xe0] sm:$0xff]  ;;  %v287_v30 = vld [vmem:[%s2572_s18 + $0xe8] sm:$0xff] }
  0x21   : > { %255 = vst.msk [vmem:[#allocation2 + $0x1c8] sm:$0xff] %vm196_vm0, %v2467_v0  ;;  %256 = vst.msk [vmem:[#allocation2 + $0x1d0] sm:$0xff] %vm196_vm0, %v2467_v0  ;;  %v288_v31 = vld [vmem:[%s2572_s18 + $0xf0] sm:$0xff]  ;;  %v289_v32 = vld [vmem:[%s2572_s18 + $0xf8] sm:$0xff] }
  0x22   : > { %206 = vst.msk [vmem:[#allocation2 + $0x40] sm:$0xf] %vm199_vm1, %v2467_v0  ;;  %200 = vst.msk [vmem:[#allocation2 + $0x10] sm:$0xf] %vm199_vm1, %v2467_v0 }
  0x23   : > { %203 = vst.msk [vmem:[#allocation2 + $0x28] sm:$0xf] %vm199_vm1, %v2467_v0  ;;  %209 = vst.msk [vmem:[#allocation2 + $0x58] sm:$0xf] %vm199_vm1, %v2467_v0 }
  0x24   : > { %212 = vst.msk [vmem:[#allocation2 + $0x70] sm:$0xf] %vm199_vm1, %v2467_v0  ;;  %215 = vst.msk [vmem:[#allocation2 + $0x88] sm:$0xf] %vm199_vm1, %v2467_v0 }
  0x25   : > { %218 = vst.msk [vmem:[#allocation2 + $0xa0] sm:$0xf] %vm199_vm1, %v2467_v0  ;;  %221 = vst.msk [vmem:[#allocation2 + $0xb8] sm:$0xf] %vm199_vm1, %v2467_v0 }
  0x26   : > { %224 = vst.msk [vmem:[#allocation2 + $0xd0] sm:$0xf] %vm199_vm1, %v2467_v0  ;;  %227 = vst.msk [vmem:[#allocation2 + $0xe8] sm:$0xf] %vm199_vm1, %v2467_v0 }
  0x27   : > { %230 = vst.msk [vmem:[#allocation2 + $0x100] sm:$0xf] %vm199_vm1, %v2467_v0  ;;  %233 = vst.msk [vmem:[#allocation2 + $0x118] sm:$0xf] %vm199_vm1, %v2467_v0 }
  0x28   : > { %236 = vst.msk [vmem:[#allocation2 + $0x130] sm:$0xf] %vm199_vm1, %v2467_v0  ;;  %239 = vst.msk [vmem:[#allocation2 + $0x148] sm:$0xf] %vm199_vm1, %v2467_v0 }
  0x29   : > { %242 = vst.msk [vmem:[#allocation2 + $0x160] sm:$0xf] %vm199_vm1, %v2467_v0  ;;  %245 = vst.msk [vmem:[#allocation2 + $0x178] sm:$0xf] %vm199_vm1, %v2467_v0 }
  0x2a   : > { %248 = vst.msk [vmem:[#allocation2 + $0x190] sm:$0xf] %vm199_vm1, %v2467_v0  ;;  %251 = vst.msk [vmem:[#allocation2 + $0x1a8] sm:$0xf] %vm199_vm1, %v2467_v0 }
  0x2b   : > { %254 = vst.msk [vmem:[#allocation2 + $0x1c0] sm:$0xf] %vm199_vm1, %v2467_v0  ;;  %257 = vst.msk [vmem:[#allocation2 + $0x1d8] sm:$0xf] %vm199_vm1, %v2467_v0 }
  0x2c   : > { %291 = vst.msk [vmem:[#allocation2 + $0x32] sm:$0xff] %vm196_vm0, %v258_v1  ;;  %292 = vst.msk [vmem:[#allocation2 + $0x3a] sm:$0xff] %vm196_vm0, %v259_v2 }
  0x2d   : > { %293 = vst.msk [vmem:[#allocation2 + $0x4a] sm:$0xff] %vm196_vm0, %v260_v3  ;;  %294 = vst.msk [vmem:[#allocation2 + $0x52] sm:$0xff] %vm196_vm0, %v261_v4 }
  0x2e   : > { %295 = vst.msk [vmem:[#allocation2 + $0x62] sm:$0xff] %vm196_vm0, %v262_v5  ;;  %296 = vst.msk [vmem:[#allocation2 + $0x6a] sm:$0xff] %vm196_vm0, %v263_v6 }
  0x2f   : > { %297 = vst.msk [vmem:[#allocation2 + $0x7a] sm:$0xff] %vm196_vm0, %v264_v7  ;;  %298 = vst.msk [vmem:[#allocation2 + $0x82] sm:$0xff] %vm196_vm0, %v265_v8 }
  0x30   : > { %299 = vst.msk [vmem:[#allocation2 + $0x92] sm:$0xff] %vm196_vm0, %v266_v9  ;;  %300 = vst.msk [vmem:[#allocation2 + $0x9a] sm:$0xff] %vm196_vm0, %v267_v10 }
  0x31   : > { %301 = vst.msk [vmem:[#allocation2 + $0xaa] sm:$0xff] %vm196_vm0, %v268_v11  ;;  %302 = vst.msk [vmem:[#allocation2 + $0xb2] sm:$0xff] %vm196_vm0, %v269_v12 }
  0x32   : > { %303 = vst.msk [vmem:[#allocation2 + $0xc2] sm:$0xff] %vm196_vm0, %v270_v13  ;;  %304 = vst.msk [vmem:[#allocation2 + $0xca] sm:$0xff] %vm196_vm0, %v271_v14 }
  0x33   : > { %305 = vst.msk [vmem:[#allocation2 + $0xda] sm:$0xff] %vm196_vm0, %v272_v15  ;;  %306 = vst.msk [vmem:[#allocation2 + $0xe2] sm:$0xff] %vm196_vm0, %v273_v16  ;;  %v323_v33 = vld [vmem:[#allocation2 + $0x30] sm:$0xff]  ;;  %v324_v34 = vld [vmem:[#allocation2 + $0x38] sm:$0xff] }
  0x34   : > { %307 = vst.msk [vmem:[#allocation2 + $0xf2] sm:$0xff] %vm196_vm0, %v274_v17  ;;  %308 = vst.msk [vmem:[#allocation2 + $0xfa] sm:$0xff] %vm196_vm0, %v275_v18  ;;  %v355_v35 = vld [vmem:[#allocation2 + $0x31] sm:$0xff]  ;;  %v356_v36 = vld [vmem:[#allocation2 + $0x39] sm:$0xff] }
  0x35   : > { %309 = vst.msk [vmem:[#allocation2 + $0x10a] sm:$0xff] %vm196_vm0, %v276_v19  ;;  %310 = vst.msk [vmem:[#allocation2 + $0x112] sm:$0xff] %vm196_vm0, %v277_v20  ;;  %v387_v37 = vmax.f32 %v323_v33, %v355_v35  ;;  %v388_v38 = vmax.f32 %v324_v34, %v356_v36  ;;  %v419_v39 = vld [vmem:[#allocation2 + $0x32] sm:$0xff]  ;;  %v420_v40 = vld [vmem:[#allocation2 + $0x3a] sm:$0xff] }
  0x36   : > { %311 = vst.msk [vmem:[#allocation2 + $0x122] sm:$0xff] %vm196_vm0, %v278_v21  ;;  %312 = vst.msk [vmem:[#allocation2 + $0x12a] sm:$0xff] %vm196_vm0, %v279_v22  ;;  %v325_v43 = vld [vmem:[#allocation2 + $0x48] sm:$0xff]  ;;  %v326_v44 = vld [vmem:[#allocation2 + $0x50] sm:$0xff] }
  0x37   : > { %313 = vst.msk [vmem:[#allocation2 + $0x13a] sm:$0xff] %vm196_vm0, %v280_v23  ;;  %314 = vst.msk [vmem:[#allocation2 + $0x142] sm:$0xff] %vm196_vm0, %v281_v24  ;;  %v451_v41 = vmax.f32 %v387_v37, %v419_v39  ;;  %v452_v42 = vmax.f32 %v388_v38, %v420_v40  ;;  %v357_v45 = vld [vmem:[#allocation2 + $0x49] sm:$0xff]  ;;  %v483_v46 = vld [vmem:[#allocation2 + $0x33] sm:$0xff] }
  0x38   : > { %315 = vst.msk [vmem:[#allocation2 + $0x152] sm:$0xff] %vm196_vm0, %v282_v25  ;;  %316 = vst.msk [vmem:[#allocation2 + $0x15a] sm:$0xff] %vm196_vm0, %v283_v26  ;;  %v484_v47 = vld [vmem:[#allocation2 + $0x3b] sm:$0xff]  ;;  %v358_v48 = vld [vmem:[#allocation2 + $0x51] sm:$0xff]  ;;  %v389_v49 = vmax.f32 %v325_v43, %v357_v45 }
  0x39   : > { %317 = vst.msk [vmem:[#allocation2 + $0x16a] sm:$0xff] %vm196_vm0, %v284_v27  ;;  %318 = vst.msk [vmem:[#allocation2 + $0x172] sm:$0xff] %vm196_vm0, %v285_v28  ;;  %v515_v50 = vmax.f32 %v451_v41, %v483_v46  ;;  %v547_v51 = vld [vmem:[#allocation2 + $0x34] sm:$0xff]  ;;  %v516_v52 = vmax.f32 %v452_v42, %v484_v47  ;;  %v548_v53 = vld [vmem:[#allocation2 + $0x3c] sm:$0xff]  ;;  %v390_v55 = vmax.f32 %v326_v44, %v358_v48 }
  0x3a   : > { %319 = vst.msk [vmem:[#allocation2 + $0x182] sm:$0xff] %vm196_vm0, %v286_v29  ;;  %320 = vst.msk [vmem:[#allocation2 + $0x18a] sm:$0xff] %vm196_vm0, %v287_v30  ;;  %v421_v54 = vld [vmem:[#allocation2 + $0x4a] sm:$0xff]  ;;  %v422_v57 = vld [vmem:[#allocation2 + $0x52] sm:$0xff] }
  0x3b   : > { %321 = vst.msk [vmem:[#allocation2 + $0x19a] sm:$0xff] %vm196_vm0, %v288_v31  ;;  %322 = vst.msk [vmem:[#allocation2 + $0x1a2] sm:$0xff] %vm196_vm0, %v289_v32  ;;  %v453_v56 = vmax.f32 %v389_v49, %v421_v54  ;;  %v327_v58 = vld [vmem:[#allocation2 + $0x60] sm:$0xff]  ;;  %v328_v59 = vld [vmem:[#allocation2 + $0x68] sm:$0xff]  ;;  %v579_v60 = vmax.f32 %v515_v50, %v547_v51  ;;  %v580_v61 = vmax.f32 %v516_v52, %v548_v53 }
  0x3c   : > { %v485_v62 = vld [vmem:[#allocation2 + $0x4b] sm:$0xff]  ;;  %v454_v63 = vmax.f32 %v390_v55, %v422_v57  ;;  %v359_v0 = vld [vmem:[#allocation2 + $0x61] sm:$0xff]  ;;  %v486_v4 = vld [vmem:[#allocation2 + $0x53] sm:$0xff] }
  0x3d   : > { %v360_v1 = vld [vmem:[#allocation2 + $0x69] sm:$0xff]  ;;  %v517_v2 = vmax.f32 %v453_v56, %v485_v62  ;;  %v550_v5 = vld [vmem:[#allocation2 + $0x54] sm:$0xff]  ;;  %v391_v6 = vmax.f32 %v327_v58, %v359_v0  ;;  %611 = vst.msk [vmem:[#allocation2 + $0x32] sm:$0xff] %vm196_vm0, %v579_v60  ;;  %612 = vst.msk [vmem:[#allocation2 + $0x3a] sm:$0xff] %vm196_vm0, %v580_v61 }
  0x3e   : > { %v549_v3 = vld [vmem:[#allocation2 + $0x4c] sm:$0xff]  ;;  %v392_v7 = vmax.f32 %v328_v59, %v360_v1  ;;  %v518_v8 = vmax.f32 %v454_v63, %v486_v4  ;;  %v423_v9 = vld [vmem:[#allocation2 + $0x62] sm:$0xff]  ;;  %v329_v11 = vld [vmem:[#allocation2 + $0x78] sm:$0xff] }
  0x3f   : > { %v424_v10 = vld [vmem:[#allocation2 + $0x6a] sm:$0xff]  ;;  %v581_v12 = vmax.f32 %v517_v2, %v549_v3  ;;  %v455_v13 = vmax.f32 %v391_v6, %v423_v9  ;;  %v330_v15 = vld [vmem:[#allocation2 + $0x80] sm:$0xff]  ;;  %v332_v32 = vld [vmem:[#allocation2 + $0x98] sm:$0xff] }
  0x40   : > { %v456_v14 = vmax.f32 %v392_v7, %v424_v10  ;;  %v361_v16 = vld [vmem:[#allocation2 + $0x79] sm:$0xff]  ;;  %v362_v17 = vld [vmem:[#allocation2 + $0x81] sm:$0xff]  ;;  %v582_v18 = vmax.f32 %v518_v8, %v550_v5  ;;  %v488_v21 = vld [vmem:[#allocation2 + $0x6b] sm:$0xff] }
  0x41   : > { %v487_v19 = vld [vmem:[#allocation2 + $0x63] sm:$0xff]  ;;  %v393_v22 = vmax.f32 %v329_v11, %v361_v16  ;;  %v394_v23 = vmax.f32 %v330_v15, %v362_v17  ;;  %613 = vst.msk [vmem:[#allocation2 + $0x4a] sm:$0xff] %vm196_vm0, %v581_v12  ;;  %v552_v26 = vld [vmem:[#allocation2 + $0x6c] sm:$0xff]  ;;  %v425_v27 = vld [vmem:[#allocation2 + $0x7a] sm:$0xff] }
  0x42   : > { %v551_v20 = vld [vmem:[#allocation2 + $0x64] sm:$0xff]  ;;  %v519_v24 = vmax.f32 %v455_v13, %v487_v19  ;;  %v520_v25 = vmax.f32 %v456_v14, %v488_v21  ;;  %614 = vst.msk [vmem:[#allocation2 + $0x52] sm:$0xff] %vm196_vm0, %v582_v18  ;;  %v331_v31 = vld [vmem:[#allocation2 + $0x90] sm:$0xff]  ;;  %v489_v36 = vld [vmem:[#allocation2 + $0x7b] sm:$0xff] }
  0x43   : > { %v426_v28 = vld [vmem:[#allocation2 + $0x82] sm:$0xff]  ;;  %v457_v29 = vmax.f32 %v393_v22, %v425_v27  ;;  %v363_v33 = vld [vmem:[#allocation2 + $0x91] sm:$0xff]  ;;  %v364_v38 = vld [vmem:[#allocation2 + $0x99] sm:$0xff] }
  0x44   : > { %v458_v30 = vmax.f32 %v394_v23, %v426_v28  ;;  %v583_v34 = vmax.f32 %v519_v24, %v551_v20  ;;  %v584_v35 = vmax.f32 %v520_v25, %v552_v26  ;;  %v490_v37 = vld [vmem:[#allocation2 + $0x83] sm:$0xff]  ;;  %v395_v39 = vmax.f32 %v331_v31, %v363_v33  ;;  %v427_v43 = vld [vmem:[#allocation2 + $0x92] sm:$0xff]  ;;  %v428_v48 = vld [vmem:[#allocation2 + $0x9a] sm:$0xff] }
  0x45   : > { %v521_v40 = vmax.f32 %v457_v29, %v489_v36  ;;  %v553_v41 = vld [vmem:[#allocation2 + $0x7c] sm:$0xff]  ;;  %v396_v44 = vmax.f32 %v332_v32, %v364_v38  ;;  %v554_v45 = vld [vmem:[#allocation2 + $0x84] sm:$0xff]  ;;  %v491_v47 = vld [vmem:[#allocation2 + $0x93] sm:$0xff] }
  0x46   : > { %v522_v42 = vmax.f32 %v458_v30, %v490_v37  ;;  %615 = vst.msk [vmem:[#allocation2 + $0x62] sm:$0xff] %vm196_vm0, %v583_v34  ;;  %616 = vst.msk [vmem:[#allocation2 + $0x6a] sm:$0xff] %vm196_vm0, %v584_v35  ;;  %v459_v46 = vmax.f32 %v395_v39, %v427_v43  ;;  %v333_v52 = vld [vmem:[#allocation2 + $0xa8] sm:$0xff]  ;;  %v334_v53 = vld [vmem:[#allocation2 + $0xb0] sm:$0xff] }
  0x47   : > { %v585_v49 = vmax.f32 %v521_v40, %v553_v41  ;;  %v460_v51 = vmax.f32 %v396_v44, %v428_v48  ;;  %v365_v54 = vld [vmem:[#allocation2 + $0xa9] sm:$0xff]  ;;  %v555_v56 = vld [vmem:[#allocation2 + $0x94] sm:$0xff]  ;;  %v556_v61 = vld [vmem:[#allocation2 + $0x9c] sm:$0xff] }
  0x48   : > { %v586_v50 = vmax.f32 %v522_v42, %v554_v45  ;;  %v523_v55 = vmax.f32 %v459_v46, %v491_v47  ;;  %v492_v57 = vld [vmem:[#allocation2 + $0x9b] sm:$0xff]  ;;  %v366_v58 = vld [vmem:[#allocation2 + $0xb1] sm:$0xff]  ;;  %v397_v59 = vmax.f32 %v333_v52, %v365_v54  ;;  %v336_v5 = vld [vmem:[#allocation2 + $0xc8] sm:$0xff] }
  0x49   : > { %617 = vst.msk [vmem:[#allocation2 + $0x7a] sm:$0xff] %vm196_vm0, %v585_v49  ;;  %v524_v60 = vmax.f32 %v460_v51, %v492_v57  ;;  %v429_v62 = vld [vmem:[#allocation2 + $0xaa] sm:$0xff]  ;;  %v398_v0 = vmax.f32 %v334_v53, %v366_v58  ;;  %v430_v3 = vld [vmem:[#allocation2 + $0xb2] sm:$0xff]  ;;  %v335_v4 = vld [vmem:[#allocation2 + $0xc0] sm:$0xff] }
  0x4a   : > { %618 = vst.msk [vmem:[#allocation2 + $0x82] sm:$0xff] %vm196_vm0, %v586_v50  ;;  %v493_v63 = vld [vmem:[#allocation2 + $0xab] sm:$0xff]  ;;  %v587_v1 = vmax.f32 %v523_v55, %v555_v56  ;;  %v461_v2 = vmax.f32 %v397_v59, %v429_v62  ;;  %v367_v9 = vld [vmem:[#allocation2 + $0xc1] sm:$0xff]  ;;  %v494_v12 = vld [vmem:[#allocation2 + $0xb3] sm:$0xff] }
  0x4b   : > { %v588_v6 = vmax.f32 %v524_v60, %v556_v61  ;;  %v557_v7 = vld [vmem:[#allocation2 + $0xac] sm:$0xff]  ;;  %v462_v8 = vmax.f32 %v398_v0, %v430_v3  ;;  %v558_v13 = vld [vmem:[#allocation2 + $0xb4] sm:$0xff]  ;;  %v399_v14 = vmax.f32 %v335_v4, %v367_v9  ;;  %v431_v15 = vld [vmem:[#allocation2 + $0xc2] sm:$0xff] }
  0x4c   : > { %v368_v10 = vld [vmem:[#allocation2 + $0xc9] sm:$0xff]  ;;  %619 = vst.msk [vmem:[#allocation2 + $0x92] sm:$0xff] %vm196_vm0, %v587_v1  ;;  %v525_v11 = vmax.f32 %v461_v2, %v493_v63  ;;  %v337_v20 = vld [vmem:[#allocation2 + $0xd8] sm:$0xff]  ;;  %v338_v24 = vld [vmem:[#allocation2 + $0xe0] sm:$0xff] }
  0x4d   : > { %v400_v16 = vmax.f32 %v336_v5, %v368_v10  ;;  %620 = vst.msk [vmem:[#allocation2 + $0x9a] sm:$0xff] %vm196_vm0, %v588_v6  ;;  %v526_v17 = vmax.f32 %v462_v8, %v494_v12  ;;  %v495_v18 = vld [vmem:[#allocation2 + $0xc3] sm:$0xff]  ;;  %v463_v22 = vmax.f32 %v399_v14, %v431_v15  ;;  %v369_v25 = vld [vmem:[#allocation2 + $0xd9] sm:$0xff]  ;;  %v496_v29 = vld [vmem:[#allocation2 + $0xcb] sm:$0xff] }
  0x4e   : > { %v432_v19 = vld [vmem:[#allocation2 + $0xca] sm:$0xff]  ;;  %v589_v21 = vmax.f32 %v525_v11, %v557_v7  ;;  %v370_v26 = vld [vmem:[#allocation2 + $0xe1] sm:$0xff]  ;;  %v401_v31 = vmax.f32 %v337_v20, %v369_v25  ;;  %v340_v41 = vld [vmem:[#allocation2 + $0xf8] sm:$0xff] }
  0x4f   : > { %v464_v23 = vmax.f32 %v400_v16, %v432_v19  ;;  %v590_v27 = vmax.f32 %v526_v17, %v558_v13  ;;  %v559_v28 = vld [vmem:[#allocation2 + $0xc4] sm:$0xff]  ;;  %v560_v30 = vld [vmem:[#allocation2 + $0xcc] sm:$0xff]  ;;  %v402_v32 = vmax.f32 %v338_v24, %v370_v26  ;;  %v527_v33 = vmax.f32 %v463_v22, %v495_v18  ;;  %v433_v35 = vld [vmem:[#allocation2 + $0xda] sm:$0xff] }
  0x50   : > { %621 = vst.msk [vmem:[#allocation2 + $0xaa] sm:$0xff] %vm196_vm0, %v589_v21  ;;  %v497_v36 = vld [vmem:[#allocation2 + $0xdb] sm:$0xff]  ;;  %v465_v38 = vmax.f32 %v401_v31, %v433_v35  ;;  %v339_v40 = vld [vmem:[#allocation2 + $0xf0] sm:$0xff]  ;;  %v498_v46 = vld [vmem:[#allocation2 + $0xe3] sm:$0xff] }
  0x51   : > { %v528_v34 = vmax.f32 %v464_v23, %v496_v29  ;;  %v434_v37 = vld [vmem:[#allocation2 + $0xe2] sm:$0xff]  ;;  %622 = vst.msk [vmem:[#allocation2 + $0xb2] sm:$0xff] %vm196_vm0, %v590_v27  ;;  %v371_v42 = vld [vmem:[#allocation2 + $0xf1] sm:$0xff]  ;;  %v591_v43 = vmax.f32 %v527_v33, %v559_v28  ;;  %v372_v47 = vld [vmem:[#allocation2 + $0xf9] sm:$0xff] }
  0x52   : > { %v466_v39 = vmax.f32 %v402_v32, %v434_v37  ;;  %v561_v45 = vld [vmem:[#allocation2 + $0xdc] sm:$0xff]  ;;  %v403_v48 = vmax.f32 %v339_v40, %v371_v42  ;;  %v529_v49 = vmax.f32 %v465_v38, %v497_v36  ;;  %v562_v51 = vld [vmem:[#allocation2 + $0xe4] sm:$0xff]  ;;  %v435_v52 = vld [vmem:[#allocation2 + $0xf2] sm:$0xff]  ;;  %v404_v54 = vmax.f32 %v340_v41, %v372_v47 }
  0x53   : > { %v592_v44 = vmax.f32 %v528_v34, %v560_v30  ;;  %v499_v53 = vld [vmem:[#allocation2 + $0xf3] sm:$0xff]  ;;  %623 = vst.msk [vmem:[#allocation2 + $0xc2] sm:$0xff] %vm196_vm0, %v591_v43  ;;  %v341_v57 = vld [vmem:[#allocation2 + $0x108] sm:$0xff]  ;;  %v500_v2 = vld [vmem:[#allocation2 + $0xfb] sm:$0xff] }
  0x54   : > { %v530_v50 = vmax.f32 %v466_v39, %v498_v46  ;;  %v467_v55 = vmax.f32 %v403_v48, %v435_v52  ;;  %v436_v56 = vld [vmem:[#allocation2 + $0xfa] sm:$0xff]  ;;  %v342_v58 = vld [vmem:[#allocation2 + $0x110] sm:$0xff]  ;;  %v593_v59 = vmax.f32 %v529_v49, %v561_v45  ;;  %v344_v14 = vld [vmem:[#allocation2 + $0x128] sm:$0xff] }
  0x55   : > { %624 = vst.msk [vmem:[#allocation2 + $0xca] sm:$0xff] %vm196_vm0, %v592_v44  ;;  %v563_v61 = vld [vmem:[#allocation2 + $0xf4] sm:$0xff]  ;;  %v468_v62 = vmax.f32 %v404_v54, %v436_v56  ;;  %v373_v63 = vld [vmem:[#allocation2 + $0x109] sm:$0xff]  ;;  %v564_v3 = vld [vmem:[#allocation2 + $0xfc] sm:$0xff] }
  0x56   : > { %v594_v60 = vmax.f32 %v530_v50, %v562_v51  ;;  %v374_v0 = vld [vmem:[#allocation2 + $0x111] sm:$0xff]  ;;  %v531_v1 = vmax.f32 %v467_v55, %v499_v53  ;;  %v405_v4 = vmax.f32 %v341_v57, %v373_v63  ;;  %625 = vst.msk [vmem:[#allocation2 + $0xda] sm:$0xff] %vm196_vm0, %v593_v59  ;;  %v343_v10 = vld [vmem:[#allocation2 + $0x120] sm:$0xff]  ;;  %v376_v16 = vld [vmem:[#allocation2 + $0x129] sm:$0xff] }
  0x57   : > { %v437_v5 = vld [vmem:[#allocation2 + $0x10a] sm:$0xff]  ;;  %v406_v6 = vmax.f32 %v342_v58, %v374_v0  ;;  %v532_v7 = vmax.f32 %v468_v62, %v500_v2  ;;  %v438_v9 = vld [vmem:[#allocation2 + $0x112] sm:$0xff]  ;;  %v375_v15 = vld [vmem:[#allocation2 + $0x121] sm:$0xff]  ;;  %v408_v22 = vmax.f32 %v344_v14, %v376_v16 }
  0x58   : > { %626 = vst.msk [vmem:[#allocation2 + $0xe2] sm:$0xff] %vm196_vm0, %v594_v60  ;;  %v501_v8 = vld [vmem:[#allocation2 + $0x10b] sm:$0xff]  ;;  %v595_v11 = vmax.f32 %v531_v1, %v563_v61  ;;  %v469_v12 = vmax.f32 %v405_v4, %v437_v5  ;;  %v502_v19 = vld [vmem:[#allocation2 + $0x113] sm:$0xff]  ;;  %v407_v21 = vmax.f32 %v343_v10, %v375_v15  ;;  %v439_v25 = vld [vmem:[#allocation2 + $0x122] sm:$0xff] }
  0x59   : > { %v470_v13 = vmax.f32 %v406_v6, %v438_v9  ;;  %v596_v17 = vmax.f32 %v532_v7, %v564_v3  ;;  %v565_v18 = vld [vmem:[#allocation2 + $0x10c] sm:$0xff]  ;;  %v566_v20 = vld [vmem:[#allocation2 + $0x114] sm:$0xff]  ;;  %v503_v26 = vld [vmem:[#allocation2 + $0x123] sm:$0xff] }
  0x5a   : > { %627 = vst.msk [vmem:[#allocation2 + $0xf2] sm:$0xff] %vm196_vm0, %v595_v11  ;;  %v533_v23 = vmax.f32 %v469_v12, %v501_v8  ;;  %v440_v27 = vld [vmem:[#allocation2 + $0x12a] sm:$0xff]  ;;  %v471_v28 = vmax.f32 %v407_v21, %v439_v25  ;;  %v345_v30 = vld [vmem:[#allocation2 + $0x138] sm:$0xff]  ;;  %v346_v31 = vld [vmem:[#allocation2 + $0x140] sm:$0xff] }
  0x5b   : > { %v534_v24 = vmax.f32 %v470_v13, %v502_v19  ;;  %628 = vst.msk [vmem:[#allocation2 + $0xfa] sm:$0xff] %vm196_vm0, %v596_v17  ;;  %v472_v29 = vmax.f32 %v408_v22, %v440_v27  ;;  %v377_v32 = vld [vmem:[#allocation2 + $0x139] sm:$0xff]  ;;  %v567_v35 = vld [vmem:[#allocation2 + $0x124] sm:$0xff]  ;;  %v568_v41 = vld [vmem:[#allocation2 + $0x12c] sm:$0xff] }
  0x5c   : > { %v597_v33 = vmax.f32 %v533_v23, %v565_v18  ;;  %v504_v36 = vld [vmem:[#allocation2 + $0x12b] sm:$0xff]  ;;  %v378_v37 = vld [vmem:[#allocation2 + $0x141] sm:$0xff]  ;;  %v409_v38 = vmax.f32 %v345_v30, %v377_v32  ;;  %v535_v39 = vmax.f32 %v471_v28, %v503_v26  ;;  %v348_v48 = vld [vmem:[#allocation2 + $0x158] sm:$0xff] }
  0x5d   : > { %v598_v34 = vmax.f32 %v534_v24, %v566_v20  ;;  %v536_v40 = vmax.f32 %v472_v29, %v504_v36  ;;  %v441_v42 = vld [vmem:[#allocation2 + $0x13a] sm:$0xff]  ;;  %v410_v44 = vmax.f32 %v346_v31, %v378_v37  ;;  %v442_v46 = vld [vmem:[#allocation2 + $0x142] sm:$0xff]  ;;  %v347_v47 = vld [vmem:[#allocation2 + $0x150] sm:$0xff] }
  0x5e   : > { %v505_v43 = vld [vmem:[#allocation2 + $0x13b] sm:$0xff]  ;;  %629 = vst.msk [vmem:[#allocation2 + $0x10a] sm:$0xff] %vm196_vm0, %v597_v33  ;;  %v473_v45 = vmax.f32 %v409_v38, %v441_v42  ;;  %v599_v49 = vmax.f32 %v535_v39, %v567_v35  ;;  %v379_v53 = vld [vmem:[#allocation2 + $0x151] sm:$0xff]  ;;  %v506_v56 = vld [vmem:[#allocation2 + $0x143] sm:$0xff] }
  0x5f   : > { %630 = vst.msk [vmem:[#allocation2 + $0x112] sm:$0xff] %vm196_vm0, %v598_v34  ;;  %v600_v50 = vmax.f32 %v536_v40, %v568_v41  ;;  %v569_v51 = vld [vmem:[#allocation2 + $0x13c] sm:$0xff]  ;;  %v474_v52 = vmax.f32 %v410_v44, %v442_v46  ;;  %v570_v57 = vld [vmem:[#allocation2 + $0x144] sm:$0xff]  ;;  %v411_v58 = vmax.f32 %v347_v47, %v379_v53  ;;  %v443_v59 = vld [vmem:[#allocation2 + $0x152] sm:$0xff] }
  0x60   : > { %v380_v54 = vld [vmem:[#allocation2 + $0x159] sm:$0xff]  ;;  %v537_v55 = vmax.f32 %v473_v45, %v505_v43  ;;  %631 = vst.msk [vmem:[#allocation2 + $0x122] sm:$0xff] %vm196_vm0, %v599_v49  ;;  %v349_v0 = vld [vmem:[#allocation2 + $0x168] sm:$0xff]  ;;  %v350_v4 = vld [vmem:[#allocation2 + $0x170] sm:$0xff] }
  0x61   : > { %v412_v60 = vmax.f32 %v348_v48, %v380_v54  ;;  %632 = vst.msk [vmem:[#allocation2 + $0x12a] sm:$0xff] %vm196_vm0, %v600_v50  ;;  %v538_v61 = vmax.f32 %v474_v52, %v506_v56  ;;  %v507_v62 = vld [vmem:[#allocation2 + $0x153] sm:$0xff]  ;;  %v475_v2 = vmax.f32 %v411_v58, %v443_v59  ;;  %v381_v5 = vld [vmem:[#allocation2 + $0x169] sm:$0xff]  ;;  %v508_v9 = vld [vmem:[#allocation2 + $0x15b] sm:$0xff] }
  0x62   : > { %v444_v63 = vld [vmem:[#allocation2 + $0x15a] sm:$0xff]  ;;  %v601_v1 = vmax.f32 %v537_v55, %v569_v51  ;;  %v382_v6 = vld [vmem:[#allocation2 + $0x171] sm:$0xff]  ;;  %v413_v10 = vmax.f32 %v349_v0, %v381_v5  ;;  %v352_v21 = vld [vmem:[#allocation2 + $0x188] sm:$0xff] }
  0x63   : > { %v476_v3 = vmax.f32 %v412_v60, %v444_v63  ;;  %v602_v7 = vmax.f32 %v538_v61, %v570_v57  ;;  %v571_v8 = vld [vmem:[#allocation2 + $0x154] sm:$0xff]  ;;  %v445_v11 = vld [vmem:[#allocation2 + $0x16a] sm:$0xff]  ;;  %v414_v12 = vmax.f32 %v350_v4, %v382_v6  ;;  %v539_v13 = vmax.f32 %v475_v2, %v507_v62  ;;  %v572_v15 = vld [vmem:[#allocation2 + $0x15c] sm:$0xff] }
  0x64   : > { %633 = vst.msk [vmem:[#allocation2 + $0x13a] sm:$0xff] %vm196_vm0, %v601_v1  ;;  %v509_v16 = vld [vmem:[#allocation2 + $0x16b] sm:$0xff]  ;;  %v477_v18 = vmax.f32 %v413_v10, %v445_v11  ;;  %v351_v20 = vld [vmem:[#allocation2 + $0x180] sm:$0xff]  ;;  %v510_v26 = vld [vmem:[#allocation2 + $0x173] sm:$0xff] }
  0x65   : > { %v540_v14 = vmax.f32 %v476_v3, %v508_v9  ;;  %v446_v17 = vld [vmem:[#allocation2 + $0x172] sm:$0xff]  ;;  %634 = vst.msk [vmem:[#allocation2 + $0x142] sm:$0xff] %vm196_vm0, %v602_v7  ;;  %v383_v22 = vld [vmem:[#allocation2 + $0x181] sm:$0xff]  ;;  %v603_v23 = vmax.f32 %v539_v13, %v571_v8  ;;  %v384_v27 = vld [vmem:[#allocation2 + $0x189] sm:$0xff] }
  0x66   : > { %v478_v19 = vmax.f32 %v414_v12, %v446_v17  ;;  %v573_v25 = vld [vmem:[#allocation2 + $0x16c] sm:$0xff]  ;;  %v415_v28 = vmax.f32 %v351_v20, %v383_v22  ;;  %v447_v29 = vld [vmem:[#allocation2 + $0x182] sm:$0xff]  ;;  %v541_v30 = vmax.f32 %v477_v18, %v509_v16  ;;  %v574_v32 = vld [vmem:[#allocation2 + $0x174] sm:$0xff]  ;;  %v416_v34 = vmax.f32 %v352_v21, %v384_v27 }
  0x67   : > { %v604_v24 = vmax.f32 %v540_v14, %v572_v15  ;;  %v511_v33 = vld [vmem:[#allocation2 + $0x183] sm:$0xff]  ;;  %v647_v36 = vld [vmem:[#allocation2 + $0x32] sm:$0xff]  ;;  %635 = vst.msk [vmem:[#allocation2 + $0x152] sm:$0xff] %vm196_vm0, %v603_v23  ;;  %v648_v41 = vld [vmem:[#allocation2 + $0x3a] sm:$0xff] }
  0x68   : > { %v542_v31 = vmax.f32 %v478_v19, %v510_v26  ;;  %v448_v35 = vld [vmem:[#allocation2 + $0x18a] sm:$0xff]  ;;  %v479_v37 = vmax.f32 %v415_v28, %v447_v29  ;;  %v353_v39 = vld [vmem:[#allocation2 + $0x198] sm:$0xff]  ;;  %v354_v40 = vld [vmem:[#allocation2 + $0x1a0] sm:$0xff]  ;;  %v605_v42 = vmax.f32 %v541_v30, %v573_v25 }
  0x69   : > { %636 = vst.msk [vmem:[#allocation2 + $0x15a] sm:$0xff] %vm196_vm0, %v604_v24  ;;  %v512_v38 = vld [vmem:[#allocation2 + $0x18b] sm:$0xff]  ;;  %v480_v45 = vmax.f32 %v416_v34, %v448_v35  ;;  %v385_v46 = vld [vmem:[#allocation2 + $0x199] sm:$0xff]  ;;  %v386_v47 = vld [vmem:[#allocation2 + $0x1a1] sm:$0xff] }
  0x6a   : > { %v606_v43 = vmax.f32 %v542_v31, %v574_v32  ;;  %v575_v44 = vld [vmem:[#allocation2 + $0x184] sm:$0xff]  ;;  %v449_v48 = vld [vmem:[#allocation2 + $0x19a] sm:$0xff]  ;;  %v543_v49 = vmax.f32 %v479_v37, %v511_v33  ;;  %v576_v50 = vld [vmem:[#allocation2 + $0x18c] sm:$0xff]  ;;  %v417_v51 = vmax.f32 %v353_v39, %v385_v46  ;;  %v418_v53 = vmax.f32 %v354_v40, %v386_v47  ;;  %637 = vst.msk [vmem:[#allocation2 + $0x16a] sm:$0xff] %vm196_vm0, %v605_v42 }
  0x6b   : > { %v513_v52 = vld [vmem:[#allocation2 + $0x19b] sm:$0xff]  ;;  %v544_v55 = vmax.f32 %v480_v45, %v512_v38  ;;  %v514_v57 = vld [vmem:[#allocation2 + $0x1a3] sm:$0xff]  ;;  %v806_v5 = vld [vmem:[#allocation2 + $0x52] sm:$0xff] }
  0x6c   : > { %v450_v54 = vld [vmem:[#allocation2 + $0x1a2] sm:$0xff]  ;;  %638 = vst.msk [vmem:[#allocation2 + $0x172] sm:$0xff] %vm196_vm0, %v606_v43  ;;  %v607_v59 = vmax.f32 %v543_v49, %v575_v44  ;;  %v481_v60 = vmax.f32 %v417_v51, %v449_v48  ;;  %v676_v63 = vld [vmem:[#allocation2 + $0x1a] sm:$0xff]  ;;  %v805_v0 = vld [vmem:[#allocation2 + $0x4a] sm:$0xff]  ;;  %v713_v17 = vmax.f32 %v648_v41, %v806_v5 }
  0x6d   : > { %v577_v56 = vld [vmem:[#allocation2 + $0x19c] sm:$0xff]  ;;  %v482_v61 = vmax.f32 %v418_v53, %v450_v54  ;;  %v578_v62 = vld [vmem:[#allocation2 + $0x1a4] sm:$0xff]  ;;  %v608_v1 = vmax.f32 %v544_v55, %v576_v50  ;;  %v710_v6 = vmax.f32 %v676_v63, %v647_v36  ;;  %v712_v7 = vmax.f32 %v647_v36, %v805_v0  ;;  %v874_v30 = vld [vmem:[#allocation2 + $0x92] sm:$0xff] }
  0x6e   : > { %v643_v58 = vld [vmem:[#allocation2 + $0x2] sm:$0xff]  ;;  %v644_v3 = vld [vmem:[#allocation2 + $0xa] sm:$0xff]  ;;  %639 = vst.msk [vmem:[#allocation2 + $0x182] sm:$0xff] %vm196_vm0, %v607_v59  ;;  %v545_v8 = vmax.f32 %v481_v60, %v513_v52  ;;  %v872_v21 = vld [vmem:[#allocation2 + $0x7a] sm:$0xff] }
  0x6f   : > { %v708_v2 = vmax.f32 %v643_v58, %v676_v63  ;;  %v677_v4 = vld [vmem:[#allocation2 + $0x22] sm:$0xff]  ;;  %v546_v9 = vmax.f32 %v482_v61, %v514_v57  ;;  %640 = vst.msk [vmem:[#allocation2 + $0x18a] sm:$0xff] %vm196_vm0, %v608_v1  ;;  %v871_v14 = vld [vmem:[#allocation2 + $0x6a] sm:$0xff]  ;;  %v774_v15 = vmax.f32 %v710_v6, %v805_v0  ;;  %v875_v37 = vld [vmem:[#allocation2 + $0x9a] sm:$0xff]  ;;  %v718_v47 = vmax.f32 %v872_v21, %v874_v30 }
  0x70   : > { %v870_v10 = vld [vmem:[#allocation2 + $0x62] sm:$0xff]  ;;  %v709_v11 = vmax.f32 %v644_v3, %v677_v4  ;;  %v711_v12 = vmax.f32 %v677_v4, %v648_v41  ;;  %v609_v18 = vmax.f32 %v545_v8, %v577_v56  ;;  %v777_v26 = vmax.f32 %v713_v17, %v871_v14  ;;  %v876_v38 = vld [vmem:[#allocation2 + $0xaa] sm:$0xff]  ;;  %v877_v43 = vld [vmem:[#allocation2 + $0xb2] sm:$0xff] }
  0x71   : > { %v772_v13 = vmax.f32 %v708_v2, %v647_v36  ;;  %v776_v16 = vmax.f32 %v712_v7, %v870_v10  ;;  %v610_v19 = vmax.f32 %v546_v9, %v578_v62  ;;  %v839_v24 = vmax.f32 %v774_v15, %v870_v10  ;;  %v873_v29 = vld [vmem:[#allocation2 + $0x82] sm:$0xff]  ;;  %v879_v55 = vld [vmem:[#allocation2 + $0xca] sm:$0xff]  ;;  %v880_v1 = vld [vmem:[#allocation2 + $0xda] sm:$0xff] }
  0x72   : > { %v773_v20 = vmax.f32 %v709_v11, %v648_v41  ;;  %v775_v22 = vmax.f32 %v711_v12, %v806_v5  ;;  %641 = vst.msk [vmem:[#allocation2 + $0x19a] sm:$0xff] %vm196_vm0, %v609_v18  ;;  %v714_v31 = vmax.f32 %v805_v0, %v870_v10  ;;  %v715_v32 = vmax.f32 %v806_v5, %v871_v14  ;;  %v2693_v53 = vld [vmem:[#allocation2 + $0xc2] sm:$0xff]  ;;  %v2706_v11 = vld [vmem:[#allocation2 + $0xf2] sm:$0xff]  ;;  %v2709_v17 = vld [vmem:[#allocation2 + $0xfa] sm:$0xff] }
  0x73   : > { %v837_v23 = vmax.f32 %v772_v13, %v805_v0  ;;  %v841_v25 = vmax.f32 %v776_v16, %v872_v21  ;;  %642 = vst.msk [vmem:[#allocation2 + $0x1a2] sm:$0xff] %vm196_vm0, %v610_v19  ;;  %v904_v34 = vmax.f32 %v839_v24, %v872_v21  ;;  %v842_v36 = vmax.f32 %v777_v26, %v873_v29  ;;  %v881_v4 = vld [vmem:[#allocation2 + $0xe2] sm:$0xff] }
  0x74   : > { %v838_v27 = vmax.f32 %v773_v20, %v806_v5  ;;  %v840_v28 = vmax.f32 %v775_v22, %v871_v14  ;;  %v778_v41 = vmax.f32 %v714_v31, %v872_v21  ;;  %v779_v42 = vmax.f32 %v715_v32, %v873_v29 }
  0x75   : > { %v902_v33 = vmax.f32 %v837_v23, %v870_v10  ;;  %v906_v35 = vmax.f32 %v841_v25, %v874_v30  ;;  %936 = vst.msk [vmem:[%s2674_s21 + $0x10] sm:$0xff] %vm196_vm0, %v904_v34  ;;  %v907_v44 = vmax.f32 %v842_v36, %v875_v37  ;;  %968 = vst.msk [vmem:[#allocation2 + $0x4a] sm:$0xff] %vm196_vm0, %v904_v34  ;;  %v885_v34 = vld [vmem:[#allocation2 + $0x112] sm:$0xff] }
  0x76   : > { %v903_v39 = vmax.f32 %v838_v27, %v871_v14  ;;  %v905_v40 = vmax.f32 %v840_v28, %v873_v29  ;;  %v716_v45 = vmax.f32 %v870_v10, %v872_v21  ;;  %v717_v46 = vmax.f32 %v871_v14, %v873_v29 }
  0x77   : > { %934 = vst.msk [vmem:[%s2674_s21] sm:$0xff] %vm196_vm0, %v902_v33  ;;  %966 = vst.msk [vmem:[#allocation2 + $0x32] sm:$0xff] %vm196_vm0, %v902_v33  ;;  %v843_v48 = vmax.f32 %v778_v41, %v874_v30  ;;  %v844_v49 = vmax.f32 %v779_v42, %v875_v37  ;;  %v719_v50 = vmax.f32 %v873_v29, %v875_v37  ;;  %v884_v33 = vld [vmem:[#allocation2 + $0x10a] sm:$0xff] }
  0x78   : > { %938 = vst.msk [vmem:[%s2674_s21 + $0x20] sm:$0xff] %vm196_vm0, %v906_v35  ;;  %970 = vst.msk [vmem:[#allocation2 + $0x62] sm:$0xff] %vm196_vm0, %v906_v35  ;;  %v720_v51 = vmax.f32 %v874_v30, %v876_v38  ;;  %v780_v52 = vmax.f32 %v716_v45, %v874_v30  ;;  %v781_v54 = vmax.f32 %v717_v46, %v875_v37  ;;  %v886_v46 = vld [vmem:[#allocation2 + $0x122] sm:$0xff] }
  0x79   : > { %935 = vst.msk [vmem:[%s2674_s21 + $0x8] sm:$0xff] %vm196_vm0, %v903_v39  ;;  %967 = vst.msk [vmem:[#allocation2 + $0x3a] sm:$0xff] %vm196_vm0, %v903_v39  ;;  %v782_v56 = vmax.f32 %v718_v47, %v876_v38  ;;  %v721_v57 = vmax.f32 %v875_v37, %v877_v43  ;;  %v908_v58 = vmax.f32 %v843_v48, %v876_v38 }
  0x7a   : > { %937 = vst.msk [vmem:[%s2674_s21 + $0x18] sm:$0xff] %vm196_vm0, %v905_v40  ;;  %969 = vst.msk [vmem:[#allocation2 + $0x52] sm:$0xff] %vm196_vm0, %v905_v40  ;;  %v909_v59 = vmax.f32 %v844_v49, %v877_v43  ;;  %v783_v60 = vmax.f32 %v719_v50, %v877_v43  ;;  %v784_v61 = vmax.f32 %v720_v51, %v2693_v53  ;;  %v887_v51 = vld [vmem:[#allocation2 + $0x12a] sm:$0xff] }
  0x7b   : > { %939 = vst.msk [vmem:[%s2674_s21 + $0x28] sm:$0xff] %vm196_vm0, %v907_v44  ;;  %971 = vst.msk [vmem:[#allocation2 + $0x6a] sm:$0xff] %vm196_vm0, %v907_v44  ;;  %v845_v62 = vmax.f32 %v780_v52, %v876_v38  ;;  %v846_v63 = vmax.f32 %v781_v54, %v877_v43  ;;  %v847_v0 = vmax.f32 %v782_v56, %v2693_v53 }
  0x7c   : > { %v785_v2 = vmax.f32 %v721_v57, %v879_v55  ;;  %940 = vst.msk [vmem:[%s2674_s21 + $0x30] sm:$0xff] %vm196_vm0, %v908_v58  ;;  %941 = vst.msk [vmem:[%s2674_s21 + $0x38] sm:$0xff] %vm196_vm0, %v909_v59  ;;  %v848_v3 = vmax.f32 %v783_v60, %v879_v55  ;;  %v849_v5 = vmax.f32 %v784_v61, %v880_v1  ;;  %v889_v61 = vld [vmem:[#allocation2 + $0x142] sm:$0xff] }
  0x7d   : > { %972 = vst.msk [vmem:[#allocation2 + $0x7a] sm:$0xff] %vm196_vm0, %v908_v58  ;;  %973 = vst.msk [vmem:[#allocation2 + $0x82] sm:$0xff] %vm196_vm0, %v909_v59  ;;  %v722_v6 = vmax.f32 %v876_v38, %v2693_v53  ;;  %v723_v7 = vmax.f32 %v877_v43, %v879_v55  ;;  %v910_v8 = vmax.f32 %v845_v62, %v2693_v53  ;;  %v890_v62 = vld [vmem:[#allocation2 + $0x152] sm:$0xff] }
  0x7e   : > { %v911_v9 = vmax.f32 %v846_v63, %v879_v55  ;;  %v912_v10 = vmax.f32 %v847_v0, %v880_v1  ;;  %v850_v12 = vmax.f32 %v785_v2, %v881_v4  ;;  %v998_v13 = vld [vmem:[#allocation2 + $0x30] sm:$0xff]  ;;  %v913_v15 = vmax.f32 %v848_v3, %v881_v4  ;;  %v891_v3 = vld [vmem:[#allocation2 + $0x15a] sm:$0xff] }
  0x7f   : > { %v1030_v14 = vld [vmem:[#allocation2 + $0x31] sm:$0xff]  ;;  %v914_v16 = vmax.f32 %v849_v5, %v2706_v11  ;;  %v786_v18 = vmax.f32 %v722_v6, %v880_v1  ;;  %v787_v19 = vmax.f32 %v723_v7, %v881_v4  ;;  %942 = vst.msk [vmem:[%s2674_s21 + $0x40] sm:$0xff] %vm196_vm0, %v910_v8  ;;  %974 = vst.msk [vmem:[#allocation2 + $0x92] sm:$0xff] %vm196_vm0, %v910_v8 }
  0x80   : > { %v999_v20 = vld [vmem:[#allocation2 + $0x38] sm:$0xff]  ;;  %v1062_v22 = vmax.f32 %v998_v13, %v1030_v14  ;;  %943 = vst.msk [vmem:[%s2674_s21 + $0x48] sm:$0xff] %vm196_vm0, %v911_v9  ;;  %944 = vst.msk [vmem:[%s2674_s21 + $0x50] sm:$0xff] %vm196_vm0, %v912_v10  ;;  %v915_v23 = vmax.f32 %v850_v12, %v2709_v17  ;;  %v724_v24 = vmax.f32 %v2693_v53, %v880_v1  ;;  %v892_v13 = vld [vmem:[#allocation2 + $0x16a] sm:$0xff] }
  0x81   : > { %v1031_v21 = vld [vmem:[#allocation2 + $0x39] sm:$0xff]  ;;  %975 = vst.msk [vmem:[#allocation2 + $0x9a] sm:$0xff] %vm196_vm0, %v911_v9  ;;  %976 = vst.msk [vmem:[#allocation2 + $0xaa] sm:$0xff] %vm196_vm0, %v912_v10  ;;  %v725_v25 = vmax.f32 %v879_v55, %v881_v4  ;;  %v851_v28 = vmax.f32 %v786_v18, %v2706_v11  ;;  %v852_v29 = vmax.f32 %v787_v19, %v2709_v17 }
  0x82   : > { %v1063_v26 = vmax.f32 %v999_v20, %v1031_v21  ;;  %v1094_v27 = vld [vmem:[#allocation2 + $0x32] sm:$0xff]  ;;  %945 = vst.msk [vmem:[%s2674_s21 + $0x58] sm:$0xff] %vm196_vm0, %v913_v15  ;;  %946 = vst.msk [vmem:[%s2674_s21 + $0x60] sm:$0xff] %vm196_vm0, %v914_v16  ;;  %v726_v30 = vmax.f32 %v880_v1, %v2706_v11  ;;  %v1095_v31 = vld [vmem:[#allocation2 + $0x3a] sm:$0xff]  ;;  %v788_v35 = vmax.f32 %v724_v24, %v2706_v11 }
  0x83   : > { %977 = vst.msk [vmem:[#allocation2 + $0xb2] sm:$0xff] %vm196_vm0, %v913_v15  ;;  %978 = vst.msk [vmem:[#allocation2 + $0xc2] sm:$0xff] %vm196_vm0, %v914_v16  ;;  %v1126_v32 = vmax.f32 %v1062_v22, %v1094_v27  ;;  %v789_v36 = vmax.f32 %v725_v25, %v2709_v17  ;;  %v727_v37 = vmax.f32 %v881_v4, %v2709_v17  ;;  %v1158_v39 = vld [vmem:[#allocation2 + $0x33] sm:$0xff]  ;;  %v1159_v43 = vld [vmem:[#allocation2 + $0x3b] sm:$0xff] }
  0x84   : > { %947 = vst.msk [vmem:[%s2674_s21 + $0x68] sm:$0xff] %vm196_vm0, %v915_v23  ;;  %979 = vst.msk [vmem:[#allocation2 + $0xca] sm:$0xff] %vm196_vm0, %v915_v23  ;;  %v1127_v38 = vmax.f32 %v1063_v26, %v1095_v31  ;;  %v916_v40 = vmax.f32 %v851_v28, %v884_v33  ;;  %v917_v41 = vmax.f32 %v852_v29, %v885_v34  ;;  %v1222_v50 = vld [vmem:[#allocation2 + $0x34] sm:$0xff]  ;;  %v1223_v56 = vld [vmem:[#allocation2 + $0x3c] sm:$0xff] }
  0x85   : > { %v790_v42 = vmax.f32 %v726_v30, %v884_v33  ;;  %v1190_v44 = vmax.f32 %v1126_v32, %v1158_v39  ;;  %v853_v45 = vmax.f32 %v788_v35, %v884_v33  ;;  %v854_v47 = vmax.f32 %v789_v36, %v885_v34  ;;  %v888_v53 = vld [vmem:[#allocation2 + $0x13a] sm:$0xff]  ;;  %v893_v15 = vld [vmem:[#allocation2 + $0x172] sm:$0xff]  ;;  %v894_v25 = vld [vmem:[#allocation2 + $0x182] sm:$0xff] }
  0x86   : > { %v791_v48 = vmax.f32 %v727_v37, %v885_v34  ;;  %v1191_v49 = vmax.f32 %v1127_v38, %v1159_v43  ;;  %948 = vst.msk [vmem:[%s2674_s21 + $0x70] sm:$0xff] %vm196_vm0, %v916_v40  ;;  %949 = vst.msk [vmem:[%s2674_s21 + $0x78] sm:$0xff] %vm196_vm0, %v917_v41  ;;  %v728_v54 = vmax.f32 %v2706_v11, %v884_v33  ;;  %v895_v28 = vld [vmem:[#allocation2 + $0x18a] sm:$0xff]  ;;  %v896_v35 = vld [vmem:[#allocation2 + $0x19a] sm:$0xff] }
  0x87   : > { %v855_v52 = vmax.f32 %v790_v42, %v886_v46  ;;  %980 = vst.msk [vmem:[#allocation2 + $0xda] sm:$0xff] %vm196_vm0, %v916_v40  ;;  %981 = vst.msk [vmem:[#allocation2 + $0xe2] sm:$0xff] %vm196_vm0, %v917_v41  ;;  %v729_v55 = vmax.f32 %v2709_v17, %v885_v34  ;;  %v1254_v57 = vmax.f32 %v1190_v44, %v1222_v50  ;;  %v897_v39 = vld [vmem:[#allocation2 + $0x1a2] sm:$0xff]  ;;  %v898_v43 = vld [vmem:[#allocation2 + $0x1b2] sm:$0xff] }
  0x88   : > { %v918_v58 = vmax.f32 %v853_v45, %v886_v46  ;;  %v919_v59 = vmax.f32 %v854_v47, %v887_v51  ;;  %v856_v60 = vmax.f32 %v791_v48, %v887_v51  ;;  %v1255_v63 = vmax.f32 %v1191_v49, %v1223_v56  ;;  %v899_v44 = vld [vmem:[#allocation2 + $0x1ba] sm:$0xff]  ;;  %v900_v49 = vld [vmem:[#allocation2 + $0x1ca] sm:$0xff]  ;;  %v901_v50 = vld [vmem:[#allocation2 + $0x1d2] sm:$0xff] }
  0x89   : > { %v920_v0 = vmax.f32 %v855_v52, %v888_v53  ;;  %v792_v1 = vmax.f32 %v728_v54, %v886_v46  ;;  %v793_v2 = vmax.f32 %v729_v55, %v887_v51  ;;  %1286 = vst.msk [vmem:[#allocation2 + $0x32] sm:$0xff] %vm196_vm0, %v1254_v57  ;;  %v730_v5 = vmax.f32 %v884_v33, %v886_v46  ;;  %v2782_v52 = vld [vmem:[#allocation2 + $0x49] sm:$0xff]  ;;  %v2789_v56 = vld [vmem:[#allocation2 + $0x60] sm:$0xff] }
  0x8a   : > { %950 = vst.msk [vmem:[%s2674_s21 + $0x80] sm:$0xff] %vm196_vm0, %v918_v58  ;;  %951 = vst.msk [vmem:[%s2674_s21 + $0x88] sm:$0xff] %vm196_vm0, %v919_v59  ;;  %v921_v4 = vmax.f32 %v856_v60, %v889_v61  ;;  %v731_v6 = vmax.f32 %v885_v34, %v887_v51  ;;  %v732_v7 = vmax.f32 %v886_v46, %v888_v53  ;;  %v2787_v55 = vld [vmem:[#allocation2 + $0x50] sm:$0xff]  ;;  %v2791_v57 = vld [vmem:[#allocation2 + $0x68] sm:$0xff] }
  0x8b   : > { %982 = vst.msk [vmem:[#allocation2 + $0xf2] sm:$0xff] %vm196_vm0, %v918_v58  ;;  %983 = vst.msk [vmem:[#allocation2 + $0xfa] sm:$0xff] %vm196_vm0, %v919_v59  ;;  %v857_v8 = vmax.f32 %v792_v1, %v888_v53  ;;  %v858_v9 = vmax.f32 %v793_v2, %v889_v61  ;;  %v733_v10 = vmax.f32 %v887_v51, %v889_v61  ;;  %v2780_v51 = vld [vmem:[#allocation2 + $0x48] sm:$0xff]  ;;  %v2793_v58 = vld [vmem:[#allocation2 + $0x78] sm:$0xff] }
  0x8c   : > { %1287 = vst.msk [vmem:[#allocation2 + $0x3a] sm:$0xff] %vm196_vm0, %v1255_v63  ;;  %952 = vst.msk [vmem:[%s2674_s21 + $0x90] sm:$0xff] %vm196_vm0, %v920_v0  ;;  %v734_v11 = vmax.f32 %v888_v53, %v890_v62  ;;  %v794_v12 = vmax.f32 %v730_v5, %v888_v53  ;;  %v795_v14 = vmax.f32 %v731_v6, %v889_v61  ;;  %v2795_v59 = vld [vmem:[#allocation2 + $0x51] sm:$0xff]  ;;  %v2797_v60 = vld [vmem:[#allocation2 + $0x61] sm:$0xff] }
  0x8d   : > { %984 = vst.msk [vmem:[#allocation2 + $0x10a] sm:$0xff] %vm196_vm0, %v920_v0  ;;  %953 = vst.msk [vmem:[%s2674_s21 + $0x98] sm:$0xff] %vm196_vm0, %v921_v4  ;;  %v796_v16 = vmax.f32 %v732_v7, %v890_v62  ;;  %v735_v17 = vmax.f32 %v889_v61, %v891_v3  ;;  %v922_v18 = vmax.f32 %v857_v8, %v890_v62  ;;  %v2799_v61 = vld [vmem:[#allocation2 + $0x69] sm:$0xff]  ;;  %v2803_v1 = vld [vmem:[#allocation2 + $0x80] sm:$0xff] }
  0x8e   : > { %985 = vst.msk [vmem:[#allocation2 + $0x112] sm:$0xff] %vm196_vm0, %v921_v4  ;;  %v923_v19 = vmax.f32 %v858_v9, %v891_v3  ;;  %v797_v20 = vmax.f32 %v733_v10, %v891_v3  ;;  %v798_v21 = vmax.f32 %v734_v11, %v892_v13  ;;  %v859_v22 = vmax.f32 %v794_v12, %v890_v62  ;;  %v2805_v2 = vld [vmem:[#allocation2 + $0x90] sm:$0xff]  ;;  %v2809_v4 = vld [vmem:[#allocation2 + $0xa8] sm:$0xff]  ;;  %v2815_v7 = vld [vmem:[#allocation2 + $0x99] sm:$0xff] }
  0x8f   : > { %v860_v23 = vmax.f32 %v795_v14, %v891_v3  ;;  %v861_v24 = vmax.f32 %v796_v16, %v892_v13  ;;  %v799_v26 = vmax.f32 %v735_v17, %v893_v15  ;;  %954 = vst.msk [vmem:[%s2674_s21 + $0xa0] sm:$0xff] %vm196_vm0, %v922_v18  ;;  %986 = vst.msk [vmem:[#allocation2 + $0x122] sm:$0xff] %vm196_vm0, %v922_v18  ;;  %v2811_v5 = vld [vmem:[#allocation2 + $0x81] sm:$0xff]  ;;  %v2813_v6 = vld [vmem:[#allocation2 + $0x91] sm:$0xff] }
  0x90   : > { %955 = vst.msk [vmem:[%s2674_s21 + $0xa8] sm:$0xff] %vm196_vm0, %v923_v19  ;;  %v862_v27 = vmax.f32 %v797_v20, %v893_v15  ;;  %987 = vst.msk [vmem:[#allocation2 + $0x12a] sm:$0xff] %vm196_vm0, %v923_v19  ;;  %v863_v29 = vmax.f32 %v798_v21, %v894_v25  ;;  %v736_v30 = vmax.f32 %v890_v62, %v892_v13  ;;  %v2801_v62 = vld [vmem:[#allocation2 + $0x79] sm:$0xff]  ;;  %v2817_v8 = vld [vmem:[#allocation2 + $0xa9] sm:$0xff] }
  0x91   : > { %v737_v31 = vmax.f32 %v891_v3, %v893_v15  ;;  %v924_v32 = vmax.f32 %v859_v22, %v892_v13  ;;  %v925_v33 = vmax.f32 %v860_v23, %v893_v15  ;;  %v926_v34 = vmax.f32 %v861_v24, %v894_v25  ;;  %v2807_v3 = vld [vmem:[#allocation2 + $0x98] sm:$0xff]  ;;  %v2819_v11 = vld [vmem:[#allocation2 + $0xb0] sm:$0xff]  ;;  %v2821_v12 = vld [vmem:[#allocation2 + $0xc0] sm:$0xff] }
  0x92   : > { %v864_v36 = vmax.f32 %v799_v26, %v895_v28  ;;  %v927_v37 = vmax.f32 %v862_v27, %v895_v28  ;;  %v928_v38 = vmax.f32 %v863_v29, %v896_v35  ;;  %v800_v40 = vmax.f32 %v736_v30, %v894_v25  ;;  %v2825_v14 = vld [vmem:[#allocation2 + $0xd8] sm:$0xff]  ;;  %v2829_v16 = vld [vmem:[#allocation2 + $0xc1] sm:$0xff]  ;;  %v2831_v17 = vld [vmem:[#allocation2 + $0xc9] sm:$0xff] }
  0x93   : > { %v801_v41 = vmax.f32 %v737_v31, %v895_v28  ;;  %956 = vst.msk [vmem:[%s2674_s21 + $0xb0] sm:$0xff] %vm196_vm0, %v924_v32  ;;  %957 = vst.msk [vmem:[%s2674_s21 + $0xb8] sm:$0xff] %vm196_vm0, %v925_v33  ;;  %v738_v45 = vmax.f32 %v892_v13, %v894_v25  ;;  %v739_v46 = vmax.f32 %v893_v15, %v895_v28  ;;  %v2823_v13 = vld [vmem:[#allocation2 + $0xc8] sm:$0xff]  ;;  %v2827_v15 = vld [vmem:[#allocation2 + $0xb1] sm:$0xff] }
  0x94   : > { %958 = vst.msk [vmem:[%s2674_s21 + $0xc0] sm:$0xff] %vm196_vm0, %v926_v34  ;;  %988 = vst.msk [vmem:[#allocation2 + $0x13a] sm:$0xff] %vm196_vm0, %v924_v32  ;;  %v929_v42 = vmax.f32 %v864_v36, %v897_v39  ;;  %v865_v47 = vmax.f32 %v800_v40, %v896_v35  ;;  %v2833_v18 = vld [vmem:[#allocation2 + $0xd9] sm:$0xff]  ;;  %v2843_v20 = vld [vmem:[#allocation2 + $0xf0] sm:$0xff]  ;;  %v1064_v30 = vmax.f32 %v2780_v51, %v2782_v52 }
  0x95   : > { %989 = vst.msk [vmem:[#allocation2 + $0x142] sm:$0xff] %vm196_vm0, %v925_v33  ;;  %990 = vst.msk [vmem:[#allocation2 + $0x152] sm:$0xff] %vm196_vm0, %v926_v34  ;;  %v866_v48 = vmax.f32 %v801_v41, %v897_v39  ;;  %v802_v53 = vmax.f32 %v738_v45, %v896_v35  ;;  %v803_v54 = vmax.f32 %v739_v46, %v897_v39  ;;  %v2841_v19 = vld [vmem:[#allocation2 + $0xe0] sm:$0xff]  ;;  %v2845_v21 = vld [vmem:[#allocation2 + $0xf8] sm:$0xff] }
  0x96   : > { %959 = vst.msk [vmem:[%s2674_s21 + $0xc8] sm:$0xff] %vm196_vm0, %v927_v37  ;;  %960 = vst.msk [vmem:[%s2674_s21 + $0xd0] sm:$0xff] %vm196_vm0, %v928_v38  ;;  %v930_v63 = vmax.f32 %v865_v47, %v898_v43  ;;  %v2847_v22 = vld [vmem:[#allocation2 + $0x108] sm:$0xff]  ;;  %v2851_v24 = vld [vmem:[#allocation2 + $0xf1] sm:$0xff]  ;;  %v1065_v34 = vmax.f32 %v2787_v55, %v2795_v59  ;;  %v1066_v35 = vmax.f32 %v2789_v56, %v2797_v60 }
  0x97   : > { %991 = vst.msk [vmem:[#allocation2 + $0x15a] sm:$0xff] %vm196_vm0, %v927_v37  ;;  %992 = vst.msk [vmem:[#allocation2 + $0x16a] sm:$0xff] %vm196_vm0, %v928_v38  ;;  %v931_v0 = vmax.f32 %v866_v48, %v899_v44  ;;  %v867_v9 = vmax.f32 %v802_v53, %v898_v43  ;;  %v868_v10 = vmax.f32 %v803_v54, %v899_v44  ;;  %v2849_v23 = vld [vmem:[#allocation2 + $0xe1] sm:$0xff]  ;;  %v2853_v27 = vld [vmem:[#allocation2 + $0x110] sm:$0xff] }
  0x98   : > { %961 = vst.msk [vmem:[%s2674_s21 + $0xd8] sm:$0xff] %vm196_vm0, %v929_v42  ;;  %993 = vst.msk [vmem:[#allocation2 + $0x172] sm:$0xff] %vm196_vm0, %v929_v42  ;;  %v2855_v28 = vld [vmem:[#allocation2 + $0xf9] sm:$0xff]  ;;  %v2857_v29 = vld [vmem:[#allocation2 + $0x109] sm:$0xff]  ;;  %v1067_v36 = vmax.f32 %v2791_v57, %v2799_v61  ;;  %v1068_v37 = vmax.f32 %v2793_v58, %v2801_v62  ;;  %v1069_v41 = vmax.f32 %v2803_v1, %v2811_v5 }
  0x99   : > { %962 = vst.msk [vmem:[%s2674_s21 + $0xe0] sm:$0xff] %vm196_vm0, %v930_v63  ;;  %963 = vst.msk [vmem:[%s2674_s21 + $0xe8] sm:$0xff] %vm196_vm0, %v931_v0  ;;  %v932_v25 = vmax.f32 %v867_v9, %v900_v49  ;;  %v933_v26 = vmax.f32 %v868_v10, %v901_v50  ;;  %v2861_v31 = vld [vmem:[#allocation2 + $0x120] sm:$0xff]  ;;  %v2863_v32 = vld [vmem:[#allocation2 + $0x128] sm:$0xff]  ;;  %v1070_v42 = vmax.f32 %v2805_v2, %v2813_v6 }
  0x9a   : > { %994 = vst.msk [vmem:[#allocation2 + $0x182] sm:$0xff] %vm196_vm0, %v930_v63  ;;  %995 = vst.msk [vmem:[#allocation2 + $0x18a] sm:$0xff] %vm196_vm0, %v931_v0  ;;  %v2865_v33 = vld [vmem:[#allocation2 + $0x111] sm:$0xff]  ;;  %v2883_v39 = vld [vmem:[#allocation2 + $0x121] sm:$0xff]  ;;  %v1071_v43 = vmax.f32 %v2807_v3, %v2815_v7  ;;  %v1072_v44 = vmax.f32 %v2809_v4, %v2817_v8  ;;  %v1073_v49 = vmax.f32 %v2819_v11, %v2827_v15 }
  0x9b   : > { %964 = vst.msk [vmem:[%s2674_s21 + $0xf0] sm:$0xff] %vm196_vm0, %v932_v25  ;;  %996 = vst.msk [vmem:[#allocation2 + $0x19a] sm:$0xff] %vm196_vm0, %v932_v25  ;;  %v2881_v38 = vld [vmem:[#allocation2 + $0x138] sm:$0xff]  ;;  %v2885_v40 = vld [vmem:[#allocation2 + $0x129] sm:$0xff]  ;;  %v1074_v50 = vmax.f32 %v2821_v12, %v2829_v16  ;;  %v1077_v59 = vmax.f32 %v2841_v19, %v2849_v23  ;;  %v3916_v4 = vmax.f32 %v2825_v14, %v2833_v18 }
  0x9c   : > { %965 = vst.msk [vmem:[%s2674_s21 + $0xf8] sm:$0xff] %vm196_vm0, %v933_v26  ;;  %997 = vst.msk [vmem:[#allocation2 + $0x1a2] sm:$0xff] %vm196_vm0, %v933_v26  ;;  %v1096_v45 = vld [vmem:[#allocation2 + $0x4a] sm:$0xff]  ;;  %v2895_v46 = vld [vmem:[#allocation2 + $0x140] sm:$0xff] }
  0x9d   : > { %v2897_v47 = vld [vmem:[#allocation2 + $0x150] sm:$0xff]  ;;  %v2899_v48 = vld [vmem:[#allocation2 + $0x139] sm:$0xff]  ;;  %v1098_v54 = vld [vmem:[#allocation2 + $0x62] sm:$0xff]  ;;  %v2935_v11 = vmax.f32 %v1064_v30, %v1096_v45 }
  0x9e   : > { %v1097_v53 = vld [vmem:[#allocation2 + $0x52] sm:$0xff]  ;;  %v1099_v55 = vld [vmem:[#allocation2 + $0x6a] sm:$0xff]  ;;  %v2911_v57 = vld [vmem:[#allocation2 + $0x141] sm:$0xff]  ;;  %v1084_v16 = vmax.f32 %v2881_v38, %v2899_v48  ;;  %v2945_v6 = vmax.f32 %v1066_v35, %v1098_v54 }
  0x9f   : > { %v2909_v56 = vld [vmem:[#allocation2 + $0x158] sm:$0xff]  ;;  %v1101_v0 = vld [vmem:[#allocation2 + $0x82] sm:$0xff]  ;;  %v2937_v12 = vld [vmem:[#allocation2 + $0x170] sm:$0xff]  ;;  %v2943_v26 = vmax.f32 %v1065_v34, %v1097_v53  ;;  %v2947_v5 = vmax.f32 %v1067_v36, %v1099_v55  ;;  %v1085_v45 = vmax.f32 %v2895_v46, %v2911_v57 }
  0xa0   : > { %v2913_v58 = vld [vmem:[#allocation2 + $0x151] sm:$0xff]  ;;  %v1100_v63 = vld [vmem:[#allocation2 + $0x7a] sm:$0xff]  ;;  %v2923_v1 = vld [vmem:[#allocation2 + $0x168] sm:$0xff]  ;;  %v2959_v34 = vmax.f32 %v1069_v41, %v1101_v0 }
  0xa1   : > { %v2925_v2 = vld [vmem:[#allocation2 + $0x159] sm:$0xff]  ;;  %v2927_v3 = vld [vmem:[#allocation2 + $0x169] sm:$0xff]  ;;  %v2939_v15 = vld [vmem:[#allocation2 + $0x171] sm:$0xff]  ;;  %v1086_v62 = vmax.f32 %v2897_v47, %v2913_v58  ;;  %v2957_v60 = vmax.f32 %v1068_v37, %v1100_v63 }
  0xa2   : > { %v1102_v9 = vld [vmem:[#allocation2 + $0x92] sm:$0xff]  ;;  %v1103_v10 = vld [vmem:[#allocation2 + $0x9a] sm:$0xff]  ;;  %v1104_v19 = vld [vmem:[#allocation2 + $0xaa] sm:$0xff]  ;;  %v1087_v53 = vmax.f32 %v2909_v56, %v2925_v2  ;;  %v1088_v54 = vmax.f32 %v2923_v1, %v2927_v3  ;;  %v1089_v41 = vmax.f32 %v2937_v12, %v2939_v15  ;;  %v3915_v15 = vmax.f32 %v2823_v13, %v2831_v17 }
  0xa3   : > { %v1105_v23 = vld [vmem:[#allocation2 + $0xb2] sm:$0xff]  ;;  %v1106_v25 = vld [vmem:[#allocation2 + $0xc2] sm:$0xff]  ;;  %v1107_v38 = vld [vmem:[#allocation2 + $0xca] sm:$0xff]  ;;  %v2965_v57 = vmax.f32 %v1070_v42, %v1102_v9  ;;  %v2967_v47 = vmax.f32 %v1071_v43, %v1103_v10  ;;  %v2974_v56 = vmax.f32 %v1072_v44, %v1104_v19  ;;  %v3918_v13 = vmax.f32 %v2845_v21, %v2855_v28 }
  0xa4   : > { %v2949_v7 = vld [vmem:[#allocation2 + $0x180] sm:$0xff]  ;;  %v1027_v35 = vld [vmem:[#allocation2 + $0x188] sm:$0xff]  ;;  %v1110_v55 = vld [vmem:[#allocation2 + $0xf2] sm:$0xff]  ;;  %v2976_v1 = vmax.f32 %v1073_v49, %v1105_v23  ;;  %v2978_v42 = vmax.f32 %v1074_v50, %v1106_v25 }
  0xa5   : > { %v2951_v30 = vld [vmem:[#allocation2 + $0x181] sm:$0xff]  ;;  %v1059_v36 = vld [vmem:[#allocation2 + $0x189] sm:$0xff]  ;;  %3913 = vst [vmem:[#allocation3_spill] sm:$0xff] %v2967_v47  ;;  %v1028_v58 = vld [vmem:[#allocation2 + $0x198] sm:$0xff]  ;;  %v2985_v47 = vmax.f32 %v3915_v15, %v1107_v38 }
  0xa6   : > { %v1108_v48 = vld [vmem:[#allocation2 + $0xda] sm:$0xff]  ;;  %v1109_v61 = vld [vmem:[#allocation2 + $0xe2] sm:$0xff]  ;;  %v1112_v63 = vld [vmem:[#allocation2 + $0x10a] sm:$0xff]  ;;  %3914 = vst [vmem:[#allocation4_spill] sm:$0xff] %v2978_v42  ;;  %v1090_v2 = vmax.f32 %v2949_v7, %v2951_v30  ;;  %v1091_v49 = vmax.f32 %v1027_v35, %v1059_v36  ;;  %v3917_v30 = vmax.f32 %v2843_v20, %v2851_v24  ;;  %v3921_v20 = vmax.f32 %v2861_v31, %v2883_v39 }
  0xa7   : > { %v1111_v46 = vld [vmem:[#allocation2 + $0xfa] sm:$0xff]  ;;  %v1113_v0 = vld [vmem:[#allocation2 + $0x112] sm:$0xff]  ;;  %v1114_v51 = vld [vmem:[#allocation2 + $0x122] sm:$0xff]  ;;  %v2990_v8 = vmax.f32 %v3916_v4, %v1108_v48  ;;  %v2992_v44 = vmax.f32 %v1077_v59, %v1109_v61  ;;  %v3919_v61 = vmax.f32 %v2847_v22, %v2857_v29  ;;  %v3920_v48 = vmax.f32 %v2853_v27, %v2865_v33 }
  0xa8   : > { %v1029_v52 = vld [vmem:[#allocation2 + $0x1a0] sm:$0xff]  ;;  %v1115_v3 = vld [vmem:[#allocation2 + $0x12a] sm:$0xff]  ;;  %v1118_v12 = vld [vmem:[#allocation2 + $0x152] sm:$0xff]  ;;  %v2997_v42 = vmax.f32 %v3917_v30, %v1110_v55  ;;  %v3002_v17 = vmax.f32 %v3918_v13, %v1111_v46  ;;  %v3017_v24 = vmax.f32 %v3921_v20, %v1114_v51  ;;  %v3923_v22 = vmax.f32 %v2863_v32, %v2885_v40 }
  0xa9   : > { %v1060_v37 = vld [vmem:[#allocation2 + $0x199] sm:$0xff]  ;;  %v1061_v43 = vld [vmem:[#allocation2 + $0x1a1] sm:$0xff]  ;;  %v1120_v7 = vld [vmem:[#allocation2 + $0x16a] sm:$0xff]  ;;  %v3007_v38 = vmax.f32 %v3919_v61, %v1112_v63  ;;  %v3012_v35 = vmax.f32 %v3920_v48, %v1113_v0  ;;  %v3034_v55 = vmax.f32 %v1086_v62, %v1118_v12 }
  0xaa   : > { %v1116_v9 = vld [vmem:[#allocation2 + $0x13a] sm:$0xff]  ;;  %v1117_v10 = vld [vmem:[#allocation2 + $0x142] sm:$0xff]  ;;  %v1092_v50 = vmax.f32 %v1028_v58, %v1060_v37  ;;  %v1121_v23 = vld [vmem:[#allocation2 + $0x172] sm:$0xff]  ;;  %v1093_v14 = vmax.f32 %v1029_v52, %v1061_v43  ;;  %v3028_v29 = vmax.f32 %v3923_v22, %v1115_v3  ;;  %v3044_v58 = vmax.f32 %v1088_v54, %v1120_v7 }
  0xab   : > { %v1119_v19 = vld [vmem:[#allocation2 + $0x15a] sm:$0xff]  ;;  %v1122_v25 = vld [vmem:[#allocation2 + $0x182] sm:$0xff]  ;;  %v1123_v18 = vld [vmem:[#allocation2 + $0x18a] sm:$0xff]  ;;  %v3030_v27 = vmax.f32 %v1084_v16, %v1116_v9  ;;  %v3032_v33 = vmax.f32 %v1085_v45, %v1117_v10  ;;  %v3046_v37 = vmax.f32 %v1089_v41, %v1121_v23 }
  0xac   : > { %v1124_v59 = vld [vmem:[#allocation2 + $0x19a] sm:$0xff]  ;;  %v3019_v21 = vld [vmem:[#allocation2 + $0x4b] sm:$0xff]  ;;  %v1125_v36 = vld [vmem:[#allocation2 + $0x1a2] sm:$0xff]  ;;  %v3042_v46 = vmax.f32 %v1087_v53, %v1119_v19  ;;  %v3048_v32 = vmax.f32 %v1090_v2, %v1122_v25  ;;  %v3056_v45 = vmax.f32 %v1091_v49, %v1123_v18 }
  0xad   : > { %v3021_v28 = vld [vmem:[#allocation2 + $0x53] sm:$0xff]  ;;  %v3036_v31 = vld [vmem:[#allocation2 + $0x63] sm:$0xff]  ;;  %v3038_v39 = vld [vmem:[#allocation2 + $0x6b] sm:$0xff]  ;;  %v3058_v63 = vmax.f32 %v1092_v50, %v1124_v59  ;;  %v1192_v41 = vmax.f32 %v2935_v11, %v3019_v21  ;;  %v3072_v3 = vmax.f32 %v1093_v14, %v1125_v36 }
  0xae   : > { %v3023_v52 = vld [vmem:[#allocation2 + $0x32] sm:$0xff]  ;;  %v3040_v51 = vld [vmem:[#allocation2 + $0x7b] sm:$0xff]  ;;  %v3050_v40 = vld [vmem:[#allocation2 + $0x83] sm:$0xff]  ;;  %v1193_v43 = vmax.f32 %v2943_v26, %v3021_v28  ;;  %v1194_v15 = vmax.f32 %v2945_v6, %v3036_v31  ;;  %v1195_v4 = vmax.f32 %v2947_v5, %v3038_v39 }
  0xaf   : > { %3922 = vst [vmem:[#allocation5_spill] sm:$0xff] %v3023_v52  ;;  %v3052_v16 = vld [vmem:[#allocation2 + $0x93] sm:$0xff]  ;;  %v3054_v62 = vld [vmem:[#allocation2 + $0x9b] sm:$0xff]  ;;  %v3060_v0 = vld [vmem:[#allocation2 + $0xab] sm:$0xff]  ;;  %v1196_v11 = vmax.f32 %v2957_v60, %v3040_v51  ;;  %v1197_v19 = vmax.f32 %v2959_v34, %v3050_v40 }
  0xb0   : > { %v3062_v53 = vld [vmem:[#allocation2 + $0xb3] sm:$0xff]  ;;  %v3064_v54 = vld [vmem:[#allocation2 + $0xc3] sm:$0xff]  ;;  %v3074_v9 = vld [vmem:[#allocation2 + $0xcb] sm:$0xff]  ;;  %v1198_v7 = vmax.f32 %v2965_v57, %v3052_v16  ;;  %v1200_v5 = vmax.f32 %v2974_v56, %v3060_v0 }
  0xb1   : > { %v3070_v2 = vld [vmem:[#allocation2 + $0x1a] sm:$0xff]  ;;  %v3078_v12 = vld [vmem:[#allocation2 + $0xe3] sm:$0xff]  ;;  %v3090_v50 = vld [vmem:[#allocation2 + $0x10b] sm:$0xff]  ;;  %v1201_v13 = vmax.f32 %v2976_v1, %v3062_v53  ;;  %v1203_v57 = vmax.f32 %v2985_v47, %v3074_v9 }
  0xb2   : > { %3924 = vst [vmem:[#allocation6_spill] sm:$0xff] %v3070_v2  ;;  %v3076_v10 = vld [vmem:[#allocation2 + $0xdb] sm:$0xff]  ;;  %v3086_v26 = vld [vmem:[#allocation2 + $0xf3] sm:$0xff]  ;;  %v3102_v60 = vld [vmem:[#allocation2 + $0x123] sm:$0xff] }
  0xb3   : > { %v3088_v49 = vld [vmem:[#allocation2 + $0xfb] sm:$0xff]  ;;  %v3100_v25 = vld [vmem:[#allocation2 + $0x113] sm:$0xff]  ;;  %v3104_v30 = vld [vmem:[#allocation2 + $0x12b] sm:$0xff] }
  0xb4   : > { %v3925_v6 = vld [vmem:[#allocation3_spill] sm:$0xff]  ;;  %v3926_v34 = vld [vmem:[#allocation4_spill] sm:$0xff]  ;;  %v3118_v61 = vld [vmem:[#allocation2 + $0x153] sm:$0xff] }
  0xb5   : > { %v1199_v23 = vmax.f32 %v3925_v6, %v3054_v62  ;;  %v1202_v14 = vmax.f32 %v3926_v34, %v3064_v54  ;;  %v3114_v59 = vld [vmem:[#allocation2 + $0x13b] sm:$0xff]  ;;  %v3116_v56 = vld [vmem:[#allocation2 + $0x143] sm:$0xff]  ;;  %v3130_v28 = vld [vmem:[#allocation2 + $0x16b] sm:$0xff] }
  0xb6   : > { %v3128_v21 = vld [vmem:[#allocation2 + $0x15b] sm:$0xff]  ;;  %3928 = vst [vmem:[#allocation4_spill] sm:$0xff] %v3130_v28  ;;  %v3132_v36 = vld [vmem:[#allocation2 + $0x173] sm:$0xff]  ;;  %v3142_v40 = vld [vmem:[#allocation2 + $0x183] sm:$0xff] }
  0xb7   : > { %3927 = vst [vmem:[#allocation3_spill] sm:$0xff] %v3128_v21  ;;  %v1224_v54 = vld [vmem:[#allocation2 + $0x4c] sm:$0xff]  ;;  %v1225_v9 = vld [vmem:[#allocation2 + $0x54] sm:$0xff]  ;;  %v1226_v6 = vld [vmem:[#allocation2 + $0x64] sm:$0xff]  ;;  %v1217_v53 = vmax.f32 %v3046_v37, %v3132_v36 }
  0xb8   : > { %v3152_v34 = vld [vmem:[#allocation2 + $0x18b] sm:$0xff]  ;;  %v1228_v39 = vld [vmem:[#allocation2 + $0x7c] sm:$0xff]  ;;  %v1256_v31 = vmax.f32 %v1192_v41, %v1224_v54  ;;  %v1257_v22 = vmax.f32 %v1193_v43, %v1225_v9  ;;  %v1258_v62 = vmax.f32 %v1194_v15, %v1226_v6  ;;  %v1230_v20 = vld [vmem:[#allocation2 + $0x94] sm:$0xff] }
  0xb9   : > { %v1227_v51 = vld [vmem:[#allocation2 + $0x6c] sm:$0xff]  ;;  %v1229_v16 = vld [vmem:[#allocation2 + $0x84] sm:$0xff]  ;;  %v3156_v47 = vld [vmem:[#allocation2 + $0x3a] sm:$0xff]  ;;  %v1260_v2 = vmax.f32 %v1196_v11, %v1228_v39  ;;  %v1262_v9 = vmax.f32 %v1198_v7, %v1230_v20 }
  0xba   : > { %v3158_v0 = vld [vmem:[#allocation2 + $0x19b] sm:$0xff]  ;;  %v1232_v48 = vld [vmem:[#allocation2 + $0xac] sm:$0xff]  ;;  %v1259_v52 = vmax.f32 %v1195_v4, %v1227_v51  ;;  %v1261_v21 = vmax.f32 %v1197_v19, %v1229_v16  ;;  %v3162_v18 = vld [vmem:[#allocation2 + $0x1a3] sm:$0xff]  ;;  %1288 = vst.msk [vmem:[#allocation2 + $0x4a] sm:$0xff] %vm196_vm0, %v1256_v31  ;;  %v1219_v4 = vmax.f32 %v3056_v45, %v3152_v34  ;;  %v3934_v31 = vmax.f32 %v3012_v35, %v3100_v25 }
  0xbb   : > { %v1231_v1 = vld [vmem:[#allocation2 + $0x9c] sm:$0xff]  ;;  %v1233_v43 = vld [vmem:[#allocation2 + $0xb4] sm:$0xff]  ;;  %v1234_v15 = vld [vmem:[#allocation2 + $0xc4] sm:$0xff]  ;;  %v1264_v28 = vmax.f32 %v1200_v5, %v1232_v48  ;;  %1289 = vst.msk [vmem:[#allocation2 + $0x52] sm:$0xff] %vm196_vm0, %v1257_v22  ;;  %v1220_v5 = vmax.f32 %v3058_v63, %v3158_v0  ;;  %v3937_v35 = vmax.f32 %v3030_v27, %v3114_v59  ;;  %v3939_v27 = vmax.f32 %v3034_v55, %v3118_v61 }
  0xbc   : > { %v1235_v54 = vld [vmem:[#allocation2 + $0xcc] sm:$0xff]  ;;  %v1263_v6 = vmax.f32 %v1199_v23, %v1231_v1  ;;  %1290 = vst.msk [vmem:[#allocation2 + $0x62] sm:$0xff] %vm196_vm0, %v1258_v62  ;;  %v1236_v11 = vld [vmem:[#allocation2 + $0xdc] sm:$0xff]  ;;  %v1237_v19 = vld [vmem:[#allocation2 + $0xe4] sm:$0xff]  ;;  %v1265_v51 = vmax.f32 %v1201_v13, %v1233_v43  ;;  %v1266_v16 = vmax.f32 %v1202_v14, %v1234_v15  ;;  %v3929_v13 = vmax.f32 %v2990_v8, %v3076_v10 }
  0xbd   : > { %v1238_v39 = vld [vmem:[#allocation2 + $0xf4] sm:$0xff]  ;;  %v1267_v41 = vmax.f32 %v1203_v57, %v1235_v54  ;;  %1291 = vst.msk [vmem:[#allocation2 + $0x6a] sm:$0xff] %vm196_vm0, %v1259_v52  ;;  %1292 = vst.msk [vmem:[#allocation2 + $0x7a] sm:$0xff] %vm196_vm0, %v1260_v2  ;;  %v3174_v7 = vld [vmem:[#allocation2 + $0x2] sm:$0xff]  ;;  %v3930_v52 = vmax.f32 %v2992_v44, %v3078_v12  ;;  %v3931_v57 = vmax.f32 %v2997_v42, %v3086_v26 }
  0xbe   : > { %1293 = vst.msk [vmem:[#allocation2 + $0x82] sm:$0xff] %vm196_vm0, %v1261_v21  ;;  %v3176_v23 = vld [vmem:[#allocation2 + $0x22] sm:$0xff]  ;;  %v1240_v48 = vld [vmem:[#allocation2 + $0x10c] sm:$0xff]  ;;  %v1241_v1 = vld [vmem:[#allocation2 + $0x114] sm:$0xff]  ;;  %v1268_v14 = vmax.f32 %v3929_v13, %v1236_v11  ;;  %v1221_v8 = vmax.f32 %v3072_v3, %v3162_v18  ;;  %v3932_v44 = vmax.f32 %v3002_v17, %v3088_v49  ;;  %v3933_v42 = vmax.f32 %v3007_v38, %v3090_v50 }
  0xbf   : > { %v1239_v45 = vld [vmem:[#allocation2 + $0xfc] sm:$0xff]  ;;  %v1269_v2 = vmax.f32 %v3930_v52, %v1237_v19  ;;  %v1270_v20 = vmax.f32 %v3931_v57, %v1238_v39  ;;  %1294 = vst.msk [vmem:[#allocation2 + $0x92] sm:$0xff] %vm196_vm0, %v1262_v9  ;;  %1295 = vst.msk [vmem:[#allocation2 + $0x9a] sm:$0xff] %vm196_vm0, %v1263_v6  ;;  %v3192_v63 = vld [vmem:[#allocation2 + $0xa] sm:$0xff]  ;;  %v3935_v17 = vmax.f32 %v3017_v24, %v3102_v60 }
  0xc0   : > { %1296 = vst.msk [vmem:[#allocation2 + $0xaa] sm:$0xff] %vm196_vm0, %v1264_v28  ;;  %v1242_v10 = vld [vmem:[#allocation2 + $0x124] sm:$0xff]  ;;  %v1243_v21 = vld [vmem:[#allocation2 + $0x12c] sm:$0xff]  ;;  %v1244_v22 = vld [vmem:[#allocation2 + $0x13c] sm:$0xff]  ;;  %v1271_v12 = vmax.f32 %v3932_v44, %v1239_v45  ;;  %v1272_v26 = vmax.f32 %v3933_v42, %v1240_v48  ;;  %v1273_v28 = vmax.f32 %v3934_v31, %v1241_v1  ;;  %v3936_v38 = vmax.f32 %v3028_v29, %v3104_v30 }
  0xc1   : > { %1297 = vst.msk [vmem:[#allocation2 + $0xb2] sm:$0xff] %vm196_vm0, %v1265_v51  ;;  %1298 = vst.msk [vmem:[#allocation2 + $0xc2] sm:$0xff] %vm196_vm0, %v1266_v16  ;;  %v1245_v3 = vld [vmem:[#allocation2 + $0x144] sm:$0xff]  ;;  %v1246_v18 = vld [vmem:[#allocation2 + $0x154] sm:$0xff]  ;;  %v1274_v49 = vmax.f32 %v3935_v17, %v1242_v10  ;;  %v1276_v25 = vmax.f32 %v3937_v35, %v1244_v22  ;;  %v1385_v0 = vmax.f32 %v3176_v23, %v3156_v47 }
  0xc2   : > { %1299 = vst.msk [vmem:[#allocation2 + $0xca] sm:$0xff] %vm196_vm0, %v1267_v41  ;;  %v1247_v62 = vld [vmem:[#allocation2 + $0x15c] sm:$0xff]  ;;  %v1275_v50 = vmax.f32 %v3936_v38, %v1243_v21  ;;  %1300 = vst.msk [vmem:[#allocation2 + $0xda] sm:$0xff] %vm196_vm0, %v1268_v14  ;;  %v1248_v34 = vld [vmem:[#allocation2 + $0x16c] sm:$0xff]  ;;  %v3938_v29 = vmax.f32 %v3032_v33, %v3116_v56  ;;  %v1278_v59 = vmax.f32 %v3939_v27, %v1246_v18 }
  0xc3   : > { %1301 = vst.msk [vmem:[#allocation2 + $0xe2] sm:$0xff] %vm196_vm0, %v1269_v2  ;;  %1302 = vst.msk [vmem:[#allocation2 + $0xf2] sm:$0xff] %vm196_vm0, %v1270_v20  ;;  %v1249_v24 = vld [vmem:[#allocation2 + $0x174] sm:$0xff]  ;;  %v1250_v60 = vld [vmem:[#allocation2 + $0x184] sm:$0xff] }
  0xc4   : > { %v1277_v30 = vmax.f32 %v3938_v29, %v1245_v3  ;;  %v3940_v41 = vld [vmem:[#allocation3_spill] sm:$0xff]  ;;  %1303 = vst.msk [vmem:[#allocation2 + $0xfa] sm:$0xff] %vm196_vm0, %v1271_v12  ;;  %1304 = vst.msk [vmem:[#allocation2 + $0x10a] sm:$0xff] %vm196_vm0, %v1272_v26  ;;  %v1251_v54 = vld [vmem:[#allocation2 + $0x18c] sm:$0xff]  ;;  %v1281_v55 = vmax.f32 %v1217_v53, %v1249_v24 }
  0xc5   : > { %v3941_v43 = vmax.f32 %v3042_v46, %v3940_v41  ;;  %1305 = vst.msk [vmem:[#allocation2 + $0x112] sm:$0xff] %vm196_vm0, %v1273_v28  ;;  %v1252_v9 = vld [vmem:[#allocation2 + $0x19c] sm:$0xff]  ;;  %v1253_v6 = vld [vmem:[#allocation2 + $0x1a4] sm:$0xff]  ;;  %v3944_v46 = vmax.f32 %v3048_v32, %v3142_v40  ;;  %1306 = vst.msk [vmem:[#allocation2 + $0x122] sm:$0xff] %vm196_vm0, %v1274_v49  ;;  %v1283_v51 = vmax.f32 %v1219_v4, %v1251_v54 }
  0xc6   : > { %v3942_v33 = vld [vmem:[#allocation4_spill] sm:$0xff]  ;;  %1307 = vst.msk [vmem:[#allocation2 + $0x12a] sm:$0xff] %vm196_vm0, %v1275_v50  ;;  %1308 = vst.msk [vmem:[#allocation2 + $0x13a] sm:$0xff] %vm196_vm0, %v1276_v25  ;;  %v3945_v19 = vld [vmem:[#allocation6_spill] sm:$0xff]  ;;  %v1285_v16 = vmax.f32 %v1221_v8, %v1253_v6  ;;  %v1383_v40 = vmax.f32 %v3192_v63, %v3176_v23 }
  0xc7   : > { %v1279_v15 = vmax.f32 %v3941_v43, %v1247_v62  ;;  %v3943_v56 = vmax.f32 %v3044_v58, %v3942_v33  ;;  %v1282_v61 = vmax.f32 %v3944_v46, %v1250_v60  ;;  %v1382_v39 = vmax.f32 %v3174_v7, %v3945_v19  ;;  %1309 = vst.msk [vmem:[#allocation2 + $0x142] sm:$0xff] %vm196_vm0, %v1277_v30  ;;  %v1324_v37 = vld [vmem:[#allocation2 + $0x4a] sm:$0xff]  ;;  %v1325_v32 = vld [vmem:[#allocation2 + $0x52] sm:$0xff]  ;;  %v1542_v4 = vld [vmem:[#allocation2 + $0x62] sm:$0xff] }
  0xc8   : > { %v1284_v58 = vmax.f32 %v1220_v5, %v1252_v9  ;;  %1310 = vst.msk [vmem:[#allocation2 + $0x152] sm:$0xff] %vm196_vm0, %v1278_v59  ;;  %v1414_v36 = vld [vmem:[#allocation2 + $0x32] sm:$0xff]  ;;  %1313 = vst.msk [vmem:[#allocation2 + $0x172] sm:$0xff] %vm196_vm0, %v1281_v55  ;;  %v1415_v7 = vld [vmem:[#allocation2 + $0x3a] sm:$0xff]  ;;  %v1449_v13 = vmax.f32 %v1385_v0, %v1325_v32  ;;  %v1387_v52 = vmax.f32 %v3156_v47, %v1325_v32 }
  0xc9   : > { %v1280_v11 = vmax.f32 %v3943_v56, %v1248_v34  ;;  %1311 = vst.msk [vmem:[#allocation2 + $0x15a] sm:$0xff] %vm196_vm0, %v1279_v15  ;;  %1314 = vst.msk [vmem:[#allocation2 + $0x182] sm:$0xff] %vm196_vm0, %v1282_v61  ;;  %v1446_v53 = vmax.f32 %v1382_v39, %v1414_v36  ;;  %v1543_v5 = vld [vmem:[#allocation2 + $0x6a] sm:$0xff]  ;;  %v1447_v23 = vmax.f32 %v1383_v40, %v1415_v7  ;;  %v1544_v8 = vld [vmem:[#allocation2 + $0x7a] sm:$0xff] }
  0xca   : > { %v3946_v45 = vld [vmem:[#allocation5_spill] sm:$0xff]  ;;  %1315 = vst.msk [vmem:[#allocation2 + $0x18a] sm:$0xff] %vm196_vm0, %v1283_v51  ;;  %1316 = vst.msk [vmem:[#allocation2 + $0x19a] sm:$0xff] %vm196_vm0, %v1284_v58  ;;  %v1388_v2 = vmax.f32 %v1324_v37, %v1542_v4  ;;  %v1389_v57 = vmax.f32 %v1325_v32, %v1543_v5  ;;  %v1513_v10 = vmax.f32 %v1449_v13, %v1543_v5  ;;  %v1545_v21 = vld [vmem:[#allocation2 + $0x82] sm:$0xff] }
  0xcb   : > { %1312 = vst.msk [vmem:[#allocation2 + $0x16a] sm:$0xff] %vm196_vm0, %v1280_v11  ;;  %v3947_v48 = vmax.f32 %v3945_v19, %v3946_v45  ;;  %v1386_v14 = vmax.f32 %v3946_v45, %v1324_v37  ;;  %1317 = vst.msk [vmem:[#allocation2 + $0x1a2] sm:$0xff] %vm196_vm0, %v1285_v16  ;;  %v1510_v20 = vmax.f32 %v1446_v53, %v1324_v37  ;;  %v1546_v12 = vld [vmem:[#allocation2 + $0x92] sm:$0xff]  ;;  %v1547_v62 = vld [vmem:[#allocation2 + $0x9a] sm:$0xff] }
  0xcc   : > { %v1511_v44 = vmax.f32 %v1447_v23, %v1325_v32  ;;  %v1451_v42 = vmax.f32 %v1387_v52, %v1543_v5  ;;  %v1452_v26 = vmax.f32 %v1388_v2, %v1544_v8  ;;  %v1453_v47 = vmax.f32 %v1389_v57, %v1545_v21  ;;  %v1548_v50 = vld [vmem:[#allocation2 + $0xaa] sm:$0xff]  ;;  %v1549_v0 = vld [vmem:[#allocation2 + $0xb2] sm:$0xff]  ;;  %v3279_v24 = vld [vmem:[#allocation2 + $0xc2] sm:$0xff] }
  0xcd   : > { %v1448_v1 = vmax.f32 %v3947_v48, %v1324_v37  ;;  %v1450_v22 = vmax.f32 %v1386_v14, %v1542_v4  ;;  %v1574_v31 = vmax.f32 %v1510_v20, %v1542_v4  ;;  %v1577_v3 = vmax.f32 %v1513_v10, %v1545_v21  ;;  %v3281_v29 = vld [vmem:[#allocation2 + $0xca] sm:$0xff]  ;;  %v3301_v39 = vld [vmem:[#allocation2 + $0xda] sm:$0xff]  ;;  %v3303_v51 = vld [vmem:[#allocation2 + $0xe2] sm:$0xff] }
  0xce   : > { %v1575_v17 = vmax.f32 %v1511_v44, %v1543_v5  ;;  %v1515_v49 = vmax.f32 %v1451_v42, %v1545_v21  ;;  %v1516_v38 = vmax.f32 %v1452_v26, %v1546_v12  ;;  %v1517_v35 = vmax.f32 %v1453_v47, %v1547_v62  ;;  %v3316_v45 = vld [vmem:[#allocation2 + $0xfa] sm:$0xff]  ;;  %v3321_v52 = vld [vmem:[#allocation2 + $0x10a] sm:$0xff]  ;;  %v3334_v10 = vld [vmem:[#allocation2 + $0x112] sm:$0xff] }
  0xcf   : > { %v1512_v63 = vmax.f32 %v1448_v1, %v1542_v4  ;;  %v1514_v18 = vmax.f32 %v1450_v22, %v1544_v8  ;;  %1606 = vst.msk [vmem:[%s3268_s24] sm:$0xff] %vm196_vm0, %v1574_v31  ;;  %1638 = vst.msk [vmem:[#allocation2 + $0x32] sm:$0xff] %vm196_vm0, %v1574_v31  ;;  %v1390_v34 = vmax.f32 %v1542_v4, %v1544_v8 }
  0xd0   : > { %1609 = vst.msk [vmem:[%s3268_s24 + $0x18] sm:$0xff] %vm196_vm0, %v1577_v3  ;;  %1641 = vst.msk [vmem:[#allocation2 + $0x52] sm:$0xff] %vm196_vm0, %v1577_v3  ;;  %v1391_v60 = vmax.f32 %v1543_v5, %v1545_v21  ;;  %v1392_v30 = vmax.f32 %v1544_v8, %v1546_v12  ;;  %v1579_v27 = vmax.f32 %v1515_v49, %v1547_v62  ;;  %v3314_v5 = vld [vmem:[#allocation2 + $0xf2] sm:$0xff] }
  0xd1   : > { %v1576_v28 = vmax.f32 %v1512_v63, %v1544_v8  ;;  %v1578_v25 = vmax.f32 %v1514_v18, %v1546_v12  ;;  %1607 = vst.msk [vmem:[%s3268_s24 + $0x8] sm:$0xff] %vm196_vm0, %v1575_v17  ;;  %1639 = vst.msk [vmem:[#allocation2 + $0x3a] sm:$0xff] %vm196_vm0, %v1575_v17  ;;  %v1580_v59 = vmax.f32 %v1516_v38, %v1548_v50 }
  0xd2   : > { %v1581_v41 = vmax.f32 %v1517_v35, %v1549_v0  ;;  %v1393_v43 = vmax.f32 %v1545_v21, %v1547_v62  ;;  %v1454_v15 = vmax.f32 %v1390_v34, %v1546_v12  ;;  %v1455_v54 = vmax.f32 %v1391_v60, %v1547_v62  ;;  %1611 = vst.msk [vmem:[%s3268_s24 + $0x28] sm:$0xff] %vm196_vm0, %v1579_v27 }
  0xd3   : > { %1608 = vst.msk [vmem:[%s3268_s24 + $0x10] sm:$0xff] %vm196_vm0, %v1576_v28  ;;  %1640 = vst.msk [vmem:[#allocation2 + $0x4a] sm:$0xff] %vm196_vm0, %v1576_v28  ;;  %v1456_v9 = vmax.f32 %v1392_v30, %v1548_v50  ;;  %v1394_v6 = vmax.f32 %v1546_v12, %v1548_v50  ;;  %v1395_v56 = vmax.f32 %v1547_v62, %v1549_v0 }
  0xd4   : > { %1610 = vst.msk [vmem:[%s3268_s24 + $0x20] sm:$0xff] %vm196_vm0, %v1578_v25  ;;  %1642 = vst.msk [vmem:[#allocation2 + $0x62] sm:$0xff] %vm196_vm0, %v1578_v25  ;;  %v1457_v33 = vmax.f32 %v1393_v43, %v1549_v0  ;;  %v1396_v11 = vmax.f32 %v1548_v50, %v3279_v24  ;;  %v1397_v55 = vmax.f32 %v1549_v0, %v3281_v29 }
  0xd5   : > { %1612 = vst.msk [vmem:[%s3268_s24 + $0x30] sm:$0xff] %vm196_vm0, %v1580_v59  ;;  %1613 = vst.msk [vmem:[%s3268_s24 + $0x38] sm:$0xff] %vm196_vm0, %v1581_v41  ;;  %v1518_v46 = vmax.f32 %v1454_v15, %v1548_v50  ;;  %v1519_v61 = vmax.f32 %v1455_v54, %v1549_v0  ;;  %v1520_v19 = vmax.f32 %v1456_v9, %v3279_v24 }
  0xd6   : > { %1643 = vst.msk [vmem:[#allocation2 + $0x6a] sm:$0xff] %vm196_vm0, %v1579_v27  ;;  %1644 = vst.msk [vmem:[#allocation2 + $0x7a] sm:$0xff] %vm196_vm0, %v1580_v59  ;;  %v1458_v58 = vmax.f32 %v1394_v6, %v3279_v24  ;;  %v1521_v16 = vmax.f32 %v1457_v33, %v3281_v29  ;;  %v1459_v37 = vmax.f32 %v1395_v56, %v3281_v29  ;;  %v1670_v48 = vld [vmem:[#allocation2 + $0x30] sm:$0xff] }
  0xd7   : > { %1645 = vst.msk [vmem:[#allocation2 + $0x82] sm:$0xff] %vm196_vm0, %v1581_v41  ;;  %v1460_v32 = vmax.f32 %v1396_v11, %v3301_v39  ;;  %v1461_v36 = vmax.f32 %v1397_v55, %v3303_v51  ;;  %v1582_v40 = vmax.f32 %v1518_v46, %v3279_v24  ;;  %v1583_v53 = vmax.f32 %v1519_v61, %v3281_v29  ;;  %v1702_v1 = vld [vmem:[#allocation2 + $0x31] sm:$0xff]  ;;  %v3369_v41 = vld [vmem:[#allocation2 + $0x122] sm:$0xff] }
  0xd8   : > { %v1584_v4 = vmax.f32 %v1520_v19, %v3301_v39  ;;  %v1522_v7 = vmax.f32 %v1458_v58, %v3301_v39  ;;  %v1585_v13 = vmax.f32 %v1521_v16, %v3303_v51  ;;  %v1523_v14 = vmax.f32 %v1459_v37, %v3303_v51  ;;  %v1671_v57 = vld [vmem:[#allocation2 + $0x38] sm:$0xff] }
  0xd9   : > { %v1524_v23 = vmax.f32 %v1460_v32, %v3314_v5  ;;  %v1525_v2 = vmax.f32 %v1461_v36, %v3316_v45  ;;  %v1703_v20 = vld [vmem:[#allocation2 + $0x39] sm:$0xff]  ;;  %v1734_v63 = vmax.f32 %v1670_v48, %v1702_v1  ;;  %1614 = vst.msk [vmem:[%s3268_s24 + $0x40] sm:$0xff] %vm196_vm0, %v1582_v40  ;;  %1615 = vst.msk [vmem:[%s3268_s24 + $0x48] sm:$0xff] %vm196_vm0, %v1583_v53 }
  0xda   : > { %1616 = vst.msk [vmem:[%s3268_s24 + $0x50] sm:$0xff] %vm196_vm0, %v1584_v4  ;;  %v1586_v8 = vmax.f32 %v1522_v7, %v3314_v5  ;;  %1646 = vst.msk [vmem:[#allocation2 + $0x92] sm:$0xff] %vm196_vm0, %v1582_v40  ;;  %v1398_v21 = vmax.f32 %v3279_v24, %v3301_v39  ;;  %v1399_v22 = vmax.f32 %v3281_v29, %v3303_v51  ;;  %v1766_v12 = vld [vmem:[#allocation2 + $0x32] sm:$0xff]  ;;  %v1767_v31 = vld [vmem:[#allocation2 + $0x3a] sm:$0xff] }
  0xdb   : > { %1647 = vst.msk [vmem:[#allocation2 + $0x9a] sm:$0xff] %vm196_vm0, %v1583_v53  ;;  %1648 = vst.msk [vmem:[#allocation2 + $0xaa] sm:$0xff] %vm196_vm0, %v1584_v4  ;;  %v1735_v44 = vmax.f32 %v1671_v57, %v1703_v20  ;;  %v1587_v42 = vmax.f32 %v1523_v14, %v3316_v45  ;;  %v1588_v26 = vmax.f32 %v1524_v23, %v3321_v52  ;;  %v1672_v3 = vld [vmem:[#allocation2 + $0x48] sm:$0xff]  ;;  %v1673_v18 = vld [vmem:[#allocation2 + $0x50] sm:$0xff] }
  0xdc   : > { %1617 = vst.msk [vmem:[%s3268_s24 + $0x58] sm:$0xff] %vm196_vm0, %v1585_v13  ;;  %v1589_v47 = vmax.f32 %v1525_v2, %v3334_v10  ;;  %1649 = vst.msk [vmem:[#allocation2 + $0xb2] sm:$0xff] %vm196_vm0, %v1585_v13  ;;  %v1798_v28 = vmax.f32 %v1734_v63, %v1766_v12  ;;  %v1462_v62 = vmax.f32 %v1398_v21, %v3314_v5  ;;  %v1830_v50 = vld [vmem:[#allocation2 + $0x33] sm:$0xff]  ;;  %v1704_v35 = vld [vmem:[#allocation2 + $0x49] sm:$0xff] }
  0xdd   : > { %1618 = vst.msk [vmem:[%s3268_s24 + $0x60] sm:$0xff] %vm196_vm0, %v1586_v8  ;;  %1650 = vst.msk [vmem:[#allocation2 + $0xc2] sm:$0xff] %vm196_vm0, %v1586_v8  ;;  %v1463_v17 = vmax.f32 %v1399_v22, %v3316_v45  ;;  %v1400_v49 = vmax.f32 %v3301_v39, %v3314_v5  ;;  %v1799_v38 = vmax.f32 %v1735_v44, %v1767_v31  ;;  %v1705_v25 = vld [vmem:[#allocation2 + $0x51] sm:$0xff]  ;;  %v1831_v60 = vld [vmem:[#allocation2 + $0x3b] sm:$0xff] }
  0xde   : > { %1619 = vst.msk [vmem:[%s3268_s24 + $0x68] sm:$0xff] %vm196_vm0, %v1587_v42  ;;  %1620 = vst.msk [vmem:[%s3268_s24 + $0x70] sm:$0xff] %vm196_vm0, %v1588_v26  ;;  %v1401_v0 = vmax.f32 %v3303_v51, %v3316_v45  ;;  %v1402_v34 = vmax.f32 %v3314_v5, %v3321_v52  ;;  %v1403_v24 = vmax.f32 %v3316_v45, %v3334_v10  ;;  %v1894_v15 = vld [vmem:[#allocation2 + $0x34] sm:$0xff]  ;;  %v1768_v54 = vld [vmem:[#allocation2 + $0x4a] sm:$0xff] }
  0xdf   : > { %1621 = vst.msk [vmem:[%s3268_s24 + $0x78] sm:$0xff] %vm196_vm0, %v1589_v47  ;;  %1651 = vst.msk [vmem:[#allocation2 + $0xca] sm:$0xff] %vm196_vm0, %v1587_v42  ;;  %v1862_v29 = vmax.f32 %v1798_v28, %v1830_v50  ;;  %v1736_v30 = vmax.f32 %v1672_v3, %v1704_v35  ;;  %v1737_v27 = vmax.f32 %v1673_v18, %v1705_v25  ;;  %v1769_v9 = vld [vmem:[#allocation2 + $0x52] sm:$0xff]  ;;  %v1895_v11 = vld [vmem:[#allocation2 + $0x3c] sm:$0xff] }
  0xe0   : > { %1652 = vst.msk [vmem:[#allocation2 + $0xda] sm:$0xff] %vm196_vm0, %v1588_v26  ;;  %1653 = vst.msk [vmem:[#allocation2 + $0xe2] sm:$0xff] %vm196_vm0, %v1589_v47  ;;  %v1526_v59 = vmax.f32 %v1462_v62, %v3321_v52  ;;  %v1863_v43 = vmax.f32 %v1799_v38, %v1831_v60  ;;  %v1527_v6 = vmax.f32 %v1463_v17, %v3334_v10  ;;  %v1559_v39 = vld [vmem:[#allocation2 + $0x12a] sm:$0xff]  ;;  %v1833_v16 = vld [vmem:[#allocation2 + $0x53] sm:$0xff] }
  0xe1   : > { %v1464_v33 = vmax.f32 %v1400_v49, %v3321_v52  ;;  %v1465_v56 = vmax.f32 %v1401_v0, %v3334_v10  ;;  %v1926_v55 = vmax.f32 %v1862_v29, %v1894_v15  ;;  %v1800_v46 = vmax.f32 %v1736_v30, %v1768_v54  ;;  %v1832_v58 = vld [vmem:[#allocation2 + $0x4b] sm:$0xff]  ;;  %v1560_v4 = vld [vmem:[#allocation2 + $0x13a] sm:$0xff]  ;;  %v1561_v7 = vld [vmem:[#allocation2 + $0x142] sm:$0xff] }
  0xe2   : > { %v1801_v61 = vmax.f32 %v1737_v27, %v1769_v9  ;;  %v1590_v19 = vmax.f32 %v1526_v59, %v3369_v41  ;;  %v1927_v51 = vmax.f32 %v1863_v43, %v1895_v11  ;;  %v1591_v37 = vmax.f32 %v1527_v6, %v1559_v39  ;;  %v1562_v45 = vld [vmem:[#allocation2 + $0x152] sm:$0xff]  ;;  %v1563_v2 = vld [vmem:[#allocation2 + $0x15a] sm:$0xff]  ;;  %v1564_v12 = vld [vmem:[#allocation2 + $0x16a] sm:$0xff] }
  0xe3   : > { %v1528_v32 = vmax.f32 %v1464_v33, %v3369_v41  ;;  %v1529_v36 = vmax.f32 %v1465_v56, %v1559_v39  ;;  %1958 = vst.msk [vmem:[#allocation2 + $0x32] sm:$0xff] %vm196_vm0, %v1926_v55  ;;  %v1864_v40 = vmax.f32 %v1800_v46, %v1832_v58  ;;  %v1466_v5 = vmax.f32 %v1402_v34, %v3369_v41  ;;  %v1896_v1 = vld [vmem:[#allocation2 + $0x4c] sm:$0xff]  ;;  %v1897_v13 = vld [vmem:[#allocation2 + $0x54] sm:$0xff]  ;;  %v1566_v38 = vld [vmem:[#allocation2 + $0x182] sm:$0xff] }
  0xe4   : > { %v1865_v53 = vmax.f32 %v1801_v61, %v1833_v16  ;;  %1622 = vst.msk [vmem:[%s3268_s24 + $0x80] sm:$0xff] %vm196_vm0, %v1590_v19  ;;  %1654 = vst.msk [vmem:[#allocation2 + $0xf2] sm:$0xff] %vm196_vm0, %v1590_v19  ;;  %v1467_v48 = vmax.f32 %v1403_v24, %v1559_v39  ;;  %v1404_v57 = vmax.f32 %v3321_v52, %v3369_v41  ;;  %v1565_v26 = vld [vmem:[#allocation2 + $0x172] sm:$0xff]  ;;  %v1567_v50 = vld [vmem:[#allocation2 + $0x18a] sm:$0xff] }
  0xe5   : > { %1959 = vst.msk [vmem:[#allocation2 + $0x3a] sm:$0xff] %vm196_vm0, %v1927_v51  ;;  %1623 = vst.msk [vmem:[%s3268_s24 + $0x88] sm:$0xff] %vm196_vm0, %v1591_v37  ;;  %v1592_v14 = vmax.f32 %v1528_v32, %v1560_v4  ;;  %v1593_v23 = vmax.f32 %v1529_v36, %v1561_v7  ;;  %v1405_v20 = vmax.f32 %v3334_v10, %v1559_v39  ;;  %v1568_v9 = vld [vmem:[#allocation2 + $0x19a] sm:$0xff]  ;;  %v1569_v6 = vld [vmem:[#allocation2 + $0x1a2] sm:$0xff] }
  0xe6   : > { %1655 = vst.msk [vmem:[#allocation2 + $0xfa] sm:$0xff] %vm196_vm0, %v1591_v37  ;;  %v1928_v63 = vmax.f32 %v1864_v40, %v1896_v1  ;;  %v1929_v8 = vmax.f32 %v1865_v53, %v1897_v13  ;;  %v1530_v21 = vmax.f32 %v1466_v5, %v1560_v4  ;;  %v1531_v22 = vmax.f32 %v1467_v48, %v1561_v7  ;;  %v1570_v61 = vld [vmem:[#allocation2 + $0x1b2] sm:$0xff]  ;;  %v3415_v16 = vld [vmem:[#allocation2 + $0x60] sm:$0xff]  ;;  %v3417_v37 = vld [vmem:[#allocation2 + $0x68] sm:$0xff] }
  0xe7   : > { %1624 = vst.msk [vmem:[%s3268_s24 + $0x90] sm:$0xff] %vm196_vm0, %v1592_v14  ;;  %1625 = vst.msk [vmem:[%s3268_s24 + $0x98] sm:$0xff] %vm196_vm0, %v1593_v23  ;;  %v1468_v44 = vmax.f32 %v1404_v57, %v1560_v4  ;;  %v1469_v42 = vmax.f32 %v1405_v20, %v1561_v7  ;;  %v1406_v52 = vmax.f32 %v3369_v41, %v1560_v4  ;;  %v3419_v32 = vld [vmem:[#allocation2 + $0x61] sm:$0xff]  ;;  %v3421_v36 = vld [vmem:[#allocation2 + $0x69] sm:$0xff] }
  0xe8   : > { %1656 = vst.msk [vmem:[#allocation2 + $0x10a] sm:$0xff] %vm196_vm0, %v1592_v14  ;;  %1657 = vst.msk [vmem:[#allocation2 + $0x112] sm:$0xff] %vm196_vm0, %v1593_v23  ;;  %v1407_v10 = vmax.f32 %v1559_v39, %v1561_v7  ;;  %v1594_v47 = vmax.f32 %v1530_v21, %v1562_v45  ;;  %v1595_v31 = vmax.f32 %v1531_v22, %v1563_v2  ;;  %v1571_v39 = vld [vmem:[#allocation2 + $0x1ba] sm:$0xff]  ;;  %v3433_v48 = vld [vmem:[#allocation2 + $0x90] sm:$0xff] }
  0xe9   : > { %1960 = vst.msk [vmem:[#allocation2 + $0x4a] sm:$0xff] %vm196_vm0, %v1928_v63  ;;  %1961 = vst.msk [vmem:[#allocation2 + $0x52] sm:$0xff] %vm196_vm0, %v1929_v8  ;;  %v1408_v28 = vmax.f32 %v1560_v4, %v1562_v45  ;;  %v1409_v3 = vmax.f32 %v1561_v7, %v1563_v2  ;;  %v1532_v18 = vmax.f32 %v1468_v44, %v1562_v45  ;;  %v1572_v4 = vld [vmem:[#allocation2 + $0x1ca] sm:$0xff]  ;;  %v1573_v7 = vld [vmem:[#allocation2 + $0x1d2] sm:$0xff] }
  0xea   : > { %v1533_v62 = vmax.f32 %v1469_v42, %v1563_v2  ;;  %v1470_v17 = vmax.f32 %v1406_v52, %v1562_v45  ;;  %v1471_v49 = vmax.f32 %v1407_v10, %v1563_v2  ;;  %1626 = vst.msk [vmem:[%s3268_s24 + $0xa0] sm:$0xff] %vm196_vm0, %v1594_v47  ;;  %1627 = vst.msk [vmem:[%s3268_s24 + $0xa8] sm:$0xff] %vm196_vm0, %v1595_v31  ;;  %v3429_v5 = vld [vmem:[#allocation2 + $0x78] sm:$0xff]  ;;  %v3439_v14 = vld [vmem:[#allocation2 + $0x81] sm:$0xff] }
  0xeb   : > { %1658 = vst.msk [vmem:[#allocation2 + $0x122] sm:$0xff] %vm196_vm0, %v1594_v47  ;;  %1659 = vst.msk [vmem:[#allocation2 + $0x12a] sm:$0xff] %vm196_vm0, %v1595_v31  ;;  %v1472_v35 = vmax.f32 %v1408_v28, %v1564_v12  ;;  %v1473_v25 = vmax.f32 %v1409_v3, %v1565_v26  ;;  %v1410_v0 = vmax.f32 %v1562_v45, %v1564_v12  ;;  %v3431_v45 = vld [vmem:[#allocation2 + $0x80] sm:$0xff]  ;;  %v3435_v1 = vld [vmem:[#allocation2 + $0x98] sm:$0xff] }
  0xec   : > { %v1411_v34 = vmax.f32 %v1563_v2, %v1565_v26  ;;  %v1596_v24 = vmax.f32 %v1532_v18, %v1564_v12  ;;  %v1597_v60 = vmax.f32 %v1533_v62, %v1565_v26  ;;  %v1534_v29 = vmax.f32 %v1470_v17, %v1564_v12  ;;  %v3437_v13 = vld [vmem:[#allocation2 + $0x79] sm:$0xff]  ;;  %v3441_v23 = vld [vmem:[#allocation2 + $0x91] sm:$0xff]  ;;  %v3445_v63 = vld [vmem:[#allocation2 + $0xa8] sm:$0xff] }
  0xed   : > { %v1535_v30 = vmax.f32 %v1471_v49, %v1565_v26  ;;  %v1536_v27 = vmax.f32 %v1472_v35, %v1566_v38  ;;  %v1537_v59 = vmax.f32 %v1473_v25, %v1567_v50  ;;  %v1474_v41 = vmax.f32 %v1410_v0, %v1566_v38  ;;  %v3443_v2 = vld [vmem:[#allocation2 + $0x99] sm:$0xff]  ;;  %v3447_v8 = vld [vmem:[#allocation2 + $0xb0] sm:$0xff]  ;;  %v3451_v22 = vld [vmem:[#allocation2 + $0xc8] sm:$0xff] }
  0xee   : > { %v1475_v43 = vmax.f32 %v1411_v34, %v1567_v50  ;;  %1628 = vst.msk [vmem:[%s3268_s24 + $0xb0] sm:$0xff] %vm196_vm0, %v1596_v24  ;;  %1629 = vst.msk [vmem:[%s3268_s24 + $0xb8] sm:$0xff] %vm196_vm0, %v1597_v60  ;;  %v1598_v15 = vmax.f32 %v1534_v29, %v1566_v38  ;;  %v1412_v33 = vmax.f32 %v1564_v12, %v1566_v38  ;;  %v3449_v21 = vld [vmem:[#allocation2 + $0xc0] sm:$0xff]  ;;  %v3453_v44 = vld [vmem:[#allocation2 + $0xa9] sm:$0xff] }
  0xef   : > { %v1599_v54 = vmax.f32 %v1535_v30, %v1567_v50  ;;  %1660 = vst.msk [vmem:[#allocation2 + $0x13a] sm:$0xff] %vm196_vm0, %v1596_v24  ;;  %1661 = vst.msk [vmem:[#allocation2 + $0x142] sm:$0xff] %vm196_vm0, %v1597_v60  ;;  %v1413_v56 = vmax.f32 %v1565_v26, %v1567_v50  ;;  %v1600_v11 = vmax.f32 %v1536_v27, %v1568_v9  ;;  %v3455_v12 = vld [vmem:[#allocation2 + $0xb1] sm:$0xff]  ;;  %v3457_v42 = vld [vmem:[#allocation2 + $0xc1] sm:$0xff] }
  0xf0   : > { %v1601_v55 = vmax.f32 %v1537_v59, %v1569_v6  ;;  %v1538_v46 = vmax.f32 %v1474_v41, %v1568_v9  ;;  %v1539_v19 = vmax.f32 %v1475_v43, %v1569_v6  ;;  %1630 = vst.msk [vmem:[%s3268_s24 + $0xc0] sm:$0xff] %vm196_vm0, %v1598_v15  ;;  %1662 = vst.msk [vmem:[#allocation2 + $0x152] sm:$0xff] %vm196_vm0, %v1598_v15  ;;  %v3459_v26 = vld [vmem:[#allocation2 + $0xc9] sm:$0xff]  ;;  %v3467_v52 = vld [vmem:[#allocation2 + $0xd8] sm:$0xff] }
  0xf1   : > { %1631 = vst.msk [vmem:[%s3268_s24 + $0xc8] sm:$0xff] %vm196_vm0, %v1599_v54  ;;  %1663 = vst.msk [vmem:[#allocation2 + $0x15a] sm:$0xff] %vm196_vm0, %v1599_v54  ;;  %v1476_v51 = vmax.f32 %v1412_v33, %v1568_v9  ;;  %v1477_v58 = vmax.f32 %v1413_v56, %v1569_v6  ;;  %v3469_v10 = vld [vmem:[#allocation2 + $0xe0] sm:$0xff]  ;;  %v3471_v47 = vld [vmem:[#allocation2 + $0xf0] sm:$0xff]  ;;  %v1738_v24 = vmax.f32 %v3415_v16, %v3419_v32 }
  0xf2   : > { %1632 = vst.msk [vmem:[%s3268_s24 + $0xd0] sm:$0xff] %vm196_vm0, %v1600_v11  ;;  %1633 = vst.msk [vmem:[%s3268_s24 + $0xd8] sm:$0xff] %vm196_vm0, %v1601_v55  ;;  %v1602_v40 = vmax.f32 %v1538_v46, %v1570_v61  ;;  %v1603_v53 = vmax.f32 %v1539_v19, %v1571_v39  ;;  %v3473_v31 = vld [vmem:[#allocation2 + $0xf8] sm:$0xff]  ;;  %v3477_v3 = vld [vmem:[#allocation2 + $0xe1] sm:$0xff]  ;;  %v1739_v60 = vmax.f32 %v3417_v37, %v3421_v36 }
  0xf3   : > { %1664 = vst.msk [vmem:[#allocation2 + $0x16a] sm:$0xff] %vm196_vm0, %v1600_v11  ;;  %1665 = vst.msk [vmem:[#allocation2 + $0x172] sm:$0xff] %vm196_vm0, %v1601_v55  ;;  %v1540_v57 = vmax.f32 %v1476_v51, %v1570_v61  ;;  %v1541_v20 = vmax.f32 %v1477_v58, %v1571_v39  ;;  %v3475_v28 = vld [vmem:[#allocation2 + $0xd9] sm:$0xff]  ;;  %v3479_v18 = vld [vmem:[#allocation2 + $0xf1] sm:$0xff]  ;;  %v1740_v59 = vmax.f32 %v3429_v5, %v3437_v13 }
  0xf4   : > { %1634 = vst.msk [vmem:[%s3268_s24 + $0xe0] sm:$0xff] %vm196_vm0, %v1602_v40  ;;  %1635 = vst.msk [vmem:[%s3268_s24 + $0xe8] sm:$0xff] %vm196_vm0, %v1603_v53  ;;  %v3481_v62 = vld [vmem:[#allocation2 + $0xf9] sm:$0xff]  ;;  %v3483_v38 = vld [vmem:[#allocation2 + $0x108] sm:$0xff]  ;;  %v1741_v41 = vmax.f32 %v3431_v45, %v3439_v14  ;;  %v1742_v43 = vmax.f32 %v3433_v48, %v3441_v23  ;;  %v1743_v15 = vmax.f32 %v3435_v1, %v3443_v2 }
  0xf5   : > { %1666 = vst.msk [vmem:[#allocation2 + $0x182] sm:$0xff] %vm196_vm0, %v1602_v40  ;;  %1667 = vst.msk [vmem:[#allocation2 + $0x18a] sm:$0xff] %vm196_vm0, %v1603_v53  ;;  %v1604_v17 = vmax.f32 %v1540_v57, %v1572_v4  ;;  %v1605_v49 = vmax.f32 %v1541_v20, %v1573_v7  ;;  %v3485_v50 = vld [vmem:[#allocation2 + $0x110] sm:$0xff]  ;;  %v3489_v25 = vld [vmem:[#allocation2 + $0x120] sm:$0xff]  ;;  %v1744_v33 = vmax.f32 %v3445_v63, %v3453_v44 }
  0xf6   : > { %v3487_v35 = vld [vmem:[#allocation2 + $0x109] sm:$0xff]  ;;  %v3493_v34 = vld [vmem:[#allocation2 + $0x111] sm:$0xff]  ;;  %v3507_v30 = vld [vmem:[#allocation2 + $0x121] sm:$0xff]  ;;  %v1745_v56 = vmax.f32 %v3447_v8, %v3455_v12  ;;  %v1746_v11 = vmax.f32 %v3449_v21, %v3457_v42  ;;  %v1747_v55 = vmax.f32 %v3451_v22, %v3459_v26  ;;  %v1748_v58 = vmax.f32 %v3467_v52, %v3475_v28 }
  0xf7   : > { %v3491_v0 = vld [vmem:[#allocation2 + $0x128] sm:$0xff]  ;;  %1636 = vst.msk [vmem:[%s3268_s24 + $0xf0] sm:$0xff] %vm196_vm0, %v1604_v17  ;;  %1668 = vst.msk [vmem:[#allocation2 + $0x19a] sm:$0xff] %vm196_vm0, %v1604_v17  ;;  %v3505_v29 = vld [vmem:[#allocation2 + $0x138] sm:$0xff]  ;;  %v1749_v16 = vmax.f32 %v3469_v10, %v3477_v3  ;;  %v1750_v37 = vmax.f32 %v3471_v47, %v3479_v18  ;;  %v1751_v32 = vmax.f32 %v3473_v31, %v3481_v62 }
  0xf8   : > { %1637 = vst.msk [vmem:[%s3268_s24 + $0xf8] sm:$0xff] %vm196_vm0, %v1605_v49  ;;  %1669 = vst.msk [vmem:[#allocation2 + $0x1a2] sm:$0xff] %vm196_vm0, %v1605_v49  ;;  %v3509_v27 = vld [vmem:[#allocation2 + $0x129] sm:$0xff]  ;;  %v3519_v54 = vld [vmem:[#allocation2 + $0x140] sm:$0xff]  ;;  %v1752_v45 = vmax.f32 %v3483_v38, %v3487_v35  ;;  %v1753_v48 = vmax.f32 %v3485_v50, %v3493_v34  ;;  %v1754_v1 = vmax.f32 %v3489_v25, %v3507_v30 }
  0xf9   : > { %v3521_v9 = vld [vmem:[#allocation2 + $0x139] sm:$0xff]  ;;  %v3523_v6 = vld [vmem:[#allocation2 + $0x141] sm:$0xff]  ;;  %v1771_v61 = vld [vmem:[#allocation2 + $0x6a] sm:$0xff]  ;;  %v1755_v13 = vmax.f32 %v3491_v0, %v3509_v27 }
  0xfa   : > { %v1770_v46 = vld [vmem:[#allocation2 + $0x62] sm:$0xff]  ;;  %v3533_v19 = vld [vmem:[#allocation2 + $0x150] sm:$0xff]  ;;  %v3535_v39 = vld [vmem:[#allocation2 + $0x158] sm:$0xff]  ;;  %v1756_v8 = vmax.f32 %v3505_v29, %v3521_v9  ;;  %v1757_v21 = vmax.f32 %v3519_v54, %v3523_v6  ;;  %v3573_v42 = vmax.f32 %v1739_v60, %v1771_v61 }
  0xfb   : > { %v3537_v51 = vld [vmem:[#allocation2 + $0x151] sm:$0xff]  ;;  %v1772_v36 = vld [vmem:[#allocation2 + $0x7a] sm:$0xff]  ;;  %v1773_v40 = vld [vmem:[#allocation2 + $0x82] sm:$0xff]  ;;  %v3571_v12 = vmax.f32 %v1738_v24, %v1770_v46 }
  0xfc   : > { %v1774_v53 = vld [vmem:[#allocation2 + $0x92] sm:$0xff]  ;;  %v3547_v4 = vld [vmem:[#allocation2 + $0x168] sm:$0xff]  ;;  %v1775_v14 = vld [vmem:[#allocation2 + $0x9a] sm:$0xff]  ;;  %v1758_v28 = vmax.f32 %v3533_v19, %v3537_v51  ;;  %v3579_v49 = vmax.f32 %v1740_v59, %v1772_v36  ;;  %v3581_v38 = vmax.f32 %v1741_v41, %v1773_v40 }
  0xfd   : > { %v3549_v7 = vld [vmem:[#allocation2 + $0x170] sm:$0xff]  ;;  %v3551_v5 = vld [vmem:[#allocation2 + $0x159] sm:$0xff]  ;;  %v1778_v22 = vld [vmem:[#allocation2 + $0xc2] sm:$0xff]  ;;  %v3583_v50 = vmax.f32 %v1742_v43, %v1774_v53  ;;  %v3587_v24 = vmax.f32 %v1743_v15, %v1775_v14 }
  0xfe   : > { %v1776_v23 = vld [vmem:[#allocation2 + $0xaa] sm:$0xff]  ;;  %v1777_v2 = vld [vmem:[#allocation2 + $0xb2] sm:$0xff]  ;;  %v3561_v57 = vld [vmem:[#allocation2 + $0x180] sm:$0xff]  ;;  %v1759_v35 = vmax.f32 %v3535_v39, %v3551_v5  ;;  %v3597_v46 = vmax.f32 %v1746_v11, %v1778_v22 }
  0xff   : > { %v3563_v20 = vld [vmem:[#allocation2 + $0x169] sm:$0xff]  ;;  %v3565_v63 = vld [vmem:[#allocation2 + $0x171] sm:$0xff]  ;;  %v1730_v52 = vld [vmem:[#allocation2 + $0x181] sm:$0xff]  ;;  %v3589_v60 = vmax.f32 %v1744_v33, %v1776_v23  ;;  %v3591_v29 = vmax.f32 %v1745_v56, %v1777_v2 }
 0x100   : > { %v1779_v44 = vld [vmem:[#allocation2 + $0xca] sm:$0xff]  ;;  %v1780_v3 = vld [vmem:[#allocation2 + $0xda] sm:$0xff]  ;;  %v1781_v17 = vld [vmem:[#allocation2 + $0xe2] sm:$0xff]  ;;  %v1760_v41 = vmax.f32 %v3547_v4, %v3563_v20  ;;  %v1761_v43 = vmax.f32 %v3549_v7, %v3565_v63  ;;  %v1762_v56 = vmax.f32 %v3561_v57, %v1730_v52 }
 0x101   : > { %v3575_v26 = vld [vmem:[#allocation2 + $0x188] sm:$0xff]  ;;  %v1782_v25 = vld [vmem:[#allocation2 + $0xf2] sm:$0xff]  ;;  %v1783_v0 = vld [vmem:[#allocation2 + $0xfa] sm:$0xff]  ;;  %v3599_v15 = vmax.f32 %v1747_v55, %v1779_v44  ;;  %v3603_v40 = vmax.f32 %v1748_v58, %v1780_v3  ;;  %v3605_v53 = vmax.f32 %v1749_v16, %v1781_v17 }
 0x102   : > { %v1731_v10 = vld [vmem:[#allocation2 + $0x189] sm:$0xff]  ;;  %v1700_v30 = vld [vmem:[#allocation2 + $0x198] sm:$0xff]  ;;  %v1701_v27 = vld [vmem:[#allocation2 + $0x1a0] sm:$0xff]  ;;  %v3610_v55 = vmax.f32 %v1750_v37, %v1782_v25  ;;  %v3615_v23 = vmax.f32 %v1751_v32, %v1783_v0 }
 0x103   : > { %v1784_v34 = vld [vmem:[#allocation2 + $0x10a] sm:$0xff]  ;;  %v1732_v59 = vld [vmem:[#allocation2 + $0x199] sm:$0xff]  ;;  %v1786_v9 = vld [vmem:[#allocation2 + $0x122] sm:$0xff]  ;;  %v1763_v61 = vmax.f32 %v3575_v26, %v1731_v10 }
 0x104   : > { %v1785_v54 = vld [vmem:[#allocation2 + $0x112] sm:$0xff]  ;;  %v1787_v6 = vld [vmem:[#allocation2 + $0x12a] sm:$0xff]  ;;  %v1733_v33 = vld [vmem:[#allocation2 + $0x1a1] sm:$0xff]  ;;  %v1764_v4 = vmax.f32 %v1700_v30, %v1732_v59  ;;  %v3617_v2 = vmax.f32 %v1752_v45, %v1784_v34  ;;  %v3621_v20 = vmax.f32 %v1754_v1, %v1786_v9 }
 0x105   : > { %v1788_v19 = vld [vmem:[#allocation2 + $0x13a] sm:$0xff]  ;;  %v1789_v39 = vld [vmem:[#allocation2 + $0x142] sm:$0xff]  ;;  %v1790_v51 = vld [vmem:[#allocation2 + $0x152] sm:$0xff]  ;;  %v1765_v58 = vmax.f32 %v1701_v27, %v1733_v33  ;;  %v3619_v57 = vmax.f32 %v1753_v48, %v1785_v54  ;;  %v3623_v63 = vmax.f32 %v1755_v13, %v1787_v6 }
 0x106   : > { %v1791_v36 = vld [vmem:[#allocation2 + $0x15a] sm:$0xff]  ;;  %v1792_v7 = vld [vmem:[#allocation2 + $0x16a] sm:$0xff]  ;;  %v1793_v5 = vld [vmem:[#allocation2 + $0x172] sm:$0xff]  ;;  %v3631_v31 = vmax.f32 %v1756_v8, %v1788_v19  ;;  %v3633_v62 = vmax.f32 %v1757_v21, %v1789_v39  ;;  %v3635_v32 = vmax.f32 %v1758_v28, %v1790_v51 }
 0x107   : > { %v1794_v11 = vld [vmem:[#allocation2 + $0x182] sm:$0xff]  ;;  %v1795_v14 = vld [vmem:[#allocation2 + $0x18a] sm:$0xff]  ;;  %v1796_v16 = vld [vmem:[#allocation2 + $0x19a] sm:$0xff]  ;;  %v3637_v45 = vmax.f32 %v1759_v35, %v1791_v36  ;;  %v3645_v44 = vmax.f32 %v1760_v41, %v1792_v7  ;;  %v3647_v26 = vmax.f32 %v1761_v43, %v1793_v5 }
 0x108   : > { %v3625_v22 = vld [vmem:[#allocation2 + $0x63] sm:$0xff]  ;;  %v3627_v47 = vld [vmem:[#allocation2 + $0x6b] sm:$0xff]  ;;  %v3629_v18 = vld [vmem:[#allocation2 + $0x7b] sm:$0xff]  ;;  %v3649_v52 = vmax.f32 %v1762_v56, %v1794_v11  ;;  %v3651_v8 = vmax.f32 %v1763_v61, %v1795_v14  ;;  %v3659_v3 = vmax.f32 %v1764_v4, %v1796_v16 }
 0x109   : > { %v1797_v37 = vld [vmem:[#allocation2 + $0x1a2] sm:$0xff]  ;;  %v3641_v1 = vld [vmem:[#allocation2 + $0x93] sm:$0xff]  ;;  %v3653_v21 = vld [vmem:[#allocation2 + $0xab] sm:$0xff]  ;;  %v1866_v0 = vmax.f32 %v3571_v12, %v3625_v22  ;;  %v1867_v34 = vmax.f32 %v3573_v42, %v3627_v47  ;;  %v1868_v30 = vmax.f32 %v3579_v49, %v3629_v18 }
 0x10a   : > { %v3639_v48 = vld [vmem:[#allocation2 + $0x83] sm:$0xff]  ;;  %v3643_v13 = vld [vmem:[#allocation2 + $0x9b] sm:$0xff]  ;;  %v3655_v10 = vld [vmem:[#allocation2 + $0xb3] sm:$0xff]  ;;  %v3673_v27 = vmax.f32 %v1765_v58, %v1797_v37  ;;  %v1870_v12 = vmax.f32 %v3583_v50, %v3641_v1  ;;  %v1872_v33 = vmax.f32 %v3589_v60, %v3653_v21 }
 0x10b   : > { %v3657_v28 = vld [vmem:[#allocation2 + $0xc3] sm:$0xff]  ;;  %v3661_v17 = vld [vmem:[#allocation2 + $0xcb] sm:$0xff]  ;;  %v3663_v35 = vld [vmem:[#allocation2 + $0xdb] sm:$0xff]  ;;  %v1869_v54 = vmax.f32 %v3581_v38, %v3639_v48  ;;  %v1871_v42 = vmax.f32 %v3587_v24, %v3643_v13  ;;  %v1873_v56 = vmax.f32 %v3591_v29, %v3655_v10 }
 0x10c   : > { %v3665_v25 = vld [vmem:[#allocation2 + $0xe3] sm:$0xff]  ;;  %v3675_v59 = vld [vmem:[#allocation2 + $0xf3] sm:$0xff]  ;;  %v3677_v41 = vld [vmem:[#allocation2 + $0xfb] sm:$0xff]  ;;  %v1874_v38 = vmax.f32 %v3597_v46, %v3657_v28  ;;  %v1875_v50 = vmax.f32 %v3599_v15, %v3661_v17  ;;  %v1876_v39 = vmax.f32 %v3603_v40, %v3663_v35 }
 0x10d   : > { %v3679_v43 = vld [vmem:[#allocation2 + $0x10b] sm:$0xff]  ;;  %v3687_v9 = vld [vmem:[#allocation2 + $0x113] sm:$0xff]  ;;  %v3689_v49 = vld [vmem:[#allocation2 + $0x123] sm:$0xff]  ;;  %v1877_v60 = vmax.f32 %v3605_v53, %v3665_v25  ;;  %v1878_v29 = vmax.f32 %v3610_v55, %v3675_v59  ;;  %v1879_v46 = vmax.f32 %v3615_v23, %v3677_v41 }
 0x10e   : > { %v3691_v6 = vld [vmem:[#allocation2 + $0x12b] sm:$0xff]  ;;  %v3701_v61 = vld [vmem:[#allocation2 + $0x13b] sm:$0xff]  ;;  %v3703_v24 = vld [vmem:[#allocation2 + $0x143] sm:$0xff]  ;;  %v1880_v4 = vmax.f32 %v3617_v2, %v3679_v43  ;;  %v1881_v40 = vmax.f32 %v3619_v57, %v3687_v9  ;;  %v1882_v53 = vmax.f32 %v3621_v20, %v3689_v49 }
 0x10f   : > { %v3705_v19 = vld [vmem:[#allocation2 + $0x153] sm:$0xff]  ;;  %v3715_v51 = vld [vmem:[#allocation2 + $0x15b] sm:$0xff]  ;;  %v3717_v15 = vld [vmem:[#allocation2 + $0x16b] sm:$0xff]  ;;  %v1883_v7 = vmax.f32 %v3623_v63, %v3691_v6  ;;  %v1884_v11 = vmax.f32 %v3631_v31, %v3701_v61  ;;  %v1885_v14 = vmax.f32 %v3633_v62, %v3703_v24 }
 0x110   : > { %v3719_v36 = vld [vmem:[#allocation2 + $0x173] sm:$0xff]  ;;  %v3729_v5 = vld [vmem:[#allocation2 + $0x183] sm:$0xff]  ;;  %v3739_v22 = vld [vmem:[#allocation2 + $0x18b] sm:$0xff]  ;;  %v3948_v63 = vmax.f32 %v3635_v32, %v3705_v19  ;;  %v3949_v31 = vmax.f32 %v3637_v45, %v3715_v51  ;;  %v3950_v62 = vmax.f32 %v3645_v44, %v3717_v15 }
 0x111   : > { %v1898_v2 = vld [vmem:[#allocation2 + $0x64] sm:$0xff]  ;;  %v1899_v58 = vld [vmem:[#allocation2 + $0x6c] sm:$0xff]  ;;  %v1900_v16 = vld [vmem:[#allocation2 + $0x7c] sm:$0xff]  ;;  %v1889_v28 = vmax.f32 %v3647_v26, %v3719_v36  ;;  %v1890_v47 = vmax.f32 %v3649_v52, %v3729_v5 }
 0x112   : > { %v1901_v18 = vld [vmem:[#allocation2 + $0x84] sm:$0xff]  ;;  %v1902_v37 = vld [vmem:[#allocation2 + $0x94] sm:$0xff]  ;;  %v1903_v48 = vld [vmem:[#allocation2 + $0x9c] sm:$0xff]  ;;  %v1930_v1 = vmax.f32 %v1866_v0, %v1898_v2  ;;  %v1931_v13 = vmax.f32 %v1867_v34, %v1899_v58  ;;  %v1932_v21 = vmax.f32 %v1868_v30, %v1900_v16 }
 0x113   : > { %v3743_v10 = vld [vmem:[#allocation2 + $0x19b] sm:$0xff]  ;;  %v1904_v17 = vld [vmem:[#allocation2 + $0xac] sm:$0xff]  ;;  %v1906_v25 = vld [vmem:[#allocation2 + $0xc4] sm:$0xff]  ;;  %v1933_v59 = vmax.f32 %v1869_v54, %v1901_v18  ;;  %v1934_v41 = vmax.f32 %v1870_v12, %v1902_v37  ;;  %v1935_v43 = vmax.f32 %v1871_v42, %v1903_v48  ;;  %v1891_v42 = vmax.f32 %v3651_v8, %v3739_v22 }
 0x114   : > { %v1905_v35 = vld [vmem:[#allocation2 + $0xb4] sm:$0xff]  ;;  %v3747_v23 = vld [vmem:[#allocation2 + $0x1a3] sm:$0xff]  ;;  %v1907_v55 = vld [vmem:[#allocation2 + $0xcc] sm:$0xff]  ;;  %v1936_v30 = vmax.f32 %v1872_v33, %v1904_v17  ;;  %v1938_v58 = vmax.f32 %v1874_v38, %v1906_v25  ;;  %1962 = vst.msk [vmem:[#allocation2 + $0x62] sm:$0xff] %vm196_vm0, %v1930_v1 }
 0x115   : > { %v1908_v0 = vld [vmem:[#allocation2 + $0xdc] sm:$0xff]  ;;  %v1909_v34 = vld [vmem:[#allocation2 + $0xe4] sm:$0xff]  ;;  %v1937_v2 = vmax.f32 %v1873_v56, %v1905_v35  ;;  %1963 = vst.msk [vmem:[#allocation2 + $0x6a] sm:$0xff] %vm196_vm0, %v1931_v13  ;;  %1964 = vst.msk [vmem:[#allocation2 + $0x7a] sm:$0xff] %vm196_vm0, %v1932_v21  ;;  %v1939_v48 = vmax.f32 %v1875_v50, %v1907_v55  ;;  %v1892_v13 = vmax.f32 %v3659_v3, %v3743_v10 }
 0x116   : > { %v3754_v54 = vld [vmem:[#allocation2 + $0x2] sm:$0xff]  ;;  %v3756_v12 = vld [vmem:[#allocation2 + $0x1a] sm:$0xff]  ;;  %v1912_v37 = vld [vmem:[#allocation2 + $0x10c] sm:$0xff]  ;;  %v1940_v33 = vmax.f32 %v1876_v39, %v1908_v0  ;;  %v1941_v56 = vmax.f32 %v1877_v60, %v1909_v34  ;;  %1965 = vst.msk [vmem:[#allocation2 + $0x82] sm:$0xff] %vm196_vm0, %v1933_v59  ;;  %v1893_v60 = vmax.f32 %v3673_v27, %v3747_v23 }
 0x117   : > { %v1910_v16 = vld [vmem:[#allocation2 + $0xf4] sm:$0xff]  ;;  %v1911_v18 = vld [vmem:[#allocation2 + $0xfc] sm:$0xff]  ;;  %1966 = vst.msk [vmem:[#allocation2 + $0x92] sm:$0xff] %vm196_vm0, %v1934_v41  ;;  %1967 = vst.msk [vmem:[#allocation2 + $0x9a] sm:$0xff] %vm196_vm0, %v1935_v43  ;;  %v1944_v39 = vmax.f32 %v1880_v4, %v1912_v37  ;;  %v2054_v19 = vmax.f32 %v3754_v54, %v3756_v12 }
 0x118   : > { %v3763_v38 = vld [vmem:[#allocation2 + $0xa] sm:$0xff]  ;;  %v3765_v1 = vld [vmem:[#allocation2 + $0x22] sm:$0xff]  ;;  %v1913_v8 = vld [vmem:[#allocation2 + $0x114] sm:$0xff]  ;;  %v1942_v17 = vmax.f32 %v1878_v29, %v1910_v16  ;;  %v1943_v50 = vmax.f32 %v1879_v46, %v1911_v18  ;;  %1968 = vst.msk [vmem:[#allocation2 + $0xaa] sm:$0xff] %vm196_vm0, %v1936_v30 }
 0x119   : > { %v1914_v22 = vld [vmem:[#allocation2 + $0x124] sm:$0xff]  ;;  %v1915_v21 = vld [vmem:[#allocation2 + $0x12c] sm:$0xff]  ;;  %1969 = vst.msk [vmem:[#allocation2 + $0xb2] sm:$0xff] %vm196_vm0, %v1937_v2  ;;  %1970 = vst.msk [vmem:[#allocation2 + $0xc2] sm:$0xff] %vm196_vm0, %v1938_v58  ;;  %v1945_v3 = vmax.f32 %v1881_v40, %v1913_v8  ;;  %v2055_v36 = vmax.f32 %v3763_v38, %v3765_v1 }
 0x11a   : > { %v1916_v55 = vld [vmem:[#allocation2 + $0x13c] sm:$0xff]  ;;  %v1917_v35 = vld [vmem:[#allocation2 + $0x144] sm:$0xff]  ;;  %v1918_v25 = vld [vmem:[#allocation2 + $0x154] sm:$0xff]  ;;  %v1946_v29 = vmax.f32 %v1882_v53, %v1914_v22  ;;  %v1947_v46 = vmax.f32 %v1883_v7, %v1915_v21  ;;  %1971 = vst.msk [vmem:[#allocation2 + $0xca] sm:$0xff] %vm196_vm0, %v1939_v48 }
 0x11b   : > { %1972 = vst.msk [vmem:[#allocation2 + $0xda] sm:$0xff] %vm196_vm0, %v1940_v33  ;;  %1973 = vst.msk [vmem:[#allocation2 + $0xe2] sm:$0xff] %vm196_vm0, %v1941_v56  ;;  %v1919_v27 = vld [vmem:[#allocation2 + $0x15c] sm:$0xff]  ;;  %v1920_v4 = vld [vmem:[#allocation2 + $0x16c] sm:$0xff]  ;;  %v1948_v57 = vmax.f32 %v1884_v11, %v1916_v55  ;;  %v1949_v20 = vmax.f32 %v1885_v14, %v1917_v35  ;;  %v1950_v9 = vmax.f32 %v3948_v63, %v1918_v25 }
 0x11c   : > { %v1921_v23 = vld [vmem:[#allocation2 + $0x174] sm:$0xff]  ;;  %1974 = vst.msk [vmem:[#allocation2 + $0xf2] sm:$0xff] %vm196_vm0, %v1942_v17  ;;  %1975 = vst.msk [vmem:[#allocation2 + $0xfa] sm:$0xff] %vm196_vm0, %v1943_v50  ;;  %v1922_v49 = vld [vmem:[#allocation2 + $0x184] sm:$0xff]  ;;  %v1951_v61 = vmax.f32 %v3949_v31, %v1919_v27  ;;  %v1952_v24 = vmax.f32 %v3950_v62, %v1920_v4 }
 0x11d   : > { %1976 = vst.msk [vmem:[#allocation2 + $0x10a] sm:$0xff] %vm196_vm0, %v1944_v39  ;;  %v1923_v6 = vld [vmem:[#allocation2 + $0x18c] sm:$0xff]  ;;  %v1924_v40 = vld [vmem:[#allocation2 + $0x19c] sm:$0xff]  ;;  %v1953_v32 = vmax.f32 %v1889_v28, %v1921_v23  ;;  %1977 = vst.msk [vmem:[#allocation2 + $0x112] sm:$0xff] %vm196_vm0, %v1945_v3  ;;  %v1954_v45 = vmax.f32 %v1890_v47, %v1922_v49 }
 0x11e   : > { %1978 = vst.msk [vmem:[#allocation2 + $0x122] sm:$0xff] %vm196_vm0, %v1946_v29  ;;  %1979 = vst.msk [vmem:[#allocation2 + $0x12a] sm:$0xff] %vm196_vm0, %v1947_v46  ;;  %v1925_v53 = vld [vmem:[#allocation2 + $0x1a4] sm:$0xff]  ;;  %v1955_v44 = vmax.f32 %v1891_v42, %v1923_v6  ;;  %v1956_v51 = vmax.f32 %v1892_v13, %v1924_v40  ;;  %v2086_v26 = vld [vmem:[#allocation2 + $0x32] sm:$0xff] }
 0x11f   : > { %1980 = vst.msk [vmem:[#allocation2 + $0x13a] sm:$0xff] %vm196_vm0, %v1948_v57  ;;  %1981 = vst.msk [vmem:[#allocation2 + $0x142] sm:$0xff] %vm196_vm0, %v1949_v20  ;;  %v2150_v15 = vld [vmem:[#allocation2 + $0x4a] sm:$0xff]  ;;  %v1957_v7 = vmax.f32 %v1893_v60, %v1925_v53  ;;  %v2118_v52 = vmax.f32 %v2054_v19, %v2086_v26  ;;  %v2214_v5 = vld [vmem:[#allocation2 + $0x62] sm:$0xff]  ;;  %v2056_v47 = vmax.f32 %v3756_v12, %v2086_v26 }
 0x120   : > { %1982 = vst.msk [vmem:[#allocation2 + $0x152] sm:$0xff] %vm196_vm0, %v1950_v9  ;;  %1983 = vst.msk [vmem:[#allocation2 + $0x15a] sm:$0xff] %vm196_vm0, %v1951_v61  ;;  %v2087_v11 = vld [vmem:[#allocation2 + $0x3a] sm:$0xff]  ;;  %v2151_v14 = vld [vmem:[#allocation2 + $0x52] sm:$0xff]  ;;  %v2058_v10 = vmax.f32 %v2086_v26, %v2150_v15  ;;  %v2060_v0 = vmax.f32 %v2150_v15, %v2214_v5 }
 0x121   : > { %1984 = vst.msk [vmem:[#allocation2 + $0x16a] sm:$0xff] %vm196_vm0, %v1952_v24  ;;  %1985 = vst.msk [vmem:[#allocation2 + $0x172] sm:$0xff] %vm196_vm0, %v1953_v32  ;;  %v2119_v28 = vmax.f32 %v2055_v36, %v2087_v11  ;;  %v2215_v59 = vld [vmem:[#allocation2 + $0x6a] sm:$0xff]  ;;  %v2057_v41 = vmax.f32 %v3765_v1, %v2087_v11  ;;  %v2059_v43 = vmax.f32 %v2087_v11, %v2151_v14  ;;  %v2216_v2 = vld [vmem:[#allocation2 + $0x7a] sm:$0xff] }
 0x122   : > { %1986 = vst.msk [vmem:[#allocation2 + $0x182] sm:$0xff] %vm196_vm0, %v1954_v45  ;;  %1987 = vst.msk [vmem:[#allocation2 + $0x18a] sm:$0xff] %vm196_vm0, %v1955_v44  ;;  %v2182_v34 = vmax.f32 %v2118_v52, %v2150_v15  ;;  %v2120_v30 = vmax.f32 %v2056_v47, %v2150_v15  ;;  %v2122_v58 = vmax.f32 %v2058_v10, %v2214_v5  ;;  %v2217_v16 = vld [vmem:[#allocation2 + $0x82] sm:$0xff]  ;;  %v2218_v38 = vld [vmem:[#allocation2 + $0x92] sm:$0xff] }
 0x123   : > { %1988 = vst.msk [vmem:[#allocation2 + $0x19a] sm:$0xff] %vm196_vm0, %v1956_v51  ;;  %1989 = vst.msk [vmem:[#allocation2 + $0x1a2] sm:$0xff] %vm196_vm0, %v1957_v7  ;;  %v2061_v54 = vmax.f32 %v2151_v14, %v2215_v59  ;;  %v2183_v12 = vmax.f32 %v2119_v28, %v2151_v14  ;;  %v2121_v42 = vmax.f32 %v2057_v41, %v2151_v14  ;;  %v2219_v21 = vld [vmem:[#allocation2 + $0x9a] sm:$0xff]  ;;  %v2220_v60 = vld [vmem:[#allocation2 + $0xaa] sm:$0xff] }
 0x124   : > { %v2123_v18 = vmax.f32 %v2059_v43, %v2215_v59  ;;  %v2124_v37 = vmax.f32 %v2060_v0, %v2216_v2  ;;  %v2246_v48 = vmax.f32 %v2182_v34, %v2214_v5  ;;  %v2184_v33 = vmax.f32 %v2120_v30, %v2214_v5  ;;  %v2221_v35 = vld [vmem:[#allocation2 + $0xb2] sm:$0xff]  ;;  %v2222_v3 = vld [vmem:[#allocation2 + $0xc2] sm:$0xff]  ;;  %v2223_v23 = vld [vmem:[#allocation2 + $0xca] sm:$0xff] }
 0x125   : > { %v2186_v56 = vmax.f32 %v2122_v58, %v2216_v2  ;;  %v2125_v1 = vmax.f32 %v2061_v54, %v2217_v16  ;;  %v2247_v13 = vmax.f32 %v2183_v12, %v2215_v59  ;;  %v2185_v8 = vmax.f32 %v2121_v42, %v2215_v59  ;;  %v2224_v24 = vld [vmem:[#allocation2 + $0xda] sm:$0xff]  ;;  %v2225_v45 = vld [vmem:[#allocation2 + $0xe2] sm:$0xff]  ;;  %v2226_v52 = vld [vmem:[#allocation2 + $0xf2] sm:$0xff] }
 0x126   : > { %v2187_v22 = vmax.f32 %v2123_v18, %v2217_v16  ;;  %v2188_v17 = vmax.f32 %v2124_v37, %v2218_v38  ;;  %2278 = vst.msk [vmem:[%s3833_s27] sm:$0xff] %vm196_vm0, %v2246_v48  ;;  %v2248_v50 = vmax.f32 %v2184_v33, %v2216_v2  ;;  %v2062_v25 = vmax.f32 %v2214_v5, %v2216_v2  ;;  %v2227_v10 = vld [vmem:[#allocation2 + $0xfa] sm:$0xff]  ;;  %v2228_v43 = vld [vmem:[#allocation2 + $0x10a] sm:$0xff]  ;;  %v2229_v34 = vld [vmem:[#allocation2 + $0x112] sm:$0xff] }
 0x127   : > { %v2250_v39 = vmax.f32 %v2186_v56, %v2218_v38  ;;  %v2189_v55 = vmax.f32 %v2125_v1, %v2219_v21  ;;  %2279 = vst.msk [vmem:[%s3833_s27 + $0x8] sm:$0xff] %vm196_vm0, %v2247_v13  ;;  %v2249_v29 = vmax.f32 %v2185_v8, %v2217_v16  ;;  %v2063_v4 = vmax.f32 %v2215_v59, %v2217_v16 }
 0x128   : > { %v2251_v46 = vmax.f32 %v2187_v22, %v2219_v21  ;;  %v2252_v27 = vmax.f32 %v2188_v17, %v2220_v60  ;;  %2280 = vst.msk [vmem:[%s3833_s27 + $0x10] sm:$0xff] %vm196_vm0, %v2248_v50  ;;  %v2126_v20 = vmax.f32 %v2062_v25, %v2218_v38  ;;  %v2064_v63 = vmax.f32 %v2216_v2, %v2218_v38  ;;  %v2230_v2 = vld [vmem:[#allocation2 + $0x122] sm:$0xff] }
 0x129   : > { %2282 = vst.msk [vmem:[%s3833_s27 + $0x20] sm:$0xff] %vm196_vm0, %v2250_v39  ;;  %v2253_v57 = vmax.f32 %v2189_v55, %v2221_v35  ;;  %v2065_v9 = vmax.f32 %v2217_v16, %v2219_v21  ;;  %2281 = vst.msk [vmem:[%s3833_s27 + $0x18] sm:$0xff] %vm196_vm0, %v2249_v29  ;;  %v2127_v49 = vmax.f32 %v2063_v4, %v2219_v21  ;;  %v2231_v16 = vld [vmem:[#allocation2 + $0x12a] sm:$0xff] }
 0x12a   : > { %2283 = vst.msk [vmem:[%s3833_s27 + $0x28] sm:$0xff] %vm196_vm0, %v2251_v46  ;;  %2284 = vst.msk [vmem:[%s3833_s27 + $0x30] sm:$0xff] %vm196_vm0, %v2252_v27  ;;  %v2066_v6 = vmax.f32 %v2218_v38, %v2220_v60  ;;  %v2067_v40 = vmax.f32 %v2219_v21, %v2221_v35  ;;  %v2068_v31 = vmax.f32 %v2220_v60, %v2222_v3  ;;  %v2232_v21 = vld [vmem:[#allocation2 + $0x13a] sm:$0xff]  ;;  %v2234_v27 = vld [vmem:[#allocation2 + $0x152] sm:$0xff] }
 0x12b   : > { %2285 = vst.msk [vmem:[%s3833_s27 + $0x38] sm:$0xff] %vm196_vm0, %v2253_v57  ;;  %v2190_v61 = vmax.f32 %v2126_v20, %v2220_v60  ;;  %v2128_v62 = vmax.f32 %v2064_v63, %v2220_v60  ;;  %v2129_v32 = vmax.f32 %v2065_v9, %v2221_v35  ;;  %v2069_v19 = vmax.f32 %v2221_v35, %v2223_v23  ;;  %v2233_v60 = vld [vmem:[#allocation2 + $0x142] sm:$0xff]  ;;  %v2235_v63 = vld [vmem:[#allocation2 + $0x15a] sm:$0xff] }
 0x12c   : > { %v2191_v53 = vmax.f32 %v2127_v49, %v2221_v35  ;;  %v2130_v44 = vmax.f32 %v2066_v6, %v2222_v3  ;;  %v2131_v51 = vmax.f32 %v2067_v40, %v2223_v23  ;;  %v2132_v26 = vmax.f32 %v2068_v31, %v2224_v24  ;;  %v2236_v40 = vld [vmem:[#allocation2 + $0x16a] sm:$0xff] }
 0x12d   : > { %v2254_v15 = vmax.f32 %v2190_v61, %v2222_v3  ;;  %v2192_v36 = vmax.f32 %v2128_v62, %v2222_v3  ;;  %v2193_v7 = vmax.f32 %v2129_v32, %v2223_v23  ;;  %v2133_v5 = vmax.f32 %v2069_v19, %v2225_v45  ;;  %v2237_v61 = vld [vmem:[#allocation2 + $0x172] sm:$0xff] }
 0x12e   : > { %v2255_v11 = vmax.f32 %v2191_v53, %v2223_v23  ;;  %v2194_v14 = vmax.f32 %v2130_v44, %v2224_v24  ;;  %v2195_v47 = vmax.f32 %v2131_v51, %v2225_v45  ;;  %v2196_v28 = vmax.f32 %v2132_v26, %v2226_v52  ;;  %v2239_v44 = vld [vmem:[#allocation2 + $0x18a] sm:$0xff] }
 0x12f   : > { %2286 = vst.msk [vmem:[%s3833_s27 + $0x40] sm:$0xff] %vm196_vm0, %v2254_v15  ;;  %v2256_v59 = vmax.f32 %v2192_v36, %v2224_v24  ;;  %v2257_v41 = vmax.f32 %v2193_v7, %v2225_v45  ;;  %v2197_v0 = vmax.f32 %v2133_v5, %v2227_v10  ;;  %v2070_v30 = vmax.f32 %v2222_v3, %v2224_v24 }
 0x130   : > { %2287 = vst.msk [vmem:[%s3833_s27 + $0x48] sm:$0xff] %vm196_vm0, %v2255_v11  ;;  %v2258_v58 = vmax.f32 %v2194_v14, %v2226_v52  ;;  %v2259_v54 = vmax.f32 %v2195_v47, %v2227_v10  ;;  %v2260_v12 = vmax.f32 %v2196_v28, %v2228_v43  ;;  %v2071_v42 = vmax.f32 %v2223_v23, %v2225_v45 }
 0x131   : > { %2288 = vst.msk [vmem:[%s3833_s27 + $0x50] sm:$0xff] %vm196_vm0, %v2256_v59  ;;  %2289 = vst.msk [vmem:[%s3833_s27 + $0x58] sm:$0xff] %vm196_vm0, %v2257_v41  ;;  %v2261_v18 = vmax.f32 %v2197_v0, %v2229_v34  ;;  %v2134_v37 = vmax.f32 %v2070_v30, %v2226_v52  ;;  %v2072_v48 = vmax.f32 %v2224_v24, %v2226_v52  ;;  %v2238_v24 = vld [vmem:[#allocation2 + $0x182] sm:$0xff] }
 0x132   : > { %v2073_v33 = vmax.f32 %v2225_v45, %v2227_v10  ;;  %2290 = vst.msk [vmem:[%s3833_s27 + $0x60] sm:$0xff] %vm196_vm0, %v2258_v58  ;;  %2291 = vst.msk [vmem:[%s3833_s27 + $0x68] sm:$0xff] %vm196_vm0, %v2259_v54  ;;  %v2135_v56 = vmax.f32 %v2071_v42, %v2227_v10  ;;  %v2074_v38 = vmax.f32 %v2226_v52, %v2228_v43 }
 0x133   : > { %2292 = vst.msk [vmem:[%s3833_s27 + $0x70] sm:$0xff] %vm196_vm0, %v2260_v12  ;;  %v2075_v1 = vmax.f32 %v2227_v10, %v2229_v34  ;;  %v2076_v13 = vmax.f32 %v2228_v43, %v2230_v2  ;;  %2293 = vst.msk [vmem:[%s3833_s27 + $0x78] sm:$0xff] %vm196_vm0, %v2261_v18  ;;  %v2198_v8 = vmax.f32 %v2134_v37, %v2228_v43  ;;  %v2240_v10 = vld [vmem:[#allocation2 + $0x19a] sm:$0xff]  ;;  %v2242_v12 = vld [vmem:[#allocation2 + $0x1b2] sm:$0xff] }
 0x134   : > { %v2136_v22 = vmax.f32 %v2072_v48, %v2228_v43  ;;  %v2137_v17 = vmax.f32 %v2073_v33, %v2229_v34  ;;  %v2077_v50 = vmax.f32 %v2229_v34, %v2231_v16  ;;  %v2199_v39 = vmax.f32 %v2135_v56, %v2229_v34  ;;  %v2241_v43 = vld [vmem:[#allocation2 + $0x1a2] sm:$0xff]  ;;  %v2243_v48 = vld [vmem:[#allocation2 + $0x1ba] sm:$0xff] }
 0x135   : > { %v2138_v55 = vmax.f32 %v2074_v38, %v2230_v2  ;;  %v2139_v35 = vmax.f32 %v2075_v1, %v2231_v16  ;;  %v2140_v25 = vmax.f32 %v2076_v13, %v2232_v21  ;;  %v2262_v3 = vmax.f32 %v2198_v8, %v2230_v2  ;;  %v2244_v1 = vld [vmem:[#allocation2 + $0x1ca] sm:$0xff] }
 0x136   : > { %v2200_v29 = vmax.f32 %v2136_v22, %v2230_v2  ;;  %v2201_v46 = vmax.f32 %v2137_v17, %v2231_v16  ;;  %v2141_v4 = vmax.f32 %v2077_v50, %v2233_v60  ;;  %v2263_v23 = vmax.f32 %v2199_v39, %v2231_v16  ;;  %v2245_v17 = vld [vmem:[#allocation2 + $0x1d2] sm:$0xff] }
 0x137   : > { %v2202_v57 = vmax.f32 %v2138_v55, %v2232_v21  ;;  %v2203_v20 = vmax.f32 %v2139_v35, %v2233_v60  ;;  %v2204_v9 = vmax.f32 %v2140_v25, %v2234_v27  ;;  %2294 = vst.msk [vmem:[%s3833_s27 + $0x80] sm:$0xff] %vm196_vm0, %v2262_v3  ;;  %v2078_v62 = vmax.f32 %v2230_v2, %v2232_v21 }
 0x138   : > { %v2264_v49 = vmax.f32 %v2200_v29, %v2232_v21  ;;  %v2265_v6 = vmax.f32 %v2201_v46, %v2233_v60  ;;  %v2205_v31 = vmax.f32 %v2141_v4, %v2235_v63  ;;  %2295 = vst.msk [vmem:[%s3833_s27 + $0x88] sm:$0xff] %vm196_vm0, %v2263_v23  ;;  %v2079_v45 = vmax.f32 %v2231_v16, %v2233_v60 }
 0x139   : > { %v2266_v32 = vmax.f32 %v2202_v57, %v2234_v27  ;;  %v2267_v19 = vmax.f32 %v2203_v20, %v2235_v63  ;;  %v2268_v53 = vmax.f32 %v2204_v9, %v2236_v40  ;;  %v2142_v26 = vmax.f32 %v2078_v62, %v2234_v27 }
 0x13a   : > { %2296 = vst.msk [vmem:[%s3833_s27 + $0x90] sm:$0xff] %vm196_vm0, %v2264_v49  ;;  %2297 = vst.msk [vmem:[%s3833_s27 + $0x98] sm:$0xff] %vm196_vm0, %v2265_v6  ;;  %v2269_v51 = vmax.f32 %v2205_v31, %v2237_v61  ;;  %v2080_v15 = vmax.f32 %v2232_v21, %v2234_v27  ;;  %v2081_v36 = vmax.f32 %v2233_v60, %v2235_v63 }
 0x13b   : > { %2298 = vst.msk [vmem:[%s3833_s27 + $0xa0] sm:$0xff] %vm196_vm0, %v2266_v32  ;;  %2299 = vst.msk [vmem:[%s3833_s27 + $0xa8] sm:$0xff] %vm196_vm0, %v2267_v19  ;;  %v2143_v7 = vmax.f32 %v2079_v45, %v2235_v63  ;;  %v2082_v52 = vmax.f32 %v2234_v27, %v2236_v40  ;;  %v2083_v5 = vmax.f32 %v2235_v63, %v2237_v61 }
 0x13c   : > { %2300 = vst.msk [vmem:[%s3833_s27 + $0xb0] sm:$0xff] %vm196_vm0, %v2268_v53  ;;  %v2084_v11 = vmax.f32 %v2236_v40, %v2238_v24  ;;  %2301 = vst.msk [vmem:[%s3833_s27 + $0xb8] sm:$0xff] %vm196_vm0, %v2269_v51  ;;  %v2206_v14 = vmax.f32 %v2142_v26, %v2236_v40  ;;  %v2144_v47 = vmax.f32 %v2080_v15, %v2236_v40 }
 0x13d   : > { %v2145_v28 = vmax.f32 %v2081_v36, %v2237_v61  ;;  %v2085_v59 = vmax.f32 %v2237_v61, %v2239_v44  ;;  %v2207_v41 = vmax.f32 %v2143_v7, %v2237_v61  ;;  %v2146_v0 = vmax.f32 %v2082_v52, %v2238_v24 }
 0x13e   : > { %v2147_v34 = vmax.f32 %v2083_v5, %v2239_v44  ;;  %v2148_v30 = vmax.f32 %v2084_v11, %v2240_v10  ;;  %v2270_v2 = vmax.f32 %v2206_v14, %v2238_v24  ;;  %v2208_v58 = vmax.f32 %v2144_v47, %v2238_v24 }
 0x13f   : > { %v2209_v54 = vmax.f32 %v2145_v28, %v2239_v44  ;;  %v2149_v42 = vmax.f32 %v2085_v59, %v2241_v43  ;;  %v2271_v16 = vmax.f32 %v2207_v41, %v2239_v44  ;;  %v2210_v18 = vmax.f32 %v2146_v0, %v2240_v10 }
 0x140   : > { %v2211_v37 = vmax.f32 %v2147_v34, %v2241_v43  ;;  %v2212_v33 = vmax.f32 %v2148_v30, %v2242_v12  ;;  %2302 = vst.msk [vmem:[%s3833_s27 + $0xc0] sm:$0xff] %vm196_vm0, %v2270_v2  ;;  %v2272_v56 = vmax.f32 %v2208_v58, %v2240_v10 }
 0x141   : > { %v2273_v38 = vmax.f32 %v2209_v54, %v2241_v43  ;;  %v2213_v13 = vmax.f32 %v2149_v42, %v2243_v48  ;;  %2303 = vst.msk [vmem:[%s3833_s27 + $0xc8] sm:$0xff] %vm196_vm0, %v2271_v16  ;;  %v2274_v8 = vmax.f32 %v2210_v18, %v2242_v12 }
 0x142   : > { %v2275_v22 = vmax.f32 %v2211_v37, %v2243_v48  ;;  %v2276_v21 = vmax.f32 %v2212_v33, %v2244_v1  ;;  %2304 = vst.msk [vmem:[%s3833_s27 + $0xd0] sm:$0xff] %vm196_vm0, %v2272_v56 }
 0x143   : > { %2305 = vst.msk [vmem:[%s3833_s27 + $0xd8] sm:$0xff] %vm196_vm0, %v2273_v38  ;;  %v2277_v50 = vmax.f32 %v2213_v13, %v2245_v17  ;;  %2306 = vst.msk [vmem:[%s3833_s27 + $0xe0] sm:$0xff] %vm196_vm0, %v2274_v8 }
 0x144   : > { %2307 = vst.msk [vmem:[%s3833_s27 + $0xe8] sm:$0xff] %vm196_vm0, %v2275_v22  ;;  %2308 = vst.msk [vmem:[%s3833_s27 + $0xf0] sm:$0xff] %vm196_vm0, %v2276_v21 }
 0x145   : > { %2309 = vst.msk [vmem:[%s3833_s27 + $0xf8] sm:$0xff] %vm196_vm0, %v2277_v50 }
 0x146 PF: > { %s14_s12 = sadd.s32 1, %s2465_s12  }
 0x147   : > { %p11_p4 = scmp.ge.s32.totalorder %s14_s12, 4  }
 0x149   :  { %13 = sbr.rel (!%p11_p4) target bundleno = 1 (0x1), region = 82 }

</bundles_post_ra>
